<compile_context>
chip_gen: v6e
topology: v6e:2x2x1
jax: 0.10.0
libtpu: 0.0.40
codegen_flags: <defaults>
</compile_context>

<pallas_src>
import math
import functools

import jax
import jax.numpy as jnp
from jax.experimental import pallas as pl
from jax.experimental.pallas import tpu as pltpu

# ---- small synthetic sizes (real model: D=768, DFF=2048, heads=8, L=2) -------
B, S, D = 2, 8, 128
DFF = 256
HEADS = 8
HEAD_DIM = D // HEADS
L = 2                       # num_inter_layers
NEG = -1e18                 # PreSumm masked_fill value
MM_DTYPE = jnp.bfloat16     # MXU operand dtype (accumulation stays f32)

# Packed ("kernel layout") parameter names, in call order.
PARAM_NAMES = [
    "ln1_g", "ln1_b",          # pre-attention LayerNorm (skipped on layer 0)
    "wqkv", "bqkv",            # fused Q|K|V projection  [L, D, 3D] / [L, 3D]
    "wo_h", "bo_a",            # attn out projection split per head [L, H, hd, D]
    "ln2_g", "ln2_b",          # FFN LayerNorm
    "w1", "b1", "w2", "b2",    # FFN
    "lnf_g", "lnf_b",          # final LayerNorm
    "wsc", "bsc",              # scoring linear stored as a (1, D) row
]


# ------------------------- shared math (kernel + reference) -------------------
def _layer_norm(v, g, b, eps=1e-6):
    # One-pass statistics: two independent lane reductions instead of a
    # dependent mean -> centered-square-mean chain.
    mu = jnp.mean(v, axis=-1, keepdims=True)
    ms = jnp.mean(v * v, axis=-1, keepdims=True)
    var = ms - mu * mu
    return (v - mu) * jax.lax.rsqrt(var + eps) * g + b


def _gelu(x):
    # PreSumm's tanh-approximation GELU
    return 0.5 * x * (1.0 + jnp.tanh(math.sqrt(2.0 / math.pi) * (x + 0.044715 * x ** 3)))


def _mm(a, w):
    # MXU matmul: bf16 operands, f32 accumulation.
    return jnp.dot(a.astype(MM_DTYPE), w, preferred_element_type=jnp.float32)


def _split_heads(t):
    # (S, D) -> (HEADS, S, HEAD_DIM) via static lane slices stacked along a new
    # leading (untiled) axis.  Avoids a minor-dim-splitting reshape in Mosaic.
    return jnp.stack(
        [t[:, h * HEAD_DIM:(h + 1) * HEAD_DIM] for h in range(HEADS)], axis=0)


def _ext_forward_single(x, mask_col, mask_row, pe, p, *, approx_recip=True):
    """One document.

    x        : (S, D) raw sentence embeddings
    mask_col : (S, 1) {0,1} sentence mask
    mask_row : (1, S) {0,1} sentence mask (key axis)
    pe       : (S, D) positional encoding
    p        : dict of packed params (jnp arrays or Pallas Refs, static slicing)
    """
    if approx_recip:
        recip = lambda v: pl.reciprocal(v, approx=True)        # EUP slot
    else:
        recip = lambda v: 1.0 / v                              # pure-JAX reference

    x = x * mask_col + pe
    # masked_fill(~mask, -1e18) as an additive key-padding bias, built in-kernel.
    attn_bias = ((1.0 - mask_row) * NEG)[None]                 # (1, 1, S), f32
    inv_sqrt = 1.0 / math.sqrt(HEAD_DIM)

    for l in range(L):
        # PreSumm quirk: no pre-attention LayerNorm on layer 0.
        xn = x if l == 0 else _layer_norm(x, p["ln1_g"][l:l + 1, :],
                                          p["ln1_b"][l:l + 1, :])

        # Fused QKV: one (S,D)@(D,3D) MXU matmul, bias add in f32, then slice.
        qkv = _mm(xn, p["wqkv"][l]) + p["bqkv"][l:l + 1, :]    # (S, 3D) f32
        q = (qkv[:, 0 * D:1 * D] * inv_sqrt).astype(MM_DTYPE)
        k = qkv[:, 1 * D:2 * D].astype(MM_DTYPE)
        v = qkv[:, 2 * D:3 * D].astype(MM_DTYPE)
        qh, kh, vh = _split_heads(q), _split_heads(k), _split_heads(v)  # (H,S,hd)

        # Head-batched attention: two batched contractions, no explicit kh.T.
        scores = jnp.einsum("hqd,hkd->hqk", qh, kh,
                            preferred_element_type=jnp.float32) + attn_bias
        mx = jnp.max(scores, axis=-1, keepdims=True)
        e = jnp.exp(scores - mx)                               # f32 softmax
        probs = (e * recip(jnp.sum(e, axis=-1, keepdims=True))).astype(MM_DTYPE)
        ctx = jnp.einsum("hqk,hkd->hqd", probs, vh,
                         preferred_element_type=jnp.float32)   # (H, S, hd) f32

        # concat-of-heads @ Wo  ==  sum_h ctx_h @ Wo_h : one batched MXU einsum
        # followed by a cheap VPU head-sum (no lane-merge reshape needed).
        ctx_o = jnp.einsum("hqd,hdo->hqo", ctx.astype(MM_DTYPE), p["wo_h"][l],
                           preferred_element_type=jnp.float32)  # (H, S, D)
        attn_out = ctx_o[0]
        for h in range(1, HEADS):
            attn_out = attn_out + ctx_o[h]
        x = attn_out + p["bo_a"][l:l + 1, :] + x               # dropout == identity

        xn2 = _layer_norm(x, p["ln2_g"][l:l + 1, :], p["ln2_b"][l:l + 1, :])
        inter = _gelu(_mm(xn2, p["w1"][l]) + p["b1"][l:l + 1, :])
        x = _mm(inter, p["w2"][l]) + p["b2"][l:l + 1, :] + x

    xf = _layer_norm(x, p["lnf_g"][0:1, :], p["lnf_b"][0:1, :])
    # Scoring linear (D -> 1): VPU multiply + lane reduction instead of a
    # 1-column MXU matmul.
    logits = jnp.sum(xf * p["wsc"][0:1, :], axis=-1, keepdims=True) + p["bsc"][0:1, :]
    score = jax.nn.sigmoid(logits) * mask_col                  # (S, 1)
    return score


# --------------------------------- kernel -------------------------------------
def ext_kernel(x_ref, mcol_ref, mrow_ref, pe_ref, *rest):
    param_refs = dict(zip(PARAM_NAMES, rest[:-1]))
    out_ref = rest[-1]
    score = _ext_forward_single(
        x_ref[0],            # (S, D)
        mcol_ref[0],         # (S, 1)
        mrow_ref[0],         # (1, S)
        pe_ref[:, :],        # (S, D)
        param_refs,
        approx_recip=True,
    )
    # lane-dense store: (S,1) column -> (1,S) row on the 128-lane axis
    out_ref[0] = jnp.transpose(score)


def _zeros_index_map(ndim, b):
    return (0,) * ndim


def ext_summarizer(sents_vec, mask_cls, params, pe):
    """Replicates ExtSummarizer.forward after SBERT encoding.

    sents_vec: [B, S, D] float32 (padded sentence embeddings)
    mask_cls : [B, S]    float32 {0,1}
    returns (sent_scores [B, S], mask_cls) like the PyTorch module.
    """
    mask_f = mask_cls.astype(jnp.float32)
    # Only tiny per-doc masks go to HBM; (S,D) mask broadcast and the (S,S)
    # -1e18 bias are built on the VPU inside the kernel.
    mask_col = mask_f[:, :, None]          # (B, S, 1)
    mask_row = mask_f[:, None, :]          # (B, 1, S)

    in_specs = [
        pl.BlockSpec((1, S, D), lambda b: (b, 0, 0)),   # embeddings (per doc)
        pl.BlockSpec((1, S, 1), lambda b: (b, 0, 0)),   # mask column
        pl.BlockSpec((1, 1, S), lambda b: (b, 0, 0)),   # mask row (keys)
        pl.BlockSpec((S, D), lambda b: (0, 0)),         # positional encoding
    ]
    args = [sents_vec, mask_col, mask_row, pe]
    for name in PARAM_NAMES:                            # grid-invariant params
        arr = params[name]
        in_specs.append(pl.BlockSpec(arr.shape,
                                     functools.partial(_zeros_index_map, arr.ndim)))
        args.append(arr)

    scores = pl.pallas_call(
        ext_kernel,
        out_shape=jax.ShapeDtypeStruct((B, 1, S), jnp.float32),
        grid=(B,),
        in_specs=in_specs,
        out_specs=pl.BlockSpec((1, 1, S), lambda b: (b, 0, 0)),
        compiler_params=pltpu.CompilerParams(
            # parallel batch axis -> v7x's two TensorCores take one doc each;
            # on v5e/v6e it is a cheap serial loop.
            dimension_semantics=("parallel",),
            # headroom for real-size (D=768/DFF=2048) bf16 weights; above the
            # 16 MiB v5e default, below every target chip's physical VMEM.
            vmem_limit_bytes=32 * 1024 * 1024,
        ),
    )(*args)
    return scores[:, 0, :], mask_cls


# ------------------------------ reference (pure JAX) ---------------------------
def reference_scores(sents_vec, mask_cls, params, pe):
    mask_f = mask_cls.astype(jnp.float32)
    outs = []
    for b in range(B):
        outs.append(_ext_forward_single(
            sents_vec[b], mask_f[b][:, None], mask_f[b][None, :], pe, params,
            approx_recip=False))
    return jnp.stack(outs, 0)[:, :, 0]


# ------------------------------ params / pos-emb --------------------------------
def positional_encoding(s, d):
    pos = jnp.arange(s, dtype=jnp.float32)[:, None]
    div = jnp.exp(jnp.arange(0, d, 2, dtype=jnp.float32) * (-math.log(10000.0) / d))
    pe = jnp.zeros((s, d), jnp.float32)
    pe = pe.at[:, 0::2].set(jnp.sin(pos * div))
    pe = pe.at[:, 1::2].set(jnp.cos(pos * div))
    return pe


def init_raw_params(key):
    """Natural (checkpoint-style) f32 parameters."""
    ks = jax.random.split(key, 12)

    def w(k, shape, scale=0.02):
        return (scale * jax.random.normal(k, shape)).astype(jnp.float32)

    return {
        "ln1_g": jnp.ones((L, D), jnp.float32),
        "ln1_b": jnp.zeros((L, D), jnp.float32),
        "wq": w(ks[0], (L, D, D)), "bq": w(ks[1], (L, D), 0.01),
        "wk": w(ks[2], (L, D, D)), "bk": w(ks[3], (L, D), 0.01),
        "wv": w(ks[4], (L, D, D)), "bv": w(ks[5], (L, D), 0.01),
        "wo": w(ks[6], (L, D, D)), "bo": jnp.zeros((L, D), jnp.float32),
        "ln2_g": jnp.ones((L, D), jnp.float32),
        "ln2_b": jnp.zeros((L, D), jnp.float32),
        "w1": w(ks[7], (L, D, DFF)), "b1": w(ks[8], (L, DFF), 0.01),
        "w2": w(ks[9], (L, DFF, D)), "b2": jnp.zeros((L, D), jnp.float32),
        "lnf_g": jnp.ones((1, D), jnp.float32),
        "lnf_b": jnp.zeros((1, D), jnp.float32),
        "wsc": w(ks[10], (D, 1)),
        "bsc": w(ks[11], (1, 1), 0.01),
    }


def pack_params(raw):
    """Fuse / re-layout raw params for the kernel (bf16 MXU weights, f32 rest)."""
    return {
        "ln1_g": raw["ln1_g"], "ln1_b": raw["ln1_b"],
        # fused Q|K|V weight [L, D, 3D] and bias [L, 3D]
        "wqkv": jnp.concatenate([raw["wq"], raw["wk"], raw["wv"]],
                                axis=-1).astype(MM_DTYPE),
        "bqkv": jnp.concatenate([raw["bq"], raw["bk"], raw["bv"]], axis=-1),
        # output projection split per head: [L, HEADS, HEAD_DIM, D]
        "wo_h": raw["wo"].reshape(L, HEADS, HEAD_DIM, D).astype(MM_DTYPE),
        "bo_a": raw["bo"],
        "ln2_g": raw["ln2_g"], "ln2_b": raw["ln2_b"],
        "w1": raw["w1"].astype(MM_DTYPE), "b1": raw["b1"],
        "w2": raw["w2"].astype(MM_DTYPE), "b2": raw["b2"],
        "lnf_g": raw["lnf_g"], "lnf_b": raw["lnf_b"],
        "wsc": jnp.transpose(raw["wsc"]),        # (1, D) row, f32 (VPU reduce)
        "bsc": raw["bsc"],
    }


if __name__ == "__main__":
    key = jax.random.PRNGKey(0)
    k_emb, k_par = jax.random.split(key)

    # Simulated SBERT sentence embeddings (padded_sents_vec in the PyTorch code).
    sents_vec = jax.random.normal(k_emb, (B, S, D), jnp.float32)
    # Doc 0 has 8 sentences, doc 1 has 5 -> mask_cls
    n_sents = jnp.array([S, 5])
    mask_cls = (jnp.arange(S)[None, :] < n_sents[:, None]).astype(jnp.float32)

    params = pack_params(init_raw_params(k_par))
    pe = positional_encoding(S, D)

    sent_scores, mask_out = ext_summarizer(sents_vec, mask_cls, params, pe)
    sent_scores = jax.block_until_ready(sent_scores)

    ref = reference_scores(sents_vec, mask_cls, params, pe)
    assert sent_scores.shape == (B, S) and mask_out.shape == (B, S)
    err = jnp.max(jnp.abs(sent_scores - ref))
    assert jnp.allclose(sent_scores, ref, atol=5e-3, rtol=5e-3), (
        f"mismatch: max abs err {err}")

    print("KERNEL_OK")
</pallas_src>

<mosaic_0001>
module attributes {stable_mosaic.version = 11 : i64} {
  func.func @ext_kernel(%arg0: i32, %arg1: memref<1x8x128xf32, #tpu.memory_space<vmem>>, %arg2: memref<1x8x1xf32, #tpu.memory_space<vmem>>, %arg3: memref<1x1x8xf32, #tpu.memory_space<vmem>>, %arg4: memref<8x128xf32, #tpu.memory_space<vmem>>, %arg5: memref<2x128xf32, #tpu.memory_space<vmem>>, %arg6: memref<2x128xf32, #tpu.memory_space<vmem>>, %arg7: memref<2x128x384xbf16, #tpu.memory_space<vmem>>, %arg8: memref<2x384xf32, #tpu.memory_space<vmem>>, %arg9: memref<2x8x16x128xbf16, #tpu.memory_space<vmem>>, %arg10: memref<2x128xf32, #tpu.memory_space<vmem>>, %arg11: memref<2x128xf32, #tpu.memory_space<vmem>>, %arg12: memref<2x128xf32, #tpu.memory_space<vmem>>, %arg13: memref<2x128x256xbf16, #tpu.memory_space<vmem>>, %arg14: memref<2x256xf32, #tpu.memory_space<vmem>>, %arg15: memref<2x256x128xbf16, #tpu.memory_space<vmem>>, %arg16: memref<2x128xf32, #tpu.memory_space<vmem>>, %arg17: memref<1x128xf32, #tpu.memory_space<vmem>>, %arg18: memref<1x128xf32, #tpu.memory_space<vmem>>, %arg19: memref<1x128xf32, #tpu.memory_space<vmem>>, %arg20: memref<1x1xf32, #tpu.memory_space<vmem>>, %arg21: memref<1x1x8xf32, #tpu.memory_space<vmem>>) attributes {dimension_semantics = [#tpu.dimension_semantics<parallel>], iteration_bounds = array<i64: 2>, scalar_prefetch = 0 : i64, scratch_operands = 0 : i64, tpu.core_type = #tpu.core_type<tc>, window_params = [{transform_indices = @transform_0, window_bounds = array<i64: 1, 8, 128>}, {transform_indices = @transform_1, window_bounds = array<i64: 1, 8, 1>}, {transform_indices = @transform_2, window_bounds = array<i64: 1, 1, 8>}, {pipeline_mode = #tpu.pipeline_mode<synchronous>, transform_indices = @transform_3, window_bounds = array<i64: 8, 128>}, {pipeline_mode = #tpu.pipeline_mode<synchronous>, transform_indices = @transform_4, window_bounds = array<i64: 2, 128>}, {pipeline_mode = #tpu.pipeline_mode<synchronous>, transform_indices = @transform_5, window_bounds = array<i64: 2, 128>}, {pipeline_mode = #tpu.pipeline_mode<synchronous>, transform_indices = @transform_6, window_bounds = array<i64: 2, 128, 384>}, {pipeline_mode = #tpu.pipeline_mode<synchronous>, transform_indices = @transform_7, window_bounds = array<i64: 2, 384>}, {pipeline_mode = #tpu.pipeline_mode<synchronous>, transform_indices = @transform_8, window_bounds = array<i64: 2, 8, 16, 128>}, {pipeline_mode = #tpu.pipeline_mode<synchronous>, transform_indices = @transform_9, window_bounds = array<i64: 2, 128>}, {pipeline_mode = #tpu.pipeline_mode<synchronous>, transform_indices = @transform_10, window_bounds = array<i64: 2, 128>}, {pipeline_mode = #tpu.pipeline_mode<synchronous>, transform_indices = @transform_11, window_bounds = array<i64: 2, 128>}, {pipeline_mode = #tpu.pipeline_mode<synchronous>, transform_indices = @transform_12, window_bounds = array<i64: 2, 128, 256>}, {pipeline_mode = #tpu.pipeline_mode<synchronous>, transform_indices = @transform_13, window_bounds = array<i64: 2, 256>}, {pipeline_mode = #tpu.pipeline_mode<synchronous>, transform_indices = @transform_14, window_bounds = array<i64: 2, 256, 128>}, {pipeline_mode = #tpu.pipeline_mode<synchronous>, transform_indices = @transform_15, window_bounds = array<i64: 2, 128>}, {pipeline_mode = #tpu.pipeline_mode<synchronous>, transform_indices = @transform_16, window_bounds = array<i64: 1, 128>}, {pipeline_mode = #tpu.pipeline_mode<synchronous>, transform_indices = @transform_17, window_bounds = array<i64: 1, 128>}, {pipeline_mode = #tpu.pipeline_mode<synchronous>, transform_indices = @transform_18, window_bounds = array<i64: 1, 128>}, {pipeline_mode = #tpu.pipeline_mode<synchronous>, transform_indices = @transform_19, window_bounds = array<i64: 1, 1>}, {transform_indices = @transform_20, window_bounds = array<i64: 1, 1, 8>}]} {
    %c0 = arith.constant 0 : index
    %c0_0 = arith.constant 0 : index
    %c0_1 = arith.constant 0 : index
    %0 = vector.load %arg1[%c0, %c0_0, %c0_1] : memref<1x8x128xf32, #tpu.memory_space<vmem>>, vector<1x8x128xf32>
    %1 = vector.shape_cast %0 : vector<1x8x128xf32> to vector<8x128xf32>
    %c0_2 = arith.constant 0 : index
    %c0_3 = arith.constant 0 : index
    %c0_4 = arith.constant 0 : index
    %2 = vector.load %arg2[%c0_2, %c0_3, %c0_4] : memref<1x8x1xf32, #tpu.memory_space<vmem>>, vector<1x8x1xf32>
    %3 = vector.shape_cast %2 : vector<1x8x1xf32> to vector<8x1xf32>
    %c0_5 = arith.constant 0 : index
    %c0_6 = arith.constant 0 : index
    %c0_7 = arith.constant 0 : index
    %4 = vector.load %arg3[%c0_5, %c0_6, %c0_7] : memref<1x1x8xf32, #tpu.memory_space<vmem>>, vector<1x1x8xf32>
    %5 = vector.shape_cast %4 : vector<1x1x8xf32> to vector<1x8xf32>
    %c0_8 = arith.constant 0 : index
    %c0_9 = arith.constant 0 : index
    %6 = vector.load %arg4[%c0_8, %c0_9] : memref<8x128xf32, #tpu.memory_space<vmem>>, vector<8x128xf32>
    %7 = vector.broadcast %3 : vector<8x1xf32> to vector<8x128xf32>
    %8 = arith.mulf %1, %7 : vector<8x128xf32>
    %9 = arith.addf %8, %6 : vector<8x128xf32>
    %cst = arith.constant 1.000000e+00 : f32
    %10 = vector.broadcast %cst : f32 to vector<1x8xf32>
    %11 = arith.subf %10, %5 : vector<1x8xf32>
    %cst_10 = arith.constant -9.99999984E+17 : f32
    %12 = vector.broadcast %cst_10 : f32 to vector<1x8xf32>
    %13 = arith.mulf %11, %12 : vector<1x8xf32>
    %14 = vector.shape_cast %13 : vector<1x8xf32> to vector<1x1x8xf32>
    %c0_11 = arith.constant 0 : index
    %c0_12 = arith.constant 0 : index
    %c0_13 = arith.constant 0 : index
    %15 = vector.load %arg7[%c0_11, %c0_12, %c0_13] : memref<2x128x384xbf16, #tpu.memory_space<vmem>>, vector<1x128x384xbf16>
    %16 = vector.shape_cast %15 : vector<1x128x384xbf16> to vector<128x384xbf16>
    %17 = arith.truncf %9 : vector<8x128xf32> to vector<8x128xbf16>
    %cst_14 = arith.constant dense<0.000000e+00> : vector<8x384xf32>
    %18 = tpu.matmul %17, %16, %cst_14 {dimension_numbers = #tpu.dot_dimension_numbers<[1], [0], [0], [1], [0, 0, 1, 1], [], []>} : vector<8x128xbf16>, vector<128x384xbf16>, vector<8x384xf32> -> vector<8x384xf32>
    %c0_15 = arith.constant 0 : index
    %c0_16 = arith.constant 0 : index
    %19 = vector.load %arg8[%c0_15, %c0_16] : memref<2x384xf32, #tpu.memory_space<vmem>>, vector<1x384xf32>
    %20 = vector.broadcast %19 : vector<1x384xf32> to vector<8x384xf32>
    %21 = arith.addf %18, %20 : vector<8x384xf32>
    %22 = vector.extract_strided_slice %21 {offsets = [0, 0], sizes = [8, 128], strides = [1, 1]} : vector<8x384xf32> to vector<8x128xf32>
    %cst_17 = arith.constant 2.500000e-01 : f32
    %23 = vector.broadcast %cst_17 : f32 to vector<8x128xf32>
    %24 = arith.mulf %22, %23 : vector<8x128xf32>
    %25 = arith.truncf %24 : vector<8x128xf32> to vector<8x128xbf16>
    %26 = vector.extract_strided_slice %21 {offsets = [0, 128], sizes = [8, 128], strides = [1, 1]} : vector<8x384xf32> to vector<8x128xf32>
    %27 = arith.truncf %26 : vector<8x128xf32> to vector<8x128xbf16>
    %28 = vector.extract_strided_slice %21 {offsets = [0, 256], sizes = [8, 128], strides = [1, 1]} : vector<8x384xf32> to vector<8x128xf32>
    %29 = arith.truncf %28 : vector<8x128xf32> to vector<8x128xbf16>
    %30 = vector.extract_strided_slice %25 {offsets = [0, 0], sizes = [8, 16], strides = [1, 1]} : vector<8x128xbf16> to vector<8x16xbf16>
    %31 = vector.extract_strided_slice %25 {offsets = [0, 16], sizes = [8, 16], strides = [1, 1]} : vector<8x128xbf16> to vector<8x16xbf16>
    %32 = vector.extract_strided_slice %25 {offsets = [0, 32], sizes = [8, 16], strides = [1, 1]} : vector<8x128xbf16> to vector<8x16xbf16>
    %33 = vector.extract_strided_slice %25 {offsets = [0, 48], sizes = [8, 16], strides = [1, 1]} : vector<8x128xbf16> to vector<8x16xbf16>
    %34 = vector.extract_strided_slice %25 {offsets = [0, 64], sizes = [8, 16], strides = [1, 1]} : vector<8x128xbf16> to vector<8x16xbf16>
    %35 = vector.extract_strided_slice %25 {offsets = [0, 80], sizes = [8, 16], strides = [1, 1]} : vector<8x128xbf16> to vector<8x16xbf16>
    %36 = vector.extract_strided_slice %25 {offsets = [0, 96], sizes = [8, 16], strides = [1, 1]} : vector<8x128xbf16> to vector<8x16xbf16>
    %37 = vector.extract_strided_slice %25 {offsets = [0, 112], sizes = [8, 16], strides = [1, 1]} : vector<8x128xbf16> to vector<8x16xbf16>
    %38 = vector.shape_cast %30 : vector<8x16xbf16> to vector<1x8x16xbf16>
    %39 = vector.shape_cast %31 : vector<8x16xbf16> to vector<1x8x16xbf16>
    %40 = vector.shape_cast %32 : vector<8x16xbf16> to vector<1x8x16xbf16>
    %41 = vector.shape_cast %33 : vector<8x16xbf16> to vector<1x8x16xbf16>
    %42 = vector.shape_cast %34 : vector<8x16xbf16> to vector<1x8x16xbf16>
    %43 = vector.shape_cast %35 : vector<8x16xbf16> to vector<1x8x16xbf16>
    %44 = vector.shape_cast %36 : vector<8x16xbf16> to vector<1x8x16xbf16>
    %45 = vector.shape_cast %37 : vector<8x16xbf16> to vector<1x8x16xbf16>
    %46 = tpu.concatenate %38, %39, %40, %41, %42, %43, %44, %45 in 0 : vector<1x8x16xbf16>, vector<1x8x16xbf16>, vector<1x8x16xbf16>, vector<1x8x16xbf16>, vector<1x8x16xbf16>, vector<1x8x16xbf16>, vector<1x8x16xbf16>, vector<1x8x16xbf16> -> vector<8x8x16xbf16>
    %47 = vector.extract_strided_slice %27 {offsets = [0, 0], sizes = [8, 16], strides = [1, 1]} : vector<8x128xbf16> to vector<8x16xbf16>
    %48 = vector.extract_strided_slice %27 {offsets = [0, 16], sizes = [8, 16], strides = [1, 1]} : vector<8x128xbf16> to vector<8x16xbf16>
    %49 = vector.extract_strided_slice %27 {offsets = [0, 32], sizes = [8, 16], strides = [1, 1]} : vector<8x128xbf16> to vector<8x16xbf16>
    %50 = vector.extract_strided_slice %27 {offsets = [0, 48], sizes = [8, 16], strides = [1, 1]} : vector<8x128xbf16> to vector<8x16xbf16>
    %51 = vector.extract_strided_slice %27 {offsets = [0, 64], sizes = [8, 16], strides = [1, 1]} : vector<8x128xbf16> to vector<8x16xbf16>
    %52 = vector.extract_strided_slice %27 {offsets = [0, 80], sizes = [8, 16], strides = [1, 1]} : vector<8x128xbf16> to vector<8x16xbf16>
    %53 = vector.extract_strided_slice %27 {offsets = [0, 96], sizes = [8, 16], strides = [1, 1]} : vector<8x128xbf16> to vector<8x16xbf16>
    %54 = vector.extract_strided_slice %27 {offsets = [0, 112], sizes = [8, 16], strides = [1, 1]} : vector<8x128xbf16> to vector<8x16xbf16>
    %55 = vector.shape_cast %47 : vector<8x16xbf16> to vector<1x8x16xbf16>
    %56 = vector.shape_cast %48 : vector<8x16xbf16> to vector<1x8x16xbf16>
    %57 = vector.shape_cast %49 : vector<8x16xbf16> to vector<1x8x16xbf16>
    %58 = vector.shape_cast %50 : vector<8x16xbf16> to vector<1x8x16xbf16>
    %59 = vector.shape_cast %51 : vector<8x16xbf16> to vector<1x8x16xbf16>
    %60 = vector.shape_cast %52 : vector<8x16xbf16> to vector<1x8x16xbf16>
    %61 = vector.shape_cast %53 : vector<8x16xbf16> to vector<1x8x16xbf16>
    %62 = vector.shape_cast %54 : vector<8x16xbf16> to vector<1x8x16xbf16>
    %63 = tpu.concatenate %55, %56, %57, %58, %59, %60, %61, %62 in 0 : vector<1x8x16xbf16>, vector<1x8x16xbf16>, vector<1x8x16xbf16>, vector<1x8x16xbf16>, vector<1x8x16xbf16>, vector<1x8x16xbf16>, vector<1x8x16xbf16>, vector<1x8x16xbf16> -> vector<8x8x16xbf16>
    %64 = vector.extract_strided_slice %29 {offsets = [0, 0], sizes = [8, 16], strides = [1, 1]} : vector<8x128xbf16> to vector<8x16xbf16>
    %65 = vector.extract_strided_slice %29 {offsets = [0, 16], sizes = [8, 16], strides = [1, 1]} : vector<8x128xbf16> to vector<8x16xbf16>
    %66 = vector.extract_strided_slice %29 {offsets = [0, 32], sizes = [8, 16], strides = [1, 1]} : vector<8x128xbf16> to vector<8x16xbf16>
    %67 = vector.extract_strided_slice %29 {offsets = [0, 48], sizes = [8, 16], strides = [1, 1]} : vector<8x128xbf16> to vector<8x16xbf16>
    %68 = vector.extract_strided_slice %29 {offsets = [0, 64], sizes = [8, 16], strides = [1, 1]} : vector<8x128xbf16> to vector<8x16xbf16>
    %69 = vector.extract_strided_slice %29 {offsets = [0, 80], sizes = [8, 16], strides = [1, 1]} : vector<8x128xbf16> to vector<8x16xbf16>
    %70 = vector.extract_strided_slice %29 {offsets = [0, 96], sizes = [8, 16], strides = [1, 1]} : vector<8x128xbf16> to vector<8x16xbf16>
    %71 = vector.extract_strided_slice %29 {offsets = [0, 112], sizes = [8, 16], strides = [1, 1]} : vector<8x128xbf16> to vector<8x16xbf16>
    %72 = vector.shape_cast %64 : vector<8x16xbf16> to vector<1x8x16xbf16>
    %73 = vector.shape_cast %65 : vector<8x16xbf16> to vector<1x8x16xbf16>
    %74 = vector.shape_cast %66 : vector<8x16xbf16> to vector<1x8x16xbf16>
    %75 = vector.shape_cast %67 : vector<8x16xbf16> to vector<1x8x16xbf16>
    %76 = vector.shape_cast %68 : vector<8x16xbf16> to vector<1x8x16xbf16>
    %77 = vector.shape_cast %69 : vector<8x16xbf16> to vector<1x8x16xbf16>
    %78 = vector.shape_cast %70 : vector<8x16xbf16> to vector<1x8x16xbf16>
    %79 = vector.shape_cast %71 : vector<8x16xbf16> to vector<1x8x16xbf16>
    %80 = tpu.concatenate %72, %73, %74, %75, %76, %77, %78, %79 in 0 : vector<1x8x16xbf16>, vector<1x8x16xbf16>, vector<1x8x16xbf16>, vector<1x8x16xbf16>, vector<1x8x16xbf16>, vector<1x8x16xbf16>, vector<1x8x16xbf16>, vector<1x8x16xbf16> -> vector<8x8x16xbf16>
    "tpu.trace_start"() <{level = 10 : i32, message = "hqd,hkd->hqk"}> : () -> ()
    %cst_18 = arith.constant dense<0.000000e+00> : vector<8x8x8xf32>
    %81 = tpu.matmul %46, %63, %cst_18 {dimension_numbers = #tpu.dot_dimension_numbers<[2], [2], [1], [1], [0, 0, 0, 1, 1, 1], [0], [0]>} : vector<8x8x16xbf16>, vector<8x8x16xbf16>, vector<8x8x8xf32> -> vector<8x8x8xf32>
    "tpu.trace_stop"() : () -> ()
    %82 = vector.broadcast %14 : vector<1x1x8xf32> to vector<8x8x8xf32>
    %83 = arith.addf %81, %82 : vector<8x8x8xf32>
    %cst_19 = arith.constant dense<0xFF800000> : vector<8x8xf32>
    %84 = vector.multi_reduction <maximumf>, %83, %cst_19 [2] : vector<8x8x8xf32> to vector<8x8xf32>
    %85 = vector.shape_cast %84 : vector<8x8xf32> to vector<8x8x1xf32>
    %86 = vector.broadcast %85 : vector<8x8x1xf32> to vector<8x8x8xf32>
    %87 = arith.subf %83, %86 : vector<8x8x8xf32>
    %88 = math.exp %87 : vector<8x8x8xf32>
    %cst_20 = arith.constant dense<0.000000e+00> : vector<8x8xf32>
    %89 = vector.multi_reduction <add>, %88, %cst_20 [2] : vector<8x8x8xf32> to vector<8x8xf32>
    %90 = vector.shape_cast %89 : vector<8x8xf32> to vector<8x8x1xf32>
    %91 = tpu.reciprocal %90 {approx = true} : vector<8x8x1xf32> -> vector<8x8x1xf32>
    %92 = vector.broadcast %91 : vector<8x8x1xf32> to vector<8x8x8xf32>
    %93 = arith.mulf %88, %92 : vector<8x8x8xf32>
    %94 = arith.truncf %93 : vector<8x8x8xf32> to vector<8x8x8xbf16>
    "tpu.trace_start"() <{level = 10 : i32, message = "hqk,hkd->hqd"}> : () -> ()
    %cst_21 = arith.constant dense<0.000000e+00> : vector<8x8x16xf32>
    %95 = tpu.matmul %94, %80, %cst_21 {dimension_numbers = #tpu.dot_dimension_numbers<[2], [1], [1], [2], [0, 0, 0, 1, 1, 2], [0], [0]>} : vector<8x8x8xbf16>, vector<8x8x16xbf16>, vector<8x8x16xf32> -> vector<8x8x16xf32>
    "tpu.trace_stop"() : () -> ()
    %96 = arith.truncf %95 : vector<8x8x16xf32> to vector<8x8x16xbf16>
    %c0_22 = arith.constant 0 : index
    %c0_23 = arith.constant 0 : index
    %c0_24 = arith.constant 0 : index
    %c0_25 = arith.constant 0 : index
    %97 = vector.load %arg9[%c0_22, %c0_23, %c0_24, %c0_25] : memref<2x8x16x128xbf16, #tpu.memory_space<vmem>>, vector<1x8x16x128xbf16>
    %98 = vector.shape_cast %97 : vector<1x8x16x128xbf16> to vector<8x16x128xbf16>
    "tpu.trace_start"() <{level = 10 : i32, message = "hqd,hdo->hqo"}> : () -> ()
    %cst_26 = arith.constant dense<0.000000e+00> : vector<8x8x128xf32>
    %99 = tpu.matmul %96, %98, %cst_26 {dimension_numbers = #tpu.dot_dimension_numbers<[2], [1], [1], [2], [0, 0, 0, 1, 1, 2], [0], [0]>} : vector<8x8x16xbf16>, vector<8x16x128xbf16>, vector<8x8x128xf32> -> vector<8x8x128xf32>
    "tpu.trace_stop"() : () -> ()
    %100 = vector.extract_strided_slice %99 {offsets = [0, 0, 0], sizes = [1, 8, 128], strides = [1, 1, 1]} : vector<8x8x128xf32> to vector<1x8x128xf32>
    %101 = vector.shape_cast %100 : vector<1x8x128xf32> to vector<8x128xf32>
    %102 = vector.extract_strided_slice %99 {offsets = [1, 0, 0], sizes = [1, 8, 128], strides = [1, 1, 1]} : vector<8x8x128xf32> to vector<1x8x128xf32>
    %103 = vector.shape_cast %102 : vector<1x8x128xf32> to vector<8x128xf32>
    %104 = arith.addf %101, %103 : vector<8x128xf32>
    %105 = vector.extract_strided_slice %99 {offsets = [2, 0, 0], sizes = [1, 8, 128], strides = [1, 1, 1]} : vector<8x8x128xf32> to vector<1x8x128xf32>
    %106 = vector.shape_cast %105 : vector<1x8x128xf32> to vector<8x128xf32>
    %107 = arith.addf %104, %106 : vector<8x128xf32>
    %108 = vector.extract_strided_slice %99 {offsets = [3, 0, 0], sizes = [1, 8, 128], strides = [1, 1, 1]} : vector<8x8x128xf32> to vector<1x8x128xf32>
    %109 = vector.shape_cast %108 : vector<1x8x128xf32> to vector<8x128xf32>
    %110 = arith.addf %107, %109 : vector<8x128xf32>
    %111 = vector.extract_strided_slice %99 {offsets = [4, 0, 0], sizes = [1, 8, 128], strides = [1, 1, 1]} : vector<8x8x128xf32> to vector<1x8x128xf32>
    %112 = vector.shape_cast %111 : vector<1x8x128xf32> to vector<8x128xf32>
    %113 = arith.addf %110, %112 : vector<8x128xf32>
    %114 = vector.extract_strided_slice %99 {offsets = [5, 0, 0], sizes = [1, 8, 128], strides = [1, 1, 1]} : vector<8x8x128xf32> to vector<1x8x128xf32>
    %115 = vector.shape_cast %114 : vector<1x8x128xf32> to vector<8x128xf32>
    %116 = arith.addf %113, %115 : vector<8x128xf32>
    %117 = vector.extract_strided_slice %99 {offsets = [6, 0, 0], sizes = [1, 8, 128], strides = [1, 1, 1]} : vector<8x8x128xf32> to vector<1x8x128xf32>
    %118 = vector.shape_cast %117 : vector<1x8x128xf32> to vector<8x128xf32>
    %119 = arith.addf %116, %118 : vector<8x128xf32>
    %120 = vector.extract_strided_slice %99 {offsets = [7, 0, 0], sizes = [1, 8, 128], strides = [1, 1, 1]} : vector<8x8x128xf32> to vector<1x8x128xf32>
    %121 = vector.shape_cast %120 : vector<1x8x128xf32> to vector<8x128xf32>
    %122 = arith.addf %119, %121 : vector<8x128xf32>
    %c0_27 = arith.constant 0 : index
    %c0_28 = arith.constant 0 : index
    %123 = vector.load %arg10[%c0_27, %c0_28] : memref<2x128xf32, #tpu.memory_space<vmem>>, vector<1x128xf32>
    %124 = vector.broadcast %123 : vector<1x128xf32> to vector<8x128xf32>
    %125 = arith.addf %122, %124 : vector<8x128xf32>
    %126 = arith.addf %125, %9 : vector<8x128xf32>
    %c0_29 = arith.constant 0 : index
    %c0_30 = arith.constant 0 : index
    %127 = vector.load %arg11[%c0_29, %c0_30] : memref<2x128xf32, #tpu.memory_space<vmem>>, vector<1x128xf32>
    %c0_31 = arith.constant 0 : index
    %c0_32 = arith.constant 0 : index
    %128 = vector.load %arg12[%c0_31, %c0_32] : memref<2x128xf32, #tpu.memory_space<vmem>>, vector<1x128xf32>
    %cst_33 = arith.constant dense<0.000000e+00> : vector<8xf32>
    %129 = vector.multi_reduction <add>, %126, %cst_33 [1] : vector<8x128xf32> to vector<8xf32>
    %130 = vector.shape_cast %129 : vector<8xf32> to vector<8x1xf32>
    %cst_34 = arith.constant 1.280000e+02 : f32
    %131 = vector.broadcast %cst_34 : f32 to vector<8x1xf32>
    %132 = arith.divf %130, %131 : vector<8x1xf32>
    %133 = arith.mulf %126, %126 : vector<8x128xf32>
    %cst_35 = arith.constant dense<0.000000e+00> : vector<8xf32>
    %134 = vector.multi_reduction <add>, %133, %cst_35 [1] : vector<8x128xf32> to vector<8xf32>
    %135 = vector.shape_cast %134 : vector<8xf32> to vector<8x1xf32>
    %cst_36 = arith.constant 1.280000e+02 : f32
    %136 = vector.broadcast %cst_36 : f32 to vector<8x1xf32>
    %137 = arith.divf %135, %136 : vector<8x1xf32>
    %138 = arith.mulf %132, %132 : vector<8x1xf32>
    %139 = arith.subf %137, %138 : vector<8x1xf32>
    %140 = vector.broadcast %132 : vector<8x1xf32> to vector<8x128xf32>
    %141 = arith.subf %126, %140 : vector<8x128xf32>
    %cst_37 = arith.constant 9.99999997E-7 : f32
    %142 = vector.broadcast %cst_37 : f32 to vector<8x1xf32>
    %143 = arith.addf %139, %142 : vector<8x1xf32>
    %144 = math.rsqrt %143 : vector<8x1xf32>
    %145 = vector.broadcast %144 : vector<8x1xf32> to vector<8x128xf32>
    %146 = arith.mulf %141, %145 : vector<8x128xf32>
    %147 = vector.broadcast %127 : vector<1x128xf32> to vector<8x128xf32>
    %148 = arith.mulf %146, %147 : vector<8x128xf32>
    %149 = vector.broadcast %128 : vector<1x128xf32> to vector<8x128xf32>
    %150 = arith.addf %148, %149 : vector<8x128xf32>
    %c0_38 = arith.constant 0 : index
    %c0_39 = arith.constant 0 : index
    %c0_40 = arith.constant 0 : index
    %151 = vector.load %arg13[%c0_38, %c0_39, %c0_40] : memref<2x128x256xbf16, #tpu.memory_space<vmem>>, vector<1x128x256xbf16>
    %152 = vector.shape_cast %151 : vector<1x128x256xbf16> to vector<128x256xbf16>
    %153 = arith.truncf %150 : vector<8x128xf32> to vector<8x128xbf16>
    %cst_41 = arith.constant dense<0.000000e+00> : vector<8x256xf32>
    %154 = tpu.matmul %153, %152, %cst_41 {dimension_numbers = #tpu.dot_dimension_numbers<[1], [0], [0], [1], [0, 0, 1, 1], [], []>} : vector<8x128xbf16>, vector<128x256xbf16>, vector<8x256xf32> -> vector<8x256xf32>
    %c0_42 = arith.constant 0 : index
    %c0_43 = arith.constant 0 : index
    %155 = vector.load %arg14[%c0_42, %c0_43] : memref<2x256xf32, #tpu.memory_space<vmem>>, vector<1x256xf32>
    %156 = vector.broadcast %155 : vector<1x256xf32> to vector<8x256xf32>
    %157 = arith.addf %154, %156 : vector<8x256xf32>
    %cst_44 = arith.constant 5.000000e-01 : f32
    %158 = vector.broadcast %cst_44 : f32 to vector<8x256xf32>
    %159 = arith.mulf %158, %157 : vector<8x256xf32>
    %160 = arith.mulf %157, %157 : vector<8x256xf32>
    %161 = arith.mulf %157, %160 : vector<8x256xf32>
    %cst_45 = arith.constant 4.471500e-02 : f32
    %162 = vector.broadcast %cst_45 : f32 to vector<8x256xf32>
    %163 = arith.mulf %162, %161 : vector<8x256xf32>
    %164 = arith.addf %157, %163 : vector<8x256xf32>
    %cst_46 = arith.constant 0.797884583 : f32
    %165 = vector.broadcast %cst_46 : f32 to vector<8x256xf32>
    %166 = arith.mulf %165, %164 : vector<8x256xf32>
    %167 = math.tanh %166 : vector<8x256xf32>
    %cst_47 = arith.constant 1.000000e+00 : f32
    %168 = vector.broadcast %cst_47 : f32 to vector<8x256xf32>
    %169 = arith.addf %168, %167 : vector<8x256xf32>
    %170 = arith.mulf %159, %169 : vector<8x256xf32>
    %c0_48 = arith.constant 0 : index
    %c0_49 = arith.constant 0 : index
    %c0_50 = arith.constant 0 : index
    %171 = vector.load %arg15[%c0_48, %c0_49, %c0_50] : memref<2x256x128xbf16, #tpu.memory_space<vmem>>, vector<1x256x128xbf16>
    %172 = vector.shape_cast %171 : vector<1x256x128xbf16> to vector<256x128xbf16>
    %173 = arith.truncf %170 : vector<8x256xf32> to vector<8x256xbf16>
    %cst_51 = arith.constant dense<0.000000e+00> : vector<8x128xf32>
    %174 = tpu.matmul %173, %172, %cst_51 {dimension_numbers = #tpu.dot_dimension_numbers<[1], [0], [0], [1], [0, 0, 1, 1], [], []>} : vector<8x256xbf16>, vector<256x128xbf16>, vector<8x128xf32> -> vector<8x128xf32>
    %c0_52 = arith.constant 0 : index
    %c0_53 = arith.constant 0 : index
    %175 = vector.load %arg16[%c0_52, %c0_53] : memref<2x128xf32, #tpu.memory_space<vmem>>, vector<1x128xf32>
    %176 = vector.broadcast %175 : vector<1x128xf32> to vector<8x128xf32>
    %177 = arith.addf %174, %176 : vector<8x128xf32>
    %178 = arith.addf %177, %126 : vector<8x128xf32>
    %c1 = arith.constant 1 : index
    %c0_54 = arith.constant 0 : index
    %179 = vector.load %arg5[%c1, %c0_54] : memref<2x128xf32, #tpu.memory_space<vmem>>, vector<1x128xf32>
    %c1_55 = arith.constant 1 : index
    %c0_56 = arith.constant 0 : index
    %180 = vector.load %arg6[%c1_55, %c0_56] : memref<2x128xf32, #tpu.memory_space<vmem>>, vector<1x128xf32>
    %cst_57 = arith.constant dense<0.000000e+00> : vector<8xf32>
    %181 = vector.multi_reduction <add>, %178, %cst_57 [1] : vector<8x128xf32> to vector<8xf32>
    %182 = vector.shape_cast %181 : vector<8xf32> to vector<8x1xf32>
    %cst_58 = arith.constant 1.280000e+02 : f32
    %183 = vector.broadcast %cst_58 : f32 to vector<8x1xf32>
    %184 = arith.divf %182, %183 : vector<8x1xf32>
    %185 = arith.mulf %178, %178 : vector<8x128xf32>
    %cst_59 = arith.constant dense<0.000000e+00> : vector<8xf32>
    %186 = vector.multi_reduction <add>, %185, %cst_59 [1] : vector<8x128xf32> to vector<8xf32>
    %187 = vector.shape_cast %186 : vector<8xf32> to vector<8x1xf32>
    %cst_60 = arith.constant 1.280000e+02 : f32
    %188 = vector.broadcast %cst_60 : f32 to vector<8x1xf32>
    %189 = arith.divf %187, %188 : vector<8x1xf32>
    %190 = arith.mulf %184, %184 : vector<8x1xf32>
    %191 = arith.subf %189, %190 : vector<8x1xf32>
    %192 = vector.broadcast %184 : vector<8x1xf32> to vector<8x128xf32>
    %193 = arith.subf %178, %192 : vector<8x128xf32>
    %cst_61 = arith.constant 9.99999997E-7 : f32
    %194 = vector.broadcast %cst_61 : f32 to vector<8x1xf32>
    %195 = arith.addf %191, %194 : vector<8x1xf32>
    %196 = math.rsqrt %195 : vector<8x1xf32>
    %197 = vector.broadcast %196 : vector<8x1xf32> to vector<8x128xf32>
    %198 = arith.mulf %193, %197 : vector<8x128xf32>
    %199 = vector.broadcast %179 : vector<1x128xf32> to vector<8x128xf32>
    %200 = arith.mulf %198, %199 : vector<8x128xf32>
    %201 = vector.broadcast %180 : vector<1x128xf32> to vector<8x128xf32>
    %202 = arith.addf %200, %201 : vector<8x128xf32>
    %c1_62 = arith.constant 1 : index
    %c0_63 = arith.constant 0 : index
    %c0_64 = arith.constant 0 : index
    %203 = vector.load %arg7[%c1_62, %c0_63, %c0_64] : memref<2x128x384xbf16, #tpu.memory_space<vmem>>, vector<1x128x384xbf16>
    %204 = vector.shape_cast %203 : vector<1x128x384xbf16> to vector<128x384xbf16>
    %205 = arith.truncf %202 : vector<8x128xf32> to vector<8x128xbf16>
    %cst_65 = arith.constant dense<0.000000e+00> : vector<8x384xf32>
    %206 = tpu.matmul %205, %204, %cst_65 {dimension_numbers = #tpu.dot_dimension_numbers<[1], [0], [0], [1], [0, 0, 1, 1], [], []>} : vector<8x128xbf16>, vector<128x384xbf16>, vector<8x384xf32> -> vector<8x384xf32>
    %c1_66 = arith.constant 1 : index
    %c0_67 = arith.constant 0 : index
    %207 = vector.load %arg8[%c1_66, %c0_67] : memref<2x384xf32, #tpu.memory_space<vmem>>, vector<1x384xf32>
    %208 = vector.broadcast %207 : vector<1x384xf32> to vector<8x384xf32>
    %209 = arith.addf %206, %208 : vector<8x384xf32>
    %210 = vector.extract_strided_slice %209 {offsets = [0, 0], sizes = [8, 128], strides = [1, 1]} : vector<8x384xf32> to vector<8x128xf32>
    %cst_68 = arith.constant 2.500000e-01 : f32
    %211 = vector.broadcast %cst_68 : f32 to vector<8x128xf32>
    %212 = arith.mulf %210, %211 : vector<8x128xf32>
    %213 = arith.truncf %212 : vector<8x128xf32> to vector<8x128xbf16>
    %214 = vector.extract_strided_slice %209 {offsets = [0, 128], sizes = [8, 128], strides = [1, 1]} : vector<8x384xf32> to vector<8x128xf32>
    %215 = arith.truncf %214 : vector<8x128xf32> to vector<8x128xbf16>
    %216 = vector.extract_strided_slice %209 {offsets = [0, 256], sizes = [8, 128], strides = [1, 1]} : vector<8x384xf32> to vector<8x128xf32>
    %217 = arith.truncf %216 : vector<8x128xf32> to vector<8x128xbf16>
    %218 = vector.extract_strided_slice %213 {offsets = [0, 0], sizes = [8, 16], strides = [1, 1]} : vector<8x128xbf16> to vector<8x16xbf16>
    %219 = vector.extract_strided_slice %213 {offsets = [0, 16], sizes = [8, 16], strides = [1, 1]} : vector<8x128xbf16> to vector<8x16xbf16>
    %220 = vector.extract_strided_slice %213 {offsets = [0, 32], sizes = [8, 16], strides = [1, 1]} : vector<8x128xbf16> to vector<8x16xbf16>
    %221 = vector.extract_strided_slice %213 {offsets = [0, 48], sizes = [8, 16], strides = [1, 1]} : vector<8x128xbf16> to vector<8x16xbf16>
    %222 = vector.extract_strided_slice %213 {offsets = [0, 64], sizes = [8, 16], strides = [1, 1]} : vector<8x128xbf16> to vector<8x16xbf16>
    %223 = vector.extract_strided_slice %213 {offsets = [0, 80], sizes = [8, 16], strides = [1, 1]} : vector<8x128xbf16> to vector<8x16xbf16>
    %224 = vector.extract_strided_slice %213 {offsets = [0, 96], sizes = [8, 16], strides = [1, 1]} : vector<8x128xbf16> to vector<8x16xbf16>
    %225 = vector.extract_strided_slice %213 {offsets = [0, 112], sizes = [8, 16], strides = [1, 1]} : vector<8x128xbf16> to vector<8x16xbf16>
    %226 = vector.shape_cast %218 : vector<8x16xbf16> to vector<1x8x16xbf16>
    %227 = vector.shape_cast %219 : vector<8x16xbf16> to vector<1x8x16xbf16>
    %228 = vector.shape_cast %220 : vector<8x16xbf16> to vector<1x8x16xbf16>
    %229 = vector.shape_cast %221 : vector<8x16xbf16> to vector<1x8x16xbf16>
    %230 = vector.shape_cast %222 : vector<8x16xbf16> to vector<1x8x16xbf16>
    %231 = vector.shape_cast %223 : vector<8x16xbf16> to vector<1x8x16xbf16>
    %232 = vector.shape_cast %224 : vector<8x16xbf16> to vector<1x8x16xbf16>
    %233 = vector.shape_cast %225 : vector<8x16xbf16> to vector<1x8x16xbf16>
    %234 = tpu.concatenate %226, %227, %228, %229, %230, %231, %232, %233 in 0 : vector<1x8x16xbf16>, vector<1x8x16xbf16>, vector<1x8x16xbf16>, vector<1x8x16xbf16>, vector<1x8x16xbf16>, vector<1x8x16xbf16>, vector<1x8x16xbf16>, vector<1x8x16xbf16> -> vector<8x8x16xbf16>
    %235 = vector.extract_strided_slice %215 {offsets = [0, 0], sizes = [8, 16], strides = [1, 1]} : vector<8x128xbf16> to vector<8x16xbf16>
    %236 = vector.extract_strided_slice %215 {offsets = [0, 16], sizes = [8, 16], strides = [1, 1]} : vector<8x128xbf16> to vector<8x16xbf16>
    %237 = vector.extract_strided_slice %215 {offsets = [0, 32], sizes = [8, 16], strides = [1, 1]} : vector<8x128xbf16> to vector<8x16xbf16>
    %238 = vector.extract_strided_slice %215 {offsets = [0, 48], sizes = [8, 16], strides = [1, 1]} : vector<8x128xbf16> to vector<8x16xbf16>
    %239 = vector.extract_strided_slice %215 {offsets = [0, 64], sizes = [8, 16], strides = [1, 1]} : vector<8x128xbf16> to vector<8x16xbf16>
    %240 = vector.extract_strided_slice %215 {offsets = [0, 80], sizes = [8, 16], strides = [1, 1]} : vector<8x128xbf16> to vector<8x16xbf16>
    %241 = vector.extract_strided_slice %215 {offsets = [0, 96], sizes = [8, 16], strides = [1, 1]} : vector<8x128xbf16> to vector<8x16xbf16>
    %242 = vector.extract_strided_slice %215 {offsets = [0, 112], sizes = [8, 16], strides = [1, 1]} : vector<8x128xbf16> to vector<8x16xbf16>
    %243 = vector.shape_cast %235 : vector<8x16xbf16> to vector<1x8x16xbf16>
    %244 = vector.shape_cast %236 : vector<8x16xbf16> to vector<1x8x16xbf16>
    %245 = vector.shape_cast %237 : vector<8x16xbf16> to vector<1x8x16xbf16>
    %246 = vector.shape_cast %238 : vector<8x16xbf16> to vector<1x8x16xbf16>
    %247 = vector.shape_cast %239 : vector<8x16xbf16> to vector<1x8x16xbf16>
    %248 = vector.shape_cast %240 : vector<8x16xbf16> to vector<1x8x16xbf16>
    %249 = vector.shape_cast %241 : vector<8x16xbf16> to vector<1x8x16xbf16>
    %250 = vector.shape_cast %242 : vector<8x16xbf16> to vector<1x8x16xbf16>
    %251 = tpu.concatenate %243, %244, %245, %246, %247, %248, %249, %250 in 0 : vector<1x8x16xbf16>, vector<1x8x16xbf16>, vector<1x8x16xbf16>, vector<1x8x16xbf16>, vector<1x8x16xbf16>, vector<1x8x16xbf16>, vector<1x8x16xbf16>, vector<1x8x16xbf16> -> vector<8x8x16xbf16>
    %252 = vector.extract_strided_slice %217 {offsets = [0, 0], sizes = [8, 16], strides = [1, 1]} : vector<8x128xbf16> to vector<8x16xbf16>
    %253 = vector.extract_strided_slice %217 {offsets = [0, 16], sizes = [8, 16], strides = [1, 1]} : vector<8x128xbf16> to vector<8x16xbf16>
    %254 = vector.extract_strided_slice %217 {offsets = [0, 32], sizes = [8, 16], strides = [1, 1]} : vector<8x128xbf16> to vector<8x16xbf16>
    %255 = vector.extract_strided_slice %217 {offsets = [0, 48], sizes = [8, 16], strides = [1, 1]} : vector<8x128xbf16> to vector<8x16xbf16>
    %256 = vector.extract_strided_slice %217 {offsets = [0, 64], sizes = [8, 16], strides = [1, 1]} : vector<8x128xbf16> to vector<8x16xbf16>
    %257 = vector.extract_strided_slice %217 {offsets = [0, 80], sizes = [8, 16], strides = [1, 1]} : vector<8x128xbf16> to vector<8x16xbf16>
    %258 = vector.extract_strided_slice %217 {offsets = [0, 96], sizes = [8, 16], strides = [1, 1]} : vector<8x128xbf16> to vector<8x16xbf16>
    %259 = vector.extract_strided_slice %217 {offsets = [0, 112], sizes = [8, 16], strides = [1, 1]} : vector<8x128xbf16> to vector<8x16xbf16>
    %260 = vector.shape_cast %252 : vector<8x16xbf16> to vector<1x8x16xbf16>
    %261 = vector.shape_cast %253 : vector<8x16xbf16> to vector<1x8x16xbf16>
    %262 = vector.shape_cast %254 : vector<8x16xbf16> to vector<1x8x16xbf16>
    %263 = vector.shape_cast %255 : vector<8x16xbf16> to vector<1x8x16xbf16>
    %264 = vector.shape_cast %256 : vector<8x16xbf16> to vector<1x8x16xbf16>
    %265 = vector.shape_cast %257 : vector<8x16xbf16> to vector<1x8x16xbf16>
    %266 = vector.shape_cast %258 : vector<8x16xbf16> to vector<1x8x16xbf16>
    %267 = vector.shape_cast %259 : vector<8x16xbf16> to vector<1x8x16xbf16>
    %268 = tpu.concatenate %260, %261, %262, %263, %264, %265, %266, %267 in 0 : vector<1x8x16xbf16>, vector<1x8x16xbf16>, vector<1x8x16xbf16>, vector<1x8x16xbf16>, vector<1x8x16xbf16>, vector<1x8x16xbf16>, vector<1x8x16xbf16>, vector<1x8x16xbf16> -> vector<8x8x16xbf16>
    "tpu.trace_start"() <{level = 10 : i32, message = "hqd,hkd->hqk"}> : () -> ()
    %cst_69 = arith.constant dense<0.000000e+00> : vector<8x8x8xf32>
    %269 = tpu.matmul %234, %251, %cst_69 {dimension_numbers = #tpu.dot_dimension_numbers<[2], [2], [1], [1], [0, 0, 0, 1, 1, 1], [0], [0]>} : vector<8x8x16xbf16>, vector<8x8x16xbf16>, vector<8x8x8xf32> -> vector<8x8x8xf32>
    "tpu.trace_stop"() : () -> ()
    %270 = vector.broadcast %14 : vector<1x1x8xf32> to vector<8x8x8xf32>
    %271 = arith.addf %269, %270 : vector<8x8x8xf32>
    %cst_70 = arith.constant dense<0xFF800000> : vector<8x8xf32>
    %272 = vector.multi_reduction <maximumf>, %271, %cst_70 [2] : vector<8x8x8xf32> to vector<8x8xf32>
    %273 = vector.shape_cast %272 : vector<8x8xf32> to vector<8x8x1xf32>
    %274 = vector.broadcast %273 : vector<8x8x1xf32> to vector<8x8x8xf32>
    %275 = arith.subf %271, %274 : vector<8x8x8xf32>
    %276 = math.exp %275 : vector<8x8x8xf32>
    %cst_71 = arith.constant dense<0.000000e+00> : vector<8x8xf32>
    %277 = vector.multi_reduction <add>, %276, %cst_71 [2] : vector<8x8x8xf32> to vector<8x8xf32>
    %278 = vector.shape_cast %277 : vector<8x8xf32> to vector<8x8x1xf32>
    %279 = tpu.reciprocal %278 {approx = true} : vector<8x8x1xf32> -> vector<8x8x1xf32>
    %280 = vector.broadcast %279 : vector<8x8x1xf32> to vector<8x8x8xf32>
    %281 = arith.mulf %276, %280 : vector<8x8x8xf32>
    %282 = arith.truncf %281 : vector<8x8x8xf32> to vector<8x8x8xbf16>
    "tpu.trace_start"() <{level = 10 : i32, message = "hqk,hkd->hqd"}> : () -> ()
    %cst_72 = arith.constant dense<0.000000e+00> : vector<8x8x16xf32>
    %283 = tpu.matmul %282, %268, %cst_72 {dimension_numbers = #tpu.dot_dimension_numbers<[2], [1], [1], [2], [0, 0, 0, 1, 1, 2], [0], [0]>} : vector<8x8x8xbf16>, vector<8x8x16xbf16>, vector<8x8x16xf32> -> vector<8x8x16xf32>
    "tpu.trace_stop"() : () -> ()
    %284 = arith.truncf %283 : vector<8x8x16xf32> to vector<8x8x16xbf16>
    %c1_73 = arith.constant 1 : index
    %c0_74 = arith.constant 0 : index
    %c0_75 = arith.constant 0 : index
    %c0_76 = arith.constant 0 : index
    %285 = vector.load %arg9[%c1_73, %c0_74, %c0_75, %c0_76] : memref<2x8x16x128xbf16, #tpu.memory_space<vmem>>, vector<1x8x16x128xbf16>
    %286 = vector.shape_cast %285 : vector<1x8x16x128xbf16> to vector<8x16x128xbf16>
    "tpu.trace_start"() <{level = 10 : i32, message = "hqd,hdo->hqo"}> : () -> ()
    %cst_77 = arith.constant dense<0.000000e+00> : vector<8x8x128xf32>
    %287 = tpu.matmul %284, %286, %cst_77 {dimension_numbers = #tpu.dot_dimension_numbers<[2], [1], [1], [2], [0, 0, 0, 1, 1, 2], [0], [0]>} : vector<8x8x16xbf16>, vector<8x16x128xbf16>, vector<8x8x128xf32> -> vector<8x8x128xf32>
    "tpu.trace_stop"() : () -> ()
    %288 = vector.extract_strided_slice %287 {offsets = [0, 0, 0], sizes = [1, 8, 128], strides = [1, 1, 1]} : vector<8x8x128xf32> to vector<1x8x128xf32>
    %289 = vector.shape_cast %288 : vector<1x8x128xf32> to vector<8x128xf32>
    %290 = vector.extract_strided_slice %287 {offsets = [1, 0, 0], sizes = [1, 8, 128], strides = [1, 1, 1]} : vector<8x8x128xf32> to vector<1x8x128xf32>
    %291 = vector.shape_cast %290 : vector<1x8x128xf32> to vector<8x128xf32>
    %292 = arith.addf %289, %291 : vector<8x128xf32>
    %293 = vector.extract_strided_slice %287 {offsets = [2, 0, 0], sizes = [1, 8, 128], strides = [1, 1, 1]} : vector<8x8x128xf32> to vector<1x8x128xf32>
    %294 = vector.shape_cast %293 : vector<1x8x128xf32> to vector<8x128xf32>
    %295 = arith.addf %292, %294 : vector<8x128xf32>
    %296 = vector.extract_strided_slice %287 {offsets = [3, 0, 0], sizes = [1, 8, 128], strides = [1, 1, 1]} : vector<8x8x128xf32> to vector<1x8x128xf32>
    %297 = vector.shape_cast %296 : vector<1x8x128xf32> to vector<8x128xf32>
    %298 = arith.addf %295, %297 : vector<8x128xf32>
    %299 = vector.extract_strided_slice %287 {offsets = [4, 0, 0], sizes = [1, 8, 128], strides = [1, 1, 1]} : vector<8x8x128xf32> to vector<1x8x128xf32>
    %300 = vector.shape_cast %299 : vector<1x8x128xf32> to vector<8x128xf32>
    %301 = arith.addf %298, %300 : vector<8x128xf32>
    %302 = vector.extract_strided_slice %287 {offsets = [5, 0, 0], sizes = [1, 8, 128], strides = [1, 1, 1]} : vector<8x8x128xf32> to vector<1x8x128xf32>
    %303 = vector.shape_cast %302 : vector<1x8x128xf32> to vector<8x128xf32>
    %304 = arith.addf %301, %303 : vector<8x128xf32>
    %305 = vector.extract_strided_slice %287 {offsets = [6, 0, 0], sizes = [1, 8, 128], strides = [1, 1, 1]} : vector<8x8x128xf32> to vector<1x8x128xf32>
    %306 = vector.shape_cast %305 : vector<1x8x128xf32> to vector<8x128xf32>
    %307 = arith.addf %304, %306 : vector<8x128xf32>
    %308 = vector.extract_strided_slice %287 {offsets = [7, 0, 0], sizes = [1, 8, 128], strides = [1, 1, 1]} : vector<8x8x128xf32> to vector<1x8x128xf32>
    %309 = vector.shape_cast %308 : vector<1x8x128xf32> to vector<8x128xf32>
    %310 = arith.addf %307, %309 : vector<8x128xf32>
    %c1_78 = arith.constant 1 : index
    %c0_79 = arith.constant 0 : index
    %311 = vector.load %arg10[%c1_78, %c0_79] : memref<2x128xf32, #tpu.memory_space<vmem>>, vector<1x128xf32>
    %312 = vector.broadcast %311 : vector<1x128xf32> to vector<8x128xf32>
    %313 = arith.addf %310, %312 : vector<8x128xf32>
    %314 = arith.addf %313, %178 : vector<8x128xf32>
    %c1_80 = arith.constant 1 : index
    %c0_81 = arith.constant 0 : index
    %315 = vector.load %arg11[%c1_80, %c0_81] : memref<2x128xf32, #tpu.memory_space<vmem>>, vector<1x128xf32>
    %c1_82 = arith.constant 1 : index
    %c0_83 = arith.constant 0 : index
    %316 = vector.load %arg12[%c1_82, %c0_83] : memref<2x128xf32, #tpu.memory_space<vmem>>, vector<1x128xf32>
    %cst_84 = arith.constant dense<0.000000e+00> : vector<8xf32>
    %317 = vector.multi_reduction <add>, %314, %cst_84 [1] : vector<8x128xf32> to vector<8xf32>
    %318 = vector.shape_cast %317 : vector<8xf32> to vector<8x1xf32>
    %cst_85 = arith.constant 1.280000e+02 : f32
    %319 = vector.broadcast %cst_85 : f32 to vector<8x1xf32>
    %320 = arith.divf %318, %319 : vector<8x1xf32>
    %321 = arith.mulf %314, %314 : vector<8x128xf32>
    %cst_86 = arith.constant dense<0.000000e+00> : vector<8xf32>
    %322 = vector.multi_reduction <add>, %321, %cst_86 [1] : vector<8x128xf32> to vector<8xf32>
    %323 = vector.shape_cast %322 : vector<8xf32> to vector<8x1xf32>
    %cst_87 = arith.constant 1.280000e+02 : f32
    %324 = vector.broadcast %cst_87 : f32 to vector<8x1xf32>
    %325 = arith.divf %323, %324 : vector<8x1xf32>
    %326 = arith.mulf %320, %320 : vector<8x1xf32>
    %327 = arith.subf %325, %326 : vector<8x1xf32>
    %328 = vector.broadcast %320 : vector<8x1xf32> to vector<8x128xf32>
    %329 = arith.subf %314, %328 : vector<8x128xf32>
    %cst_88 = arith.constant 9.99999997E-7 : f32
    %330 = vector.broadcast %cst_88 : f32 to vector<8x1xf32>
    %331 = arith.addf %327, %330 : vector<8x1xf32>
    %332 = math.rsqrt %331 : vector<8x1xf32>
    %333 = vector.broadcast %332 : vector<8x1xf32> to vector<8x128xf32>
    %334 = arith.mulf %329, %333 : vector<8x128xf32>
    %335 = vector.broadcast %315 : vector<1x128xf32> to vector<8x128xf32>
    %336 = arith.mulf %334, %335 : vector<8x128xf32>
    %337 = vector.broadcast %316 : vector<1x128xf32> to vector<8x128xf32>
    %338 = arith.addf %336, %337 : vector<8x128xf32>
    %c1_89 = arith.constant 1 : index
    %c0_90 = arith.constant 0 : index
    %c0_91 = arith.constant 0 : index
    %339 = vector.load %arg13[%c1_89, %c0_90, %c0_91] : memref<2x128x256xbf16, #tpu.memory_space<vmem>>, vector<1x128x256xbf16>
    %340 = vector.shape_cast %339 : vector<1x128x256xbf16> to vector<128x256xbf16>
    %341 = arith.truncf %338 : vector<8x128xf32> to vector<8x128xbf16>
    %cst_92 = arith.constant dense<0.000000e+00> : vector<8x256xf32>
    %342 = tpu.matmul %341, %340, %cst_92 {dimension_numbers = #tpu.dot_dimension_numbers<[1], [0], [0], [1], [0, 0, 1, 1], [], []>} : vector<8x128xbf16>, vector<128x256xbf16>, vector<8x256xf32> -> vector<8x256xf32>
    %c1_93 = arith.constant 1 : index
    %c0_94 = arith.constant 0 : index
    %343 = vector.load %arg14[%c1_93, %c0_94] : memref<2x256xf32, #tpu.memory_space<vmem>>, vector<1x256xf32>
    %344 = vector.broadcast %343 : vector<1x256xf32> to vector<8x256xf32>
    %345 = arith.addf %342, %344 : vector<8x256xf32>
    %cst_95 = arith.constant 5.000000e-01 : f32
    %346 = vector.broadcast %cst_95 : f32 to vector<8x256xf32>
    %347 = arith.mulf %346, %345 : vector<8x256xf32>
    %348 = arith.mulf %345, %345 : vector<8x256xf32>
    %349 = arith.mulf %345, %348 : vector<8x256xf32>
    %cst_96 = arith.constant 4.471500e-02 : f32
    %350 = vector.broadcast %cst_96 : f32 to vector<8x256xf32>
    %351 = arith.mulf %350, %349 : vector<8x256xf32>
    %352 = arith.addf %345, %351 : vector<8x256xf32>
    %cst_97 = arith.constant 0.797884583 : f32
    %353 = vector.broadcast %cst_97 : f32 to vector<8x256xf32>
    %354 = arith.mulf %353, %352 : vector<8x256xf32>
    %355 = math.tanh %354 : vector<8x256xf32>
    %cst_98 = arith.constant 1.000000e+00 : f32
    %356 = vector.broadcast %cst_98 : f32 to vector<8x256xf32>
    %357 = arith.addf %356, %355 : vector<8x256xf32>
    %358 = arith.mulf %347, %357 : vector<8x256xf32>
    %c1_99 = arith.constant 1 : index
    %c0_100 = arith.constant 0 : index
    %c0_101 = arith.constant 0 : index
    %359 = vector.load %arg15[%c1_99, %c0_100, %c0_101] : memref<2x256x128xbf16, #tpu.memory_space<vmem>>, vector<1x256x128xbf16>
    %360 = vector.shape_cast %359 : vector<1x256x128xbf16> to vector<256x128xbf16>
    %361 = arith.truncf %358 : vector<8x256xf32> to vector<8x256xbf16>
    %cst_102 = arith.constant dense<0.000000e+00> : vector<8x128xf32>
    %362 = tpu.matmul %361, %360, %cst_102 {dimension_numbers = #tpu.dot_dimension_numbers<[1], [0], [0], [1], [0, 0, 1, 1], [], []>} : vector<8x256xbf16>, vector<256x128xbf16>, vector<8x128xf32> -> vector<8x128xf32>
    %c1_103 = arith.constant 1 : index
    %c0_104 = arith.constant 0 : index
    %363 = vector.load %arg16[%c1_103, %c0_104] : memref<2x128xf32, #tpu.memory_space<vmem>>, vector<1x128xf32>
    %364 = vector.broadcast %363 : vector<1x128xf32> to vector<8x128xf32>
    %365 = arith.addf %362, %364 : vector<8x128xf32>
    %366 = arith.addf %365, %314 : vector<8x128xf32>
    %c0_105 = arith.constant 0 : index
    %c0_106 = arith.constant 0 : index
    %367 = vector.load %arg17[%c0_105, %c0_106] : memref<1x128xf32, #tpu.memory_space<vmem>>, vector<1x128xf32>
    %c0_107 = arith.constant 0 : index
    %c0_108 = arith.constant 0 : index
    %368 = vector.load %arg18[%c0_107, %c0_108] : memref<1x128xf32, #tpu.memory_space<vmem>>, vector<1x128xf32>
    %cst_109 = arith.constant dense<0.000000e+00> : vector<8xf32>
    %369 = vector.multi_reduction <add>, %366, %cst_109 [1] : vector<8x128xf32> to vector<8xf32>
    %370 = vector.shape_cast %369 : vector<8xf32> to vector<8x1xf32>
    %cst_110 = arith.constant 1.280000e+02 : f32
    %371 = vector.broadcast %cst_110 : f32 to vector<8x1xf32>
    %372 = arith.divf %370, %371 : vector<8x1xf32>
    %373 = arith.mulf %366, %366 : vector<8x128xf32>
    %cst_111 = arith.constant dense<0.000000e+00> : vector<8xf32>
    %374 = vector.multi_reduction <add>, %373, %cst_111 [1] : vector<8x128xf32> to vector<8xf32>
    %375 = vector.shape_cast %374 : vector<8xf32> to vector<8x1xf32>
    %cst_112 = arith.constant 1.280000e+02 : f32
    %376 = vector.broadcast %cst_112 : f32 to vector<8x1xf32>
    %377 = arith.divf %375, %376 : vector<8x1xf32>
    %378 = arith.mulf %372, %372 : vector<8x1xf32>
    %379 = arith.subf %377, %378 : vector<8x1xf32>
    %380 = vector.broadcast %372 : vector<8x1xf32> to vector<8x128xf32>
    %381 = arith.subf %366, %380 : vector<8x128xf32>
    %cst_113 = arith.constant 9.99999997E-7 : f32
    %382 = vector.broadcast %cst_113 : f32 to vector<8x1xf32>
    %383 = arith.addf %379, %382 : vector<8x1xf32>
    %384 = math.rsqrt %383 : vector<8x1xf32>
    %385 = vector.broadcast %384 : vector<8x1xf32> to vector<8x128xf32>
    %386 = arith.mulf %381, %385 : vector<8x128xf32>
    %387 = vector.broadcast %367 : vector<1x128xf32> to vector<8x128xf32>
    %388 = arith.mulf %386, %387 : vector<8x128xf32>
    %389 = vector.broadcast %368 : vector<1x128xf32> to vector<8x128xf32>
    %390 = arith.addf %388, %389 : vector<8x128xf32>
    %c0_114 = arith.constant 0 : index
    %c0_115 = arith.constant 0 : index
    %391 = vector.load %arg19[%c0_114, %c0_115] : memref<1x128xf32, #tpu.memory_space<vmem>>, vector<1x128xf32>
    %392 = vector.broadcast %391 : vector<1x128xf32> to vector<8x128xf32>
    %393 = arith.mulf %390, %392 : vector<8x128xf32>
    %cst_116 = arith.constant dense<0.000000e+00> : vector<8xf32>
    %394 = vector.multi_reduction <add>, %393, %cst_116 [1] : vector<8x128xf32> to vector<8xf32>
    %395 = vector.shape_cast %394 : vector<8xf32> to vector<8x1xf32>
    %c0_117 = arith.constant 0 : index
    %c0_118 = arith.constant 0 : index
    %396 = vector.load %arg20[%c0_117, %c0_118] : memref<1x1xf32, #tpu.memory_space<vmem>>, vector<1x1xf32>
    %397 = vector.broadcast %396 : vector<1x1xf32> to vector<8x1xf32>
    %398 = arith.addf %395, %397 : vector<8x1xf32>
    %399 = arith.negf %398 : vector<8x1xf32>
    %400 = math.exp %399 : vector<8x1xf32>
    %cst_119 = arith.constant 1.000000e+00 : f32
    %401 = vector.broadcast %cst_119 : f32 to vector<8x1xf32>
    %402 = arith.addf %401, %400 : vector<8x1xf32>
    %403 = arith.divf %401, %402 : vector<8x1xf32>
    %404 = arith.mulf %403, %3 : vector<8x1xf32>
    %405 = tpu.transpose %404, [1, 0] : vector<8x1xf32> -> vector<1x8xf32>
    %c0_120 = arith.constant 0 : index
    %c0_121 = arith.constant 0 : index
    %c0_122 = arith.constant 0 : index
    %406 = vector.load %arg21[%c0_120, %c0_121, %c0_122] : memref<1x1x8xf32, #tpu.memory_space<vmem>>, vector<1x1x8xf32>
    %407 = vector.shape_cast %406 : vector<1x1x8xf32> to vector<1x8xf32>
    %408 = vector.shape_cast %405 : vector<1x8xf32> to vector<1x1x8xf32>
    tpu.vector_store %arg21[%c0_120, %c0_121, %c0_122], %408 {strides = array<i32>} : memref<1x1x8xf32, #tpu.memory_space<vmem>>, vector<1x1x8xf32>,
    return
  }
  func.func @transform_0(%arg0: i32) -> (i32, i32, i32) {
    %c0_i32 = arith.constant 0 : i32
    %c0_i32_0 = arith.constant 0 : i32
    %c0_i32_1 = arith.constant 0 : i32
    return %arg0, %c0_i32, %c0_i32_0 : i32, i32, i32
  }
  func.func @transform_1(%arg0: i32) -> (i32, i32, i32) {
    %c0_i32 = arith.constant 0 : i32
    %c0_i32_0 = arith.constant 0 : i32
    %c0_i32_1 = arith.constant 0 : i32
    return %arg0, %c0_i32, %c0_i32_0 : i32, i32, i32
  }
  func.func @transform_2(%arg0: i32) -> (i32, i32, i32) {
    %c0_i32 = arith.constant 0 : i32
    %c0_i32_0 = arith.constant 0 : i32
    %c0_i32_1 = arith.constant 0 : i32
    return %arg0, %c0_i32, %c0_i32_0 : i32, i32, i32
  }
  func.func @transform_3(%arg0: i32) -> (i32, i32) {
    %c0_i32 = arith.constant 0 : i32
    %c0_i32_0 = arith.constant 0 : i32
    %c0_i32_1 = arith.constant 0 : i32
    return %c0_i32, %c0_i32_0 : i32, i32
  }
  func.func @transform_4(%arg0: i32) -> (i32, i32) {
    %c0_i32 = arith.constant 0 : i32
    %c0_i32_0 = arith.constant 0 : i32
    %c0_i32_1 = arith.constant 0 : i32
    return %c0_i32, %c0_i32_0 : i32, i32
  }
  func.func @transform_5(%arg0: i32) -> (i32, i32) {
    %c0_i32 = arith.constant 0 : i32
    %c0_i32_0 = arith.constant 0 : i32
    %c0_i32_1 = arith.constant 0 : i32
    return %c0_i32, %c0_i32_0 : i32, i32
  }
  func.func @transform_6(%arg0: i32) -> (i32, i32, i32) {
    %c0_i32 = arith.constant 0 : i32
    %c0_i32_0 = arith.constant 0 : i32
    %c0_i32_1 = arith.constant 0 : i32
    %c0_i32_2 = arith.constant 0 : i32
    return %c0_i32, %c0_i32_0, %c0_i32_1 : i32, i32, i32
  }
  func.func @transform_7(%arg0: i32) -> (i32, i32) {
    %c0_i32 = arith.constant 0 : i32
    %c0_i32_0 = arith.constant 0 : i32
    %c0_i32_1 = arith.constant 0 : i32
    return %c0_i32, %c0_i32_0 : i32, i32
  }
  func.func @transform_8(%arg0: i32) -> (i32, i32, i32, i32) {
    %c0_i32 = arith.constant 0 : i32
    %c0_i32_0 = arith.constant 0 : i32
    %c0_i32_1 = arith.constant 0 : i32
    %c0_i32_2 = arith.constant 0 : i32
    %c0_i32_3 = arith.constant 0 : i32
    return %c0_i32, %c0_i32_0, %c0_i32_1, %c0_i32_2 : i32, i32, i32, i32
  }
  func.func @transform_9(%arg0: i32) -> (i32, i32) {
    %c0_i32 = arith.constant 0 : i32
    %c0_i32_0 = arith.constant 0 : i32
    %c0_i32_1 = arith.constant 0 : i32
    return %c0_i32, %c0_i32_0 : i32, i32
  }
  func.func @transform_10(%arg0: i32) -> (i32, i32) {
    %c0_i32 = arith.constant 0 : i32
    %c0_i32_0 = arith.constant 0 : i32
    %c0_i32_1 = arith.constant 0 : i32
    return %c0_i32, %c0_i32_0 : i32, i32
  }
  func.func @transform_11(%arg0: i32) -> (i32, i32) {
    %c0_i32 = arith.constant 0 : i32
    %c0_i32_0 = arith.constant 0 : i32
    %c0_i32_1 = arith.constant 0 : i32
    return %c0_i32, %c0_i32_0 : i32, i32
  }
  func.func @transform_12(%arg0: i32) -> (i32, i32, i32) {
    %c0_i32 = arith.constant 0 : i32
    %c0_i32_0 = arith.constant 0 : i32
    %c0_i32_1 = arith.constant 0 : i32
    %c0_i32_2 = arith.constant 0 : i32
    return %c0_i32, %c0_i32_0, %c0_i32_1 : i32, i32, i32
  }
  func.func @transform_13(%arg0: i32) -> (i32, i32) {
    %c0_i32 = arith.constant 0 : i32
    %c0_i32_0 = arith.constant 0 : i32
    %c0_i32_1 = arith.constant 0 : i32
    return %c0_i32, %c0_i32_0 : i32, i32
  }
  func.func @transform_14(%arg0: i32) -> (i32, i32, i32) {
    %c0_i32 = arith.constant 0 : i32
    %c0_i32_0 = arith.constant 0 : i32
    %c0_i32_1 = arith.constant 0 : i32
    %c0_i32_2 = arith.constant 0 : i32
    return %c0_i32, %c0_i32_0, %c0_i32_1 : i32, i32, i32
  }
  func.func @transform_15(%arg0: i32) -> (i32, i32) {
    %c0_i32 = arith.constant 0 : i32
    %c0_i32_0 = arith.constant 0 : i32
    %c0_i32_1 = arith.constant 0 : i32
    return %c0_i32, %c0_i32_0 : i32, i32
  }
  func.func @transform_16(%arg0: i32) -> (i32, i32) {
    %c0_i32 = arith.constant 0 : i32
    %c0_i32_0 = arith.constant 0 : i32
    %c0_i32_1 = arith.constant 0 : i32
    return %c0_i32, %c0_i32_0 : i32, i32
  }
  func.func @transform_17(%arg0: i32) -> (i32, i32) {
    %c0_i32 = arith.constant 0 : i32
    %c0_i32_0 = arith.constant 0 : i32
    %c0_i32_1 = arith.constant 0 : i32
    return %c0_i32, %c0_i32_0 : i32, i32
  }
  func.func @transform_18(%arg0: i32) -> (i32, i32) {
    %c0_i32 = arith.constant 0 : i32
    %c0_i32_0 = arith.constant 0 : i32
    %c0_i32_1 = arith.constant 0 : i32
    return %c0_i32, %c0_i32_0 : i32, i32
  }
  func.func @transform_19(%arg0: i32) -> (i32, i32) {
    %c0_i32 = arith.constant 0 : i32
    %c0_i32_0 = arith.constant 0 : i32
    %c0_i32_1 = arith.constant 0 : i32
    return %c0_i32, %c0_i32_0 : i32, i32
  }
  func.func @transform_20(%arg0: i32) -> (i32, i32, i32) {
    %c0_i32 = arith.constant 0 : i32
    %c0_i32_0 = arith.constant 0 : i32
    %c0_i32_1 = arith.constant 0 : i32
    return %arg0, %c0_i32, %c0_i32_0 : i32, i32, i32
  }
}

</mosaic_0001>

<bundles_post_ra>
// kernel: tpu_custom_call.1
= control target key start
LH: loop header
LB: loop body
LE: loop exit
PB: predicated region body
PF: predicated region fallthrough
CT: control target
= control target key end

     0   :  { %s7176_s0 = inlined_call_operand.vmem [shape: f32[2,8,128], index: 0, kind: input, shape index: {}]   ;;  %s7177_s1 = inlined_call_operand.vmem [shape: f32[2,8,1], index: 1, kind: input, shape index: {}]   ;;  %s7178_s2 = inlined_call_operand.hbm [shape: f32[2,1,8], index: 2, kind: input, shape index: {}]   ;;  %s7179_s3 = inlined_call_operand.vmem [shape: f32[8,128], index: 3, kind: input, shape index: {}]   ;;  %s7180_s4 = inlined_call_operand.hbm [shape: f32[2,128], index: 4, kind: input, shape index: {}]   ;;  %s7181_s5 = inlined_call_operand.hbm [shape: f32[2,128], index: 5, kind: input, shape index: {}]   ;;  %s7182_s6 = inlined_call_operand.hbm [shape: bf16[2,128,384], index: 6, kind: input, shape index: {}]   ;;  %s7183_s7 = inlined_call_operand.vmem [shape: f32[2,384], index: 7, kind: input, shape index: {}]   ;;  %s7184_s8 = inlined_call_operand.hbm [shape: bf16[2,8,16,128], index: 8, kind: input, shape index: {}]   ;;  %s7185_s9 = inlined_call_operand.vmem [shape: f32[2,128], index: 9, kind: input, shape index: {}]   ;;  %s7186_s10 = inlined_call_operand.vmem [shape: f32[2,128], index: 10, kind: input, shape index: {}]   ;;  %s7187_s11 = inlined_call_operand.vmem [shape: f32[2,128], index: 11, kind: input, shape index: {}]   ;;  %s7188_s12 = inlined_call_operand.hbm [shape: bf16[2,128,256], index: 12, kind: input, shape index: {}]   ;;  %s7189_s13 = inlined_call_operand.vmem [shape: f32[2,256], index: 13, kind: input, shape index: {}]   ;;  %s7190_s14 = inlined_call_operand.hbm [shape: bf16[2,256,128], index: 14, kind: input, shape index: {}]   ;;  %s7191_s15 = inlined_call_operand.vmem [shape: f32[2,128], index: 15, kind: input, shape index: {}]   ;;  %s7192_s16 = inlined_call_operand.vmem [shape: f32[1,128], index: 16, kind: input, shape index: {}]   ;;  %s7193_s17 = inlined_call_operand.vmem [shape: f32[1,128], index: 17, kind: input, shape index: {}]   ;;  %s7194_s18 = inlined_call_operand.vmem [shape: f32[1,128], index: 18, kind: input, shape index: {}]   ;;  %s7195_s19 = inlined_call_operand.<no memory space> [shape: f32[1,1], index: 19, kind: input, shape index: {}]   ;;  %s7196_s20 = inlined_call_operand.hbm [shape: f32[2,1,8], index: 20, kind: output, shape index: {}]  }
   0x1   :  { %7206 = sst [smem:[#allocation24_spill]] %s7176_s0  ;;  %v25_v0 = vstv %s7195_s19 }
   0x2   :  { %7207 = sst [smem:[#allocation25_spill]] %s7177_s1  ;;  %26 = vst [vmem:[#allocation2] sm:$0x1] %v25_v0 }
   0x3   :  { %7208 = sst [smem:[#allocation26_spill]] %s7178_s2 }
   0x4   :  { %7209 = sst [smem:[#allocation27_spill]] %s7179_s3 }
   0x5   :  { %7210 = sst [smem:[#allocation28_spill]] %s7180_s4 }
   0x6   :  { %7211 = sst [smem:[#allocation29_spill]] %s7181_s5 }
   0x7   :  { %7212 = sst [smem:[#allocation30_spill]] %s7182_s6 }
   0x8   :  { %7213 = sst [smem:[#allocation31_spill]] %s7184_s8 }
   0x9   :  { %7214 = sst [smem:[#allocation32_spill]] %s7188_s12 }
   0xa   :  { %7215 = sst [smem:[#allocation33_spill]] %s7190_s14 }
   0xb   :  { %7216 = sst [smem:[#allocation34_spill]] %s7194_s18 }
   0xc   :  { %7217 = sst [smem:[#allocation35_spill]] %s7196_s20 }
   0xd   :  { %27 = vsyncpa [#allocation4], 0 }
   0xe   :  { %29 = vsyncpa [#allocation4 + $0x1], 0 }
   0xf   :  { %30 = vsyncpa [#allocation7], 0 }
  0x10   :  { %31 = vsyncpa [#allocation10], 0 }
  0x11   :  { %32 = vsyncpa [#allocation13], 0 }
  0x12   :  { %33 = vsyncpa [#allocation5], 0 }
  0x13   :  { %35 = vsyncpa [#allocation5 + $0x1], 0  ;;  %s6402_s23 = smov 0   ;;  %s6404_s24 = smov 0  }
  0x14   :  { %s6406_s2 = smov 0   ;;  %s6408_s25 = smov 0  }
  0x15 LB: > { %7218 = sst [smem:[#allocation21_spill]] %s6264_s2  ;;  %s6270_s19 = smov [#allocation6]   ;;  %s6268_s25 = sphi %s6408_s25, %s7253_s25   ;;  %s6264_s2 = sphi %s6406_s2, %s7255_s2   ;;  %s6260_s24 = sphi %s6404_s24, %s7257_s24   ;;  %s6256_s23 = sphi %s6402_s23, %s7256_s23  }
  0x16   : > { %s523_s3 = sshll.u32 %s6270_s19, 4  ;;  %s6423_s26 = sadd.s32 4294967295, %s6268_s25   ;;  %s524_s3 = int_to_ptr.vmem [resolvable:$true] %s523_s3 }
  0x17   : > { %p4939_p0 = scmp.ge.s32.totalorder %s6268_s25, 1  ;;  %p7199_p1 = scmp.eq.s32.totalorder %s6423_s26, 0 }
  0x18   : > { %p507_p2 = scmp.lt.s32.totalorder %s6268_s25, 3  ;;  %s6271_s28 = smov [#allocation9]  }
  0x19   : > { %s544_s4 = sshll.u32 %s6271_s28, 4  ;;  %s6272_s30 = smov [#allocation12]   ;;  %s6435_s4 = int_to_ptr.vmem [resolvable:$true] %s544_s4 }
  0x1a   : > { %p6428_p3 = pnand %p4939_p0, %p507_p2  ;;  %s582_s0 = sshll.u32 %s6272_s30, 4  ;;  %s6443_s0 = int_to_ptr.vmem [resolvable:$true] %s582_s0 }
  0x1b   : > { %s6019_s1 = scalar_lea.vmem %s524_s3, 32  ;;  %p6027_p11 = scmp.lt.s32.totalorder %s524_s3, %s524_s3 }
  0x1c   : > { %s7219_s27 = scalar_select %p6428_p3, 1, 0 }
  0x1d   : > { %p5667_p5 = pneg %p6428_p3  ;;  %p6020_p8 = scmp.ne.s32.totalorder %s524_s3, %s6019_s1 }
  0x1e   : > { %p6028_p12 = scmp.lt.s32.totalorder %s6019_s1, %s6019_s1 }
  0x1f   : > { %p6439_p6 = pnand %p5667_p5, %p7199_p1 }
  0x20   : > { %p6029_p13 = por %p6028_p12, %p6027_p11 }
  0x21   : > { %p6447_p7 = pneg %p6439_p6 }
  0x23   : > { %p6022_p9 = pnand %p6020_p8, %p6447_p7 }
  0x25   : > { %p6023_p10 = pneg %p6022_p9 }
  0x27   : > { %p6030_p0 = pnand %p6029_p13, %p6023_p10 }
  0x29   : > { %6033 = shalt.err (!%p6030_p0)
}
  0x2a   : > { %s7222_s28 = sld [smem:[#allocation28_spill]]  ;;  %s6045_s30 = scalar_lea.vmem %s6435_s4, 6144 }
  0x2b   : > { %p6046_p2 = scmp.ne.s32.totalorder %s6435_s4, %s6045_s30  ;;  %p6053_p9 = scmp.lt.s32.totalorder %s6435_s4, %s6435_s4 }
  0x2c   : > { %p6054_p11 = scmp.lt.s32.totalorder %s6045_s30, %s6045_s30 }
  0x2d   : > { %p6048_p5 = pnand %p6046_p2, %p6447_p7 }
  0x2e   : > { %p6055_p10 = por %p6054_p11, %p6053_p9 }
  0x2f   : > { %p6049_p8 = pneg %p6048_p5 }
  0x30   : > { %5670 = dma.hbm_to_vmem [thread:$0]  (!%p6439_p6), %s7222_s28, 32, %s524_s3, [#allocation7]  }
  0x31   : > { %p6056_p12 = pnand %p6055_p10, %p6049_p8 }
  0x33   : > { %6059 = shalt.err (!%p6056_p12)
}
  0x34   : > { %s6273_s1 = smov 192   ;;  %s6274_s22 = smov 12  }
  0x35   : > { %s7223_s6 = sld [smem:[#allocation30_spill]]  ;;  %s6071_s28 = scalar_lea.vmem %s6443_s0, 4096 }
  0x36   : > { %p6072_p13 = scmp.ne.s32.totalorder %s6443_s0, %s6071_s28  ;;  %p6079_p5 = scmp.lt.s32.totalorder %s6443_s0, %s6443_s0 }
  0x37   : > { %p6080_p8 = scmp.lt.s32.totalorder %s6071_s28, %s6071_s28 }
  0x38   : > { %p6074_p0 = pnand %p6072_p13, %p6447_p7 }
  0x39   : > { %p6081_p9 = por %p6080_p8, %p6079_p5 }
  0x3a   : > { %p6075_p2 = pneg %p6074_p0 }
  0x3b   : > { %5676 = dma.hbm_to_vmem [thread:$0]  (!%p6439_p6), %s7223_s6, 6144, %s6435_s4, [#allocation10], %s6273_s1, %s6273_s1, %s6274_s22  }
  0x3c   : > { %p6082_p11 = pnand %p6081_p9, %p6075_p2 }
  0x3e   : > { %6085 = shalt.err (!%p6082_p11)
}
  0x3f   : > { %s6275_s30 = smov 128   ;;  %s6276_s20 = smov 8  }
  0x40   : > { %s7224_s12 = sld [smem:[#allocation32_spill]]  ;;  %s6277_s4 = smov [#allocation8]  }
  0x41   : > { %s534_s1 = sshll.u32 %s6277_s4, 4  ;;  %s6278_s22 = smov [#allocation11]   ;;  %s535_s1 = int_to_ptr.vmem [resolvable:$true] %s534_s1 }
  0x42   : > { %s560_s19 = sshll.u32 %s6278_s22, 4  ;;  %s6097_s6 = scalar_lea.vmem %s535_s1, 32  ;;  %s561_s19 = int_to_ptr.vmem [resolvable:$true] %s560_s19 }
  0x43   : > { %p6098_p10 = scmp.ne.s32.totalorder %s535_s1, %s6097_s6  ;;  %p6105_p0 = scmp.lt.s32.totalorder %s535_s1, %s535_s1 }
  0x44   : > { %p6106_p2 = scmp.lt.s32.totalorder %s6097_s6, %s6097_s6 }
  0x45   : > { %p6100_p12 = pnand %p6098_p10, %p6447_p7 }
  0x46   : > { %5682 = dma.hbm_to_vmem [thread:$0]  (!%p6439_p6), %s7224_s12, 4096, %s6443_s0, [#allocation13], %s6275_s30, %s6275_s30, %s6276_s20  }
  0x47   : > { %p6101_p13 = pneg %p6100_p12  ;;  %p6107_p5 = por %p6106_p2, %p6105_p0 }
  0x49   : > { %p6108_p8 = pnand %p6107_p5, %p6101_p13 }
  0x4b   : > { %6111 = shalt.err (!%p6108_p8)
}
  0x4c   : > { %s7225_s5 = sld [smem:[#allocation29_spill]]  ;;  %s6123_s20 = scalar_lea.vmem %s561_s19, 2048 }
  0x4d   : > { %p6124_p9 = scmp.ne.s32.totalorder %s561_s19, %s6123_s20  ;;  %p6131_p10 = scmp.lt.s32.totalorder %s561_s19, %s561_s19 }
  0x4e   : > { %p6132_p12 = scmp.lt.s32.totalorder %s6123_s20, %s6123_s20 }
  0x4f   : > { %p6126_p11 = pnand %p6124_p9, %p6447_p7 }
  0x50   : > { %p6133_p1 = por %p6132_p12, %p6131_p10 }
  0x51   : > { %p6127_p4 = pneg %p6126_p11 }
  0x52   : > { %5673 = dma.hbm_to_vmem [thread:$0]  (!%p6439_p6), %s7225_s5, 32, %s535_s1, [#allocation7]  }
  0x53   : > { %p6134_p3 = pnand %p6133_p1, %p6127_p4 }
  0x55   : > { %6137 = shalt.err (!%p6134_p3)
}
  0x56   : > { %s6279_s6 = smov 64   ;;  %s6280_s0 = smov 4  }
  0x57   : > { %s7226_s8 = sld [smem:[#allocation31_spill]]  ;;  %s6281_s4 = smov [#allocation14]  }
  0x58   : > { %s598_s1 = sshll.u32 %s6281_s4, 4  ;;  %s599_s1 = int_to_ptr.vmem [resolvable:$true] %s598_s1 }
  0x59   : > { %s6149_s22 = scalar_lea.vmem %s599_s1, 4096  ;;  %p6157_p5 = scmp.lt.s32.totalorder %s599_s1, %s599_s1 }
  0x5a   : > { %p6150_p13 = scmp.ne.s32.totalorder %s599_s1, %s6149_s22  ;;  %p6158_p1 = scmp.lt.s32.totalorder %s6149_s22, %s6149_s22 }
  0x5c   : > { %p6152_p0 = pnand %p6150_p13, %p6447_p7  ;;  %p6159_p3 = por %p6158_p1, %p6157_p5 }
  0x5d   : > { %5679 = dma.hbm_to_vmem [thread:$0]  (!%p6439_p6), %s7226_s8, 2048, %s561_s19, [#allocation10], %s6279_s6, %s6279_s6, %s6280_s0  }
  0x5e   : > { %p6153_p2 = pneg %p6152_p0 }
  0x60   : > { %p6160_p4 = pnand %p6159_p3, %p6153_p2 }
  0x62   : > { %6163 = shalt.err (!%p6160_p4)
}
  0x63   : > { %s7227_s14 = sld [smem:[#allocation33_spill]]  ;;  %s4938_s21 = sadd.s32 4294967294, %s6268_s25  }
  0x64   : > { %s6505_s29 = sadd.s32 1, %s6268_s25   ;;  %s100_s20 = sadd.s32 1, %s6264_s2 }
  0x65   : > { %7228 = sst [smem:[#allocation22_spill]] %s6505_s29  ;;  %s97_s19 = ssub.s32 %s6268_s25, %s6505_s29 }
  0x66   : > { %p98_p7 = scmp.eq.s32.totalorder %s97_s19, 0  ;;  %p107_p8 = scmp.ne.s32.totalorder %s6264_s2, %s6260_s24 }
  0x67   : > { %p108_p9 = scmp.eq.s32.totalorder %s6268_s25, 0  ;;  %p113_p11 = scmp.ne.s32.totalorder %s6260_s24, %s6256_s23 }
  0x68   : > { %s6516_s30 = scalar_select %p98_p7, %s6264_s2, %s100_s20  }
  0x69   : > { %5685 = dma.hbm_to_vmem [thread:$0]  (!%p6439_p6), %s7227_s14, 4096, %s599_s1, [#allocation13], %s6279_s6, %s6279_s6, %s6280_s0  }
  0x6a   : > { %7229 = sst [smem:[#allocation23_spill]] %s6516_s30  ;;  %p6518_p10 = por %p108_p9, %p107_p8 }
  0x6b   : > { %p7231_p12 = scmp.eq.s32.totalorder %s6423_s26, 0  ;;  %p494_p13 = scmp.eq.s32.totalorder %s6423_s26, 1 }
  0x6c   : > { %p500_p0 = scmp.eq.s32.totalorder %s4938_s21, 1  ;;  %p5700_p2 = scmp.lt.s32.totalorder %s6268_s25, 2 }
  0x6d   : > { %p6524_p6 = por %p7231_p12, %p113_p11  ;;  %s641_s0 = sand.u32 1, %s6264_s2  }
  0x6e   : > { %p6531_p5 = por %p494_p13, %p107_p8  ;;  %p6535_p1 = por %p500_p0, %p113_p11 }
  0x6f   : > { %s7232_s6 = scalar_select %p6524_p6, 1, 0 }
  0x70   : > { %s7233_s4 = scalar_select %p6531_p5, 1, 0 }
  0x71   : > { %s7234_s1 = scalar_select %p6535_p1, 1, 0 }
  0x72   : > { %s4947_s22 = sshll.u32 %s6268_s25, 4  ;;  %s644_s28 = scalar_lea.vmem [#allocation3], %s641_s0 }
  0x73   : > { %s651_s18 = sshll.u32 %s644_s28, 4  ;;  %s7235_s5 = sld [smem:[#allocation26_spill]]  ;;  %s652_s18 = int_to_ptr.vmem [resolvable:$true] %s651_s18 }
  0x74   : > { %p6547_p3 = pnand %p5700_p2, %p6518_p10  ;;  %s642_s12 = scalar_lea.sflag [#allocation4], %s641_s0 }
  0x76   : > { %p6166_p7 = pneg %p6547_p3 }
  0x79   : > { %s6543_s8 = scalar_lea.hbm %s7235_s5, %s4947_s22  ;;  %s6169_s19 = scalar_lea.hbm %s7235_s5, 32 }
  0x7a   : > { %s6164_s14 = scalar_lea.hbm %s6543_s8, 16  ;;  %p6170_p11 = scmp.lt.s32.totalorder %s6543_s8, %s7235_s5 }
  0x7b   : > { %p6165_p4 = scmp.ne.s32.totalorder %s6543_s8, %s6164_s14  ;;  %p6171_p10 = scmp.lt.s32.totalorder %s6169_s19, %s6164_s14 }
  0x7d   : > { %p6167_p8 = pnand %p6166_p7, %p6165_p4  ;;  %p6172_p12 = por %p6171_p10, %p6170_p11 }
  0x7f   : > { %p6168_p9 = pneg %p6167_p8 }
  0x81   : > { %p6173_p13 = pnand %p6172_p12, %p6168_p9 }
  0x83   : > { %6176 = shalt.err (!%p6173_p13)
}
  0x84   : > { %s6177_s3 = scalar_lea.vmem %s652_s18, 16  ;;  %s6282_s0 = smov [#allocation3]  }
  0x85   : > { %p6178_p0 = scmp.ne.s32.totalorder %s652_s18, %s6177_s3  ;;  %s6182_s2 = sshll.u32 %s6282_s0, 4  ;;  %s6183_s2 = int_to_ptr.vmem [resolvable:$false] %s6182_s2 }
  0x86   : > { %s6184_s29 = scalar_lea.vmem %s6183_s2, 32  ;;  %p6185_p4 = scmp.lt.s32.totalorder %s652_s18, %s6183_s2 }
  0x87   : > { %p6180_p2 = pnand %p6178_p0, %p6166_p7  ;;  %p6186_p8 = scmp.lt.s32.totalorder %s6184_s29, %s6177_s3 }
  0x89   : > { %p6181_p1 = pneg %p6180_p2  ;;  %p6187_p5 = por %p6186_p8, %p6185_p4 }
  0x8b   : > { %p6188_p6 = pnand %p6187_p5, %p6181_p1 }
  0x8d   : > { %6191 = shalt.err (!%p6188_p6)
}
  0x8e   : > { %5689 = dma.hbm_to_vmem [thread:$0]  (!%p6547_p3), %s6543_s8, 16, %s652_s18, %s642_s12  }
  0x8f   : > { %p7237_p9 = scmp.ne.s32.totalorder %s7219_s27, 0 }
  0x90   : > { %s6568_s14 = sand.u32 (!%p7237_p9), 1, %s6260_s24   ;;  %p7238_p7 = scmp.ne.s32.totalorder (!%p7237_p9), %s7232_s6, 0 }
  0x91   : > { %660 = sbr.rel (%p7237_p9) target bundleno = 4731 (0x127b), region = 100  ;;  %s663_s30 = scalar_lea.sflag (!%p7237_p9), [#allocation4], %s6568_s14 }
  0x92   : > { %s665_s28 = scalar_lea.vmem (!%p7237_p9), [#allocation3], %s6568_s14 }
  0x96   : > { %6235 = dma.done.wait (%p7238_p7), %s663_s30, 16  }
  0x97   : > { %6237 = vsyncadd (%p7238_p7), %s663_s30, 4294967280  ;;  %p7239_p6 = scmp.eq.s32.totalorder %s6423_s26, 0 }
  0x99   : > { %6239 = dma.done.wait (%p7239_p6), [#allocation7], 64   ;;  %p7240_p5 = pmov %p7239_p6 }
  0x9b   : > { %6241 = vsyncadd (%p7240_p5), [#allocation7], 4294967232  ;;  %p7241_p1 = pmov %p7240_p5 }
  0x9d   : > { %6243 = dma.done.wait (%p7241_p1), [#allocation10], 8192   ;;  %p7242_p3 = pmov %p7241_p1 }
  0x9e   : > { %p7243_p11 = pmov %p7241_p1 }
  0x9f   : > { %6245 = vsyncadd (%p7242_p3), [#allocation10], 4294959104 }
  0xa0   : > { %6247 = dma.done.wait (%p7243_p11), [#allocation13], 8192   ;;  %p7244_p10 = pmov %p7241_p1 }
  0xa1   : > { %p752_p12 = scmp.lt.s32.totalorder %s6423_s26, 1  ;;  %v6283_v1 = vmov 0   ;;  %v6284_v2 = vmov 0.0   ;;  %s7245_s29 = sld [smem:[#allocation25_spill]]  ;;  %vm6285_vm0 = vmmov 0   ;;  %v809_v34 = vlaneseq }
  0xa2   : > { %6249 = vsyncadd (%p7244_p10), [#allocation13], 4294959104  ;;  %5762 = vset.pattern.permute.xlu0 %v6283_v1  ;;  %5311 = vmatprep.subr.bf16.mxu1 %v6284_v2  ;;  %v5763_v4 = vld [vmem:[#allocation9 + $0xac] ss:$12 sps:$4 sm:$0xff]   ;;  %v5765_v5 = vld [vmem:[#allocation9 + $0xa8] ss:$12 sps:$4 sm:$0xff]  }
  0xa3   : > { %s6592_s8 = scalar_select %p752_p12, %s6423_s26, 1  ;;  %984 = vmatprep.mubr.bf16.mxu0 %v6283_v1  ;;  %5327 = vmatprep.mubr.msk.bf16.mxu1 %vm6285_vm0, %v6284_v2  ;;  %v5766_v6 = vld [vmem:[#allocation9 + $0xb0] ss:$12 sps:$4 sm:$0xff]   ;;  %v5767_v7 = vld [vmem:[#allocation9 + $0x94] ss:$12 sps:$4 sm:$0xff]   ;;  %v6631_v35 = vshrl.u32 %v809_v34, 7 }
  0xa4   : > { %952 = vmatprep.subr.bf16.mxu0 %v5763_v4  ;;  %v5769_v8 = vld [vmem:[#allocation9 + $0x90] ss:$12 sps:$4 sm:$0xff]   ;;  %5312 = vmatpush3.bf16.msra.mxu1 %v5766_v6  ;;  %v5770_v9 = vld [vmem:[#allocation9 + $0x98] ss:$12 sps:$4 sm:$0xff]   ;;  %v5774_v12 = vld [vmem:[#allocation9 + $0x80] ss:$12 sps:$4 sm:$0xff]  }
  0xa5   : > { %s4955_s12 = sshll.u32 %s6592_s8, 3  ;;  %953 = vmatpush1.bf16.msra.mxu0 %v5765_v5  ;;  %5313 = vmatprep.subr.bf16.mxu1 %v6284_v2  ;;  %v5771_v10 = vld [vmem:[#allocation9 + $0x7c] ss:$12 sps:$4 sm:$0xff]   ;;  %v5773_v11 = vld [vmem:[#allocation9 + $0x78] ss:$12 sps:$4 sm:$0xff]   ;;  %s7246_s22 = sld [smem:[#allocation24_spill]] }
  0xa6   : > { %954 = vmatprep.subr.bf16.mxu0 %v5767_v7  ;;  %v5775_v13 = vld [vmem:[#allocation9 + $0x64] ss:$12 sps:$4 sm:$0xff]   ;;  %v5777_v14 = vld [vmem:[#allocation9 + $0x60] ss:$12 sps:$4 sm:$0xff]   ;;  %v5778_v15 = vld [vmem:[#allocation9 + $0x68] ss:$12 sps:$4 sm:$0xff]  }
  0xa7   : > { %s6601_s6 = scalar_lea.vmem %s7245_s29, %s4955_s12  ;;  %v5779_v16 = vld [vmem:[#allocation9 + $0x4c] ss:$12 sps:$4 sm:$0xff]   ;;  %v5781_v17 = vld [vmem:[#allocation9 + $0x48] ss:$12 sps:$4 sm:$0xff]   ;;  %v5782_v18 = vld [vmem:[#allocation9 + $0x50] ss:$12 sps:$4 sm:$0xff]  }
  0xa8   : > { %v762_v3 = vld [vmem:[%s6601_s6] sm:$0xff]  ;;  %5314 = vmatpush3.bf16.msra.mxu1 %v5770_v9  ;;  %v5791_v25 = vld [vmem:[#allocation9 + $0x4] ss:$12 sps:$4 sm:$0xff]   ;;  %v5794_v27 = vld [vmem:[#allocation9 + $0x8] ss:$12 sps:$4 sm:$0xff]   ;;  %s7247_s0 = sld [smem:[#allocation27_spill]] }
  0xa9   : > { %767 = vperm.xlu0 %5762, %v762_v3   ;;  %955 = vmatpush1.bf16.msra.mxu0 %v5769_v8  ;;  %v5783_v19 = vld [vmem:[#allocation9 + $0x34] ss:$12 sps:$4 sm:$0xff]   ;;  %v5785_v20 = vld [vmem:[#allocation9 + $0x30] ss:$12 sps:$4 sm:$0xff]   ;;  %v5786_v21 = vld [vmem:[#allocation9 + $0x38] ss:$12 sps:$4 sm:$0xff]  }
  0xaa   : > { %956 = vmatprep.subr.bf16.mxu0 %v5771_v10  ;;  %5315 = vmatprep.subr.bf16.mxu1 %v6284_v2  ;;  %v5787_v22 = vld [vmem:[#allocation9 + $0x1c] ss:$12 sps:$4 sm:$0xff]   ;;  %v5789_v23 = vld [vmem:[#allocation9 + $0x18] ss:$12 sps:$4 sm:$0xff]   ;;  %v5790_v24 = vld [vmem:[#allocation9 + $0x20] ss:$12 sps:$4 sm:$0xff]  }
  0xab   : > { %v5793_v26 = vld [vmem:[#allocation9] ss:$12 sps:$4 sm:$0xff]   ;;  %s755_s19 = scalar_lea.vmem %s7246_s22, %s4955_s12  ;;  %v6634_v36 = vsub.s32 0, %v6631_v35  ;;  %v6639_v37 = vld [vmem:[%s7183_s7] ss:$2 sm:$0x7] }
  0xac   : > { %5316 = vmatpush3.bf16.msra.mxu1 %v5774_v12  ;;  %v761_v28 = vld [vmem:[%s755_s19] sm:$0xff]  ;;  %v6642_v38 = vsub.s32 1, %v6631_v35  ;;  %vm1088_vm1 = vcmask 130048   ;;  %s6286_s12 = smov 96   ;;  %s6287_s2 = smov 112   ;;  %v819_v63 = vsub.s32 2, %v6631_v35 }
  0xad   : > { %957 = vmatpush1.bf16.msra.mxu0 %v5773_v11  ;;  %5317 = vmatprep.subr.bf16.mxu1 %v6284_v2  ;;  %v812_v39 = vrot.slane %v6639_v37, %v6634_v36  ;;  %s6288_s27 = smov 80   ;;  %s6289_s29 = smov 64   ;;  %vm1557_vm2 = vcmask 1043456   ;;  %vm1457_vm3 = vcmask 64512   ;;  %vm4779_vm4 = vcmask 57344  }
  0xae   : > { %958 = vmatprep.subr.bf16.mxu0 %v5775_v13  ;;  %v764_v29 = vld [vmem:[%s7247_s0] sm:$0xff]  ;;  %v816_v40 = vrot.slane %v6639_v37, %v6642_v38  ;;  %s6290_s18 = smov 48   ;;  %s6291_s21 = smov 32   ;;  %v820_v6 = vrot.slane %v6639_v37, %v819_v63 }
  0xaf   : > { %s6292_s22 = smov 16   ;;  %s7249_s8 = sld [smem:[#allocation35_spill]] }
  0xb0   : > { %5318 = vmatpush3.bf16.msra.mxu1 %v5778_v15  ;;  %s4782_s19 = scalar_lea.sflag [#allocation5], %s6568_s14  ;;  %p7250_p0 = scmp.ne.s32.totalorder %s7233_s4, 0 }
  0xb1   : > { %959 = vmatpush1.bf16.msra.mxu0 %v5777_v14  ;;  %5319 = vmatprep.subr.bf16.mxu1 %v6284_v2 }
  0xb2   : > { %960 = vmatprep.subr.bf16.mxu0 %v5779_v16 }
  0xb4   : > { %5320 = vmatpush3.bf16.msra.mxu1 %v5782_v18 }
  0xb5   : > { %961 = vmatpush1.bf16.msra.mxu0 %v5781_v17  ;;  %5321 = vmatprep.subr.bf16.mxu1 %v6284_v2 }
  0xb6   : > { %962 = vmatprep.subr.bf16.mxu0 %v5783_v19  ;;  %v763_v19 = vld [vmem:[%s665_s28] sm:$0x1] }
  0xb8   : > { %5322 = vmatpush3.bf16.msra.mxu1 %v5786_v21 }
  0xb9   : > { %963 = vmatpush1.bf16.msra.mxu0 %v5785_v20  ;;  %5323 = vmatprep.subr.bf16.mxu1 %v6284_v2  ;;  %v772_v20 = vsub.f32 1.0, %v763_v19 }
  0xba   : > { %964 = vmatprep.subr.bf16.mxu0 %v5787_v22 }
  0xbb   : > { %v773_v21 = vmul.f32 -1e+18, %v772_v20 }
  0xbc   : > { %5324 = vmatpush3.bf16.msra.mxu1 %v5790_v24 }
  0xbd   : > { %965 = vmatpush1.bf16.msra.mxu0 %v5789_v23  ;;  %5325 = vmatprep.subr.bf16.mxu1 %v6284_v2  ;;  %v6717_v22 = vrot.slane %v773_v21, %v6634_v36 }
  0xbe   : > { %966 = vmatprep.subr.bf16.mxu0 %v5791_v25 }
  0xc0   : > { %5326 = vmatpush3.bf16.msra.mxu1 %v5794_v27 }
  0xc1   : > { %967 = vmatpush1.bf16.msra.mxu0 %v5793_v26  ;;  %5337 = vmatprep.subr.bf16.mxu1 %v6284_v2 }
  0xc2   : > { %5331 = vmatprep.subr.bf16.mxu0 %v6284_v2 }
 0x124   : > { %v768_v30 = vpop.permute.xlu0 %767 }
 0x125   : > { %v770_v31 = vmul.f32 %v768_v30, %v761_v28 }
 0x127   : > { %v6623_v32 = vadd.f32 %v770_v31, %v764_v29 }
 0x129   : > { %v806_v33 = vpack.c.bf16 %v6623_v32, %v6623_v32 }
 0x12b   : > { %985 = vmatmul.mubr.bf16.vlgmr.msra.gmra.mxu0 %v806_v33  ;;  %5328 = vmatmul.mubr.bf16.vlgmr.msra.gmra.mxu1 %v806_v33 }
 0x12c   : > { %5333 = vmatprep.mubr.msk.bf16.mxu0 %vm6285_vm0, %v6284_v2  ;;  %5339 = vmatprep.mubr.msk.bf16.mxu1 %vm6285_vm0, %v6284_v2 }
 0x1eb   : > { %v986_v41 = vpop.f32.mrf.mxu0  ;;  %v6648_v42 = vpop.f32.mrf.mxu1 }
 0x1ec   : > { %v987_v43 = vadd.f32 %v986_v41, %v812_v39  ;;  %v1028_v9 = vadd.f32 %v6648_v42, %v820_v6 }
 0x1ed   : > { %v988_v44 = vpop.f32.mrf.mxu0  ;;  %v5329_v45 = vpop.f32.mrf.mxu1 }
 0x1ee   : > { %v989_v46 = vadd.f32 %v988_v44, %v816_v40  ;;  %v1033_v49 = vmul.f32 0.25, %v987_v43  ;;  %v6698_v13 = vpack.c.bf16 %v1028_v9, %v1028_v9 }
 0x1ef   : > { %v990_v47 = vpop.f32.mrf.mxu0  ;;  %v1030_v48 = vpop.f32.mrf.mxu1 }
 0x1f0   : > { %v1035_v50 = vpack.c.bf16 %v989_v46, %v989_v46  ;;  %v1034_v54 = vpack.c.bf16 %v1033_v49, %v1033_v49  ;;  %v1559_v17 = vsel %vm1557_vm2, %v6698_v13, 0 }
 0x1f1   : > { %v991_v51 = vpop.f32.mrf.mxu0  ;;  %v5330_v52 = vpop.f32.mrf.mxu1 }
 0x1f2   : > { %1055 = vrot.lane.b32.xlu1 %v1035_v50, %s6286_s12  ;;  %1053 = vrot.lane.b32.xlu0 %v1035_v50, %s6287_s2  ;;  %v1093_v53 = vsel %vm1088_vm1, %v1035_v50, 0 }
 0x1f3   : > { %5332 = vmatpush3.bf16.xpose.msra.mxu0 %v1093_v53 }
 0x1f4   : > { %5343 = vmatprep.subr.bf16.mxu0 %v6284_v2 }
 0x1f6   : > { %1057 = vrot.lane.b32.xlu0 %v1035_v50, %s6288_s27  ;;  %1038 = vrot.lane.b32.xlu1 %v1034_v54, %s6287_s2 }
 0x1fa   : > { %1059 = vrot.lane.b32.xlu0 %v1035_v50, %s6289_s29  ;;  %1040 = vrot.lane.b32.xlu1 %v1034_v54, %s6286_s12 }
 0x1fb   : > { %5334 = vmatmul.mubr.msk.bf16.vlgmr.msra.gmra.mxu0 %vm1088_vm1, %v1034_v54 }
 0x1fc   : > { %5345 = vmatprep.mubr.msk.bf16.mxu0 %vm6285_vm0, %v6284_v2 }
 0x1fe   : > { %1061 = vrot.lane.b32.xlu0 %v1035_v50, %s6290_s18  ;;  %1042 = vrot.lane.b32.xlu1 %v1034_v54, %s6288_s27 }
 0x202   : > { %1063 = vrot.lane.b32.xlu0 %v1035_v50, %s6291_s21  ;;  %1044 = vrot.lane.b32.xlu1 %v1034_v54, %s6289_s29 }
 0x206   : > { %1065 = vrot.lane.b32.xlu0 %v1035_v50, %s6292_s22  ;;  %1046 = vrot.lane.b32.xlu1 %v1034_v54, %s6290_s18 }
 0x20a   : > { %1050 = vrot.lane.b32.xlu0 %v1034_v54, %s6292_s22  ;;  %1048 = vrot.lane.b32.xlu1 %v1034_v54, %s6291_s21 }
 0x264   : > { %v1056_v55 = vpop.permute.xlu1 %1055  ;;  %v1054_v56 = vpop.permute.xlu0 %1053 }
 0x265   : > { %v1185_v57 = vsel %vm1088_vm1, %v1056_v55, 0  ;;  %v1139_v58 = vsel %vm1088_vm1, %v1054_v56, 0 }
 0x266   : > { %5338 = vmatpush3.bf16.xpose.msra.mxu1 %v1139_v58  ;;  %5344 = vmatpush3.bf16.xpose.msra.mxu0 %v1185_v57 }
 0x267   : > { %5349 = vmatprep.subr.bf16.mxu1 %v6284_v2  ;;  %5355 = vmatprep.subr.bf16.mxu0 %v6284_v2 }
 0x268   : > { %v1058_v59 = vpop.permute.xlu0 %1057  ;;  %v1039_v60 = vpop.permute.xlu1 %1038 }
 0x269   : > { %v1231_v0 = vsel %vm1088_vm1, %v1058_v59, 0 }
 0x26c   : > { %v1060_v61 = vpop.permute.xlu0 %1059  ;;  %v1041_v62 = vpop.permute.xlu1 %1040 }
 0x26d   : > { %v1277_v3 = vsel %vm1088_vm1, %v1060_v61, 0  ;;  %5340 = vmatmul.mubr.msk.bf16.vlgmr.msra.gmra.mxu1 %vm1088_vm1, %v1039_v60  ;;  %5346 = vmatmul.mubr.msk.bf16.vlgmr.msra.gmra.mxu0 %vm1088_vm1, %v1041_v62 }
 0x26e   : > { %5350 = vmatpush3.bf16.xpose.msra.mxu1 %v1231_v0  ;;  %5356 = vmatpush3.bf16.xpose.msra.mxu0 %v1277_v3 }
 0x26f   : > { %5351 = vmatprep.mubr.msk.bf16.mxu1 %vm6285_vm0, %v6284_v2  ;;  %5357 = vmatprep.mubr.msk.bf16.mxu0 %vm6285_vm0, %v6284_v2 }
 0x270   : > { %v1062_v4 = vpop.permute.xlu0 %1061  ;;  %v1043_v5 = vpop.permute.xlu1 %1042  ;;  %5361 = vmatprep.subr.bf16.mxu1 %v6284_v2  ;;  %5367 = vmatprep.subr.bf16.mxu0 %v6284_v2 }
 0x271   : > { %v1323_v10 = vsel %vm1088_vm1, %v1062_v4, 0 }
 0x274   : > { %v1064_v7 = vpop.permute.xlu0 %1063  ;;  %v1045_v8 = vpop.permute.xlu1 %1044 }
 0x275   : > { %v1369_v11 = vsel %vm1088_vm1, %v1064_v7, 0  ;;  %5352 = vmatmul.mubr.msk.bf16.vlgmr.msra.gmra.mxu1 %vm1088_vm1, %v1043_v5  ;;  %5358 = vmatmul.mubr.msk.bf16.vlgmr.msra.gmra.mxu0 %vm1088_vm1, %v1045_v8 }
 0x276   : > { %5362 = vmatpush3.bf16.xpose.msra.mxu1 %v1323_v10  ;;  %5368 = vmatpush3.bf16.xpose.msra.mxu0 %v1369_v11 }
 0x277   : > { %5363 = vmatprep.mubr.msk.bf16.mxu1 %vm6285_vm0, %v6284_v2  ;;  %5369 = vmatprep.mubr.msk.bf16.mxu0 %vm6285_vm0, %v6284_v2 }
 0x278   : > { %v1047_v12 = vpop.permute.xlu1 %1046  ;;  %5373 = vmatprep.subr.bf16.mxu1 %v6284_v2  ;;  %5379 = vmatprep.subr.bf16.mxu0 %v6284_v2  ;;  %v1066_v14 = vpop.permute.xlu0 %1065 }
 0x279   : > { %v1415_v16 = vsel %vm1088_vm1, %v1066_v14, 0 }
 0x27c   : > { %v1049_v15 = vpop.permute.xlu1 %1048  ;;  %v1051_v18 = vpop.permute.xlu0 %1050 }
 0x27d   : > { %5364 = vmatmul.mubr.msk.bf16.vlgmr.msra.gmra.mxu1 %vm1088_vm1, %v1047_v12  ;;  %5370 = vmatmul.mubr.msk.bf16.vlgmr.msra.gmra.mxu0 %vm1088_vm1, %v1049_v15 }
 0x27e   : > { %5374 = vmatpush3.bf16.xpose.msra.mxu1 %v1415_v16  ;;  %5380 = vmatpush3.bf16.msra.mxu0 %v1559_v17 }
 0x27f   : > { %5375 = vmatprep.mubr.msk.bf16.mxu1 %vm6285_vm0, %v6284_v2  ;;  %5385 = vmatprep.subr.bf16.mxu1 %v6284_v2 }
 0x280   : > { %5381 = vmatprep.mubr.msk.bf16.mxu0 %vm6285_vm0, %v6284_v2  ;;  %5391 = vmatprep.subr.bf16.mxu0 %v6284_v2 }
 0x285   : > { %5376 = vmatmul.mubr.msk.bf16.vlgmr.msra.gmra.mxu1 %vm1088_vm1, %v1051_v18 }
 0x286   : > { %5387 = vmatprep.mubr.msk.bf16.mxu1 %vm6285_vm0, %v6284_v2 }
 0x2bb   : > { %v1129_v23 = vpop.f32.mrf.mxu0 }
 0x2bc   : > { %v1130_v24 = vadd.f32 %v1129_v23, %v6717_v22 }
 0x2bd   : > { %v5335_v25 = vpop.f32.mrf.mxu0 }
 0x2be   : > { %v1458_v26 = vsel %vm1457_vm3, %v1130_v24, -inf }
 0x2bf   : > { %1459 = vmax.xlane.f32.xlu1 %v1458_v26  ;;  %v1132_v27 = vpop.f32.mrf.mxu0 }
 0x2c1   : > { %v5336_v28 = vpop.f32.mrf.mxu0 }
 0x32d   : > { %v1175_v29 = vpop.f32.mrf.mxu1  ;;  %v1221_v30 = vpop.f32.mrf.mxu0 }
 0x32e   : > { %v1176_v31 = vadd.f32 %v1175_v29, %v6717_v22  ;;  %v1222_v37 = vadd.f32 %v1221_v30, %v6717_v22 }
 0x32f   : > { %v5341_v33 = vpop.f32.mrf.mxu1  ;;  %v5347_v34 = vpop.f32.mrf.mxu0 }
 0x330   : > { %v1461_v39 = vsel %vm1457_vm3, %v1176_v31, -inf  ;;  %v1464_v44 = vsel %vm1457_vm3, %v1222_v37, -inf }
 0x331   : > { %1462 = vmax.xlane.f32.xlu0 %v1461_v39  ;;  %v1178_v40 = vpop.f32.mrf.mxu1  ;;  %v1224_v41 = vpop.f32.mrf.mxu0 }
 0x333   : > { %v5342_v42 = vpop.f32.mrf.mxu1  ;;  %v5348_v43 = vpop.f32.mrf.mxu0 }
 0x335   : > { %v1267_v45 = vpop.f32.mrf.mxu1  ;;  %1465 = vmax.xlane.f32.xlu0 %v1464_v44  ;;  %v1313_v46 = vpop.f32.mrf.mxu0 }
 0x336   : > { %v6726_v47 = vadd.f32 %v1267_v45, %v6717_v22  ;;  %v6729_v48 = vadd.f32 %v1313_v46, %v6717_v22 }
 0x337   : > { %v5353_v49 = vpop.f32.mrf.mxu1  ;;  %v5359_v50 = vpop.f32.mrf.mxu0 }
 0x338   : > { %v1467_v51 = vsel %vm1457_vm3, %v6726_v47, -inf  ;;  %v1470_v52 = vsel %vm1457_vm3, %v6729_v48, -inf }
 0x339   : > { %v1270_v53 = vpop.f32.mrf.mxu1  ;;  %1468 = vmax.xlane.f32.xlu1 %v1467_v51  ;;  %1471 = vmax.xlane.f32.xlu0 %v1470_v52  ;;  %v1316_v54 = vpop.f32.mrf.mxu0 }
 0x33b   : > { %v5354_v55 = vpop.f32.mrf.mxu1  ;;  %v5360_v56 = vpop.f32.mrf.mxu0 }
 0x33d   : > { %v1359_v57 = vpop.f32.mrf.mxu1  ;;  %v1405_v58 = vpop.f32.mrf.mxu0 }
 0x33e   : > { %v1360_v59 = vadd.f32 %v1359_v57, %v6717_v22  ;;  %v1406_v60 = vadd.f32 %v1405_v58, %v6717_v22 }
 0x33f   : > { %v5365_v61 = vpop.f32.mrf.mxu1  ;;  %v5371_v62 = vpop.f32.mrf.mxu0 }
 0x340   : > { %v1473_v0 = vsel %vm1457_vm3, %v1360_v59, -inf  ;;  %v1476_v3 = vsel %vm1457_vm3, %v1406_v60, -inf }
 0x341   : > { %v1362_v4 = vpop.f32.mrf.mxu1  ;;  %1474 = vmax.xlane.f32.xlu1 %v1473_v0  ;;  %1477 = vmax.xlane.f32.xlu0 %v1476_v3  ;;  %v1408_v5 = vpop.f32.mrf.mxu0 }
 0x343   : > { %v5366_v6 = vpop.f32.mrf.mxu1  ;;  %v5372_v7 = vpop.f32.mrf.mxu0 }
 0x345   : > { %v1451_v8 = vpop.f32.mrf.mxu1 }
 0x346   : > { %v1452_v16 = vadd.f32 %v1451_v8, %v6717_v22 }
 0x347   : > { %v5377_v9 = vpop.f32.mrf.mxu1 }
 0x348   : > { %v1460_v12 = vpop.xlane.xlu1 %1459  ;;  %v1479_v18 = vsel %vm1457_vm3, %v1452_v16, -inf }
 0x349   : > { %v1454_v10 = vpop.f32.mrf.mxu1  ;;  %v1482_v14 = vsub.f32 %v1130_v24, %v1460_v12 }
 0x34b   : > { %v5378_v11 = vpop.f32.mrf.mxu1  ;;  %v1490_v15 = vmul.f32 1.442695, %v1482_v14 }
 0x34d   : > { %5923 = vpow2.f32 %v1490_v15 }
 0x352   : > { %1070 = vrot.lane.b32.xlu1 %v6698_v13, %s6286_s12 }
 0x357   : > { %1068 = vrot.lane.b32.xlu0 %v6698_v13, %s6287_s2 }
 0x35a   : > { %v5924_v17 = vpop.eup %5923 }
 0x35b   : > { %v1506_v19 = vsel %vm1457_vm3, %v5924_v17, 0.0 }
 0x376   : > { %1480 = vmax.xlane.f32.xlu1 %v1479_v18  ;;  %1507 = vadd.xlane.f32.xlu0 %v1506_v19 }
 0x387   : > { %1072 = vrot.lane.b32.xlu1 %v6698_v13, %s6288_s27 }
 0x3ba   : > { %v1463_v20 = vpop.xlane.xlu0 %1462 }
 0x3bb   : > { %v1483_v21 = vsub.f32 %v1176_v31, %v1463_v20 }
 0x3bd   : > { %v1492_v23 = vmul.f32 1.442695, %v1483_v21 }
 0x3be   : > { %v1466_v25 = vpop.xlane.xlu0 %1465 }
 0x3bf   : > { %5925 = vpow2.f32 %v1492_v23  ;;  %v1484_v24 = vsub.f32 %v1222_v37, %v1466_v25 }
 0x3c1   : > { %v1494_v26 = vmul.f32 1.442695, %v1484_v24 }
 0x3c2   : > { %v1472_v27 = vpop.xlane.xlu0 %1471  ;;  %v1469_v37 = vpop.xlane.xlu1 %1468 }
 0x3c3   : > { %5927 = vpow2.f32 %v1494_v26  ;;  %v1485_v40 = vsub.f32 %v6726_v47, %v1469_v37  ;;  %v1486_v42 = vsub.f32 %v6729_v48, %v1472_v27 }
 0x3c5   : > { %v1496_v43 = vmul.f32 1.442695, %v1485_v40  ;;  %v1498_v45 = vmul.f32 1.442695, %v1486_v42 }
 0x3c7   : > { %5929 = vpow2.f32 %v1496_v43 }
 0x3c8   : > { %5931 = vpow2.f32 %v1498_v45 }
 0x3ca   : > { %v1478_v28 = vpop.xlane.xlu0 %1477  ;;  %v1475_v41 = vpop.xlane.xlu1 %1474 }
 0x3cb   : > { %v1487_v44 = vsub.f32 %v1360_v59, %v1475_v41  ;;  %v1488_v49 = vsub.f32 %v1406_v60, %v1478_v28 }
 0x3cc   : > { %v6748_v29 = vpop.eup %5925 }
 0x3cd   : > { %v1509_v30 = vsel %vm1457_vm3, %v6748_v29, 0.0  ;;  %v1500_v46 = vmul.f32 1.442695, %v1487_v44  ;;  %v1502_v50 = vmul.f32 1.442695, %v1488_v49 }
 0x3ce   : > { %1510 = vadd.xlane.f32.xlu1 %v1509_v30  ;;  %v1069_v33 = vpop.permute.xlu0 %1068  ;;  %v1071_v51 = vpop.permute.xlu1 %1070 }
 0x3cf   : > { %v1605_v34 = vsel %vm1557_vm2, %v1069_v33, 0  ;;  %5933 = vpow2.f32 %v1500_v46  ;;  %v1651_v5 = vsel %vm1557_vm2, %v1071_v51, 0  ;;  %v5795_v46 = vld [vmem:[#allocation11] sm:$0xff]  }
 0x3d0   : > { %v6753_v39 = vpop.eup %5927  ;;  %5386 = vmatpush3.bf16.msra.mxu1 %v1605_v34  ;;  %5935 = vpow2.f32 %v1502_v50 }
 0x3d1   : > { %v1512_v31 = vsel %vm1457_vm3, %v6753_v39, 0.0  ;;  %5397 = vmatprep.subr.bf16.mxu1 %v6284_v2 }
 0x3d2   : > { %1513 = vadd.xlane.f32.xlu0 %v1512_v31 }
 0x3d4   : > { %v6764_v52 = vpop.eup %5929 }
 0x3d5   : > { %v6766_v47 = vpop.eup %5931  ;;  %v1515_v56 = vsel %vm1457_vm3, %v6764_v52, 0.0 }
 0x3d6   : > { %v1518_v59 = vsel %vm1457_vm3, %v6766_v47, 0.0 }
 0x3dc   : > { %v6770_v57 = vpop.eup %5933 }
 0x3dd   : > { %v1521_v58 = vsel %vm1457_vm3, %v6770_v57, 0.0  ;;  %v6776_v60 = vpop.eup %5935 }
 0x3de   : > { %v1524_v61 = vsel %vm1457_vm3, %v6776_v60, 0.0 }
 0x3df   : > { %1076 = vrot.lane.b32.xlu1 %v6698_v13, %s6290_s18 }
 0x3e8   : > { %1074 = vrot.lane.b32.xlu0 %v6698_v13, %s6289_s29 }
 0x3ff   : > { %v1481_v53 = vpop.xlane.xlu1 %1480  ;;  %v1508_v54 = vpop.xlane.xlu0 %1507 }
 0x400   : > { %v1489_v55 = vsub.f32 %v1452_v16, %v1481_v53  ;;  %5937 = vrcp.f32 %v1508_v54 }
 0x402   : > { %v1504_v48 = vmul.f32 1.442695, %v1489_v55  ;;  %v5797_v55 = vld [vmem:[#allocation11 + $0x10] sm:$0xff]  }
 0x403   : > { %1516 = vadd.xlane.f32.xlu1 %v1515_v56  ;;  %v1073_v7 = vpop.permute.xlu1 %1072 }
 0x404   : > { %5939 = vpow2.f32 %v1504_v48  ;;  %v1697_v15 = vsel %vm1557_vm2, %v1073_v7, 0 }
 0x407   : > { %1522 = vadd.xlane.f32.xlu1 %v1521_v58  ;;  %1519 = vadd.xlane.f32.xlu0 %v1518_v59  ;;  %v5798_v59 = vld [vmem:[#allocation11 + $0x18] sm:$0xff]  }
 0x40b   : > { %1525 = vadd.xlane.f32.xlu0 %v1524_v61 }
 0x40d   : > { %v5938_v62 = vpop.eup %5937 }
 0x40e   : > { %v1538_v0 = vmul.f32 %v5938_v62, %v5924_v17 }
 0x410   : > { %v1546_v3 = vpack.c.bf16 %v1538_v0, %v1538_v0 }
 0x411   : > { %v6780_v4 = vpop.eup %5939 }
 0x412   : > { %5382 = vmatmul.mubr.msk.bf16.vlgmr.msra.gmra.mxu0 %vm1457_vm3, %v1546_v3  ;;  %v1527_v6 = vsel %vm1457_vm3, %v6780_v4, 0.0  ;;  %v5799_v3 = vld [vmem:[#allocation11 + $0x20] sm:$0xff]  }
 0x413   : > { %5392 = vmatpush3.bf16.msra.mxu0 %v1651_v5  ;;  %1528 = vadd.xlane.f32.xlu1 %v1527_v6 }
 0x414   : > { %5393 = vmatprep.mubr.msk.bf16.mxu0 %vm6285_vm0, %v6284_v2  ;;  %5403 = vmatprep.subr.bf16.mxu0 %v6284_v2 }
 0x421   : > { %1078 = vrot.lane.b32.xlu0 %v6698_v13, %s6291_s21 }
 0x424   : > { %1080 = vrot.lane.b32.xlu1 %v6698_v13, %s6292_s22 }
 0x457   : > { %v1511_v8 = vpop.xlane.xlu1 %1510 }
 0x458   : > { %5941 = vrcp.f32 %v1511_v8 }
 0x45b   : > { %v1514_v9 = vpop.xlane.xlu0 %1513  ;;  %v1077_v19 = vpop.permute.xlu1 %1076 }
 0x45c   : > { %5943 = vrcp.f32 %v1514_v9  ;;  %v1789_v33 = vsel %vm1557_vm2, %v1077_v19, 0 }
 0x45f   : > { %v1075_v17 = vpop.permute.xlu0 %1074 }
 0x460   : > { %v1743_v18 = vsel %vm1557_vm2, %v1075_v17, 0 }
 0x465   : > { %v5942_v10 = vpop.eup %5941 }
 0x466   : > { %v1539_v11 = vmul.f32 %v5942_v10, %v6748_v29  ;;  %v5800_v10 = vld [vmem:[#allocation11 + $0x28] sm:$0xff]  }
 0x468   : > { %v1547_v12 = vpack.c.bf16 %v1539_v11, %v1539_v11 }
 0x469   : > { %v5944_v14 = vpop.eup %5943 }
 0x46a   : > { %5388 = vmatmul.mubr.msk.bf16.vlgmr.msra.gmra.mxu1 %vm1457_vm3, %v1547_v12  ;;  %v1540_v16 = vmul.f32 %v5944_v14, %v6753_v39 }
 0x46b   : > { %5398 = vmatpush3.bf16.msra.mxu1 %v1697_v15  ;;  %5399 = vmatprep.mubr.msk.bf16.mxu1 %vm6285_vm0, %v6284_v2 }
 0x46c   : > { %v1548_v13 = vpack.c.bf16 %v1540_v16, %v1540_v16  ;;  %5409 = vmatprep.subr.bf16.mxu1 %v6284_v2  ;;  %v5801_v16 = vld [vmem:[#allocation11 + $0x30] sm:$0xff]  }
 0x46e   : > { %5394 = vmatmul.mubr.msk.bf16.vlgmr.msra.gmra.mxu0 %vm1457_vm3, %v1548_v13 }
 0x46f   : > { %5404 = vmatpush3.bf16.msra.mxu0 %v1743_v18  ;;  %5405 = vmatprep.mubr.msk.bf16.mxu0 %vm6285_vm0, %v6284_v2 }
 0x470   : > { %5415 = vmatprep.subr.bf16.mxu0 %v6284_v2 }
 0x48c   : > { %v1517_v20 = vpop.xlane.xlu1 %1516 }
 0x48d   : > { %5945 = vrcp.f32 %v1517_v20  ;;  %v5802_v20 = vld [vmem:[#allocation11 + $0x38] sm:$0xff]  }
 0x490   : > { %v1523_v21 = vpop.xlane.xlu1 %1522  ;;  %v1520_v23 = vpop.xlane.xlu0 %1519 }
 0x491   : > { %5947 = vrcp.f32 %v1523_v21 }
 0x492   : > { %5949 = vrcp.f32 %v1520_v23 }
 0x494   : > { %v1526_v25 = vpop.xlane.xlu0 %1525 }
 0x495   : > { %5951 = vrcp.f32 %v1526_v25 }
 0x498   : > { %v1079_v39 = vpop.permute.xlu0 %1078 }
 0x499   : > { %v1835_v41 = vsel %vm1557_vm2, %v1079_v39, 0 }
 0x49a   : > { %v5946_v24 = vpop.eup %5945 }
 0x49b   : > { %v1541_v26 = vmul.f32 %v5946_v24, %v6764_v52  ;;  %v5796_v52 = vld [vmem:[#allocation11 + $0x8] sm:$0xff]  }
 0x49c   : > { %v1529_v27 = vpop.xlane.xlu1 %1528 }
 0x49d   : > { %5953 = vrcp.f32 %v1529_v27  ;;  %v1549_v28 = vpack.c.bf16 %v1541_v26, %v1541_v26 }
 0x49e   : > { %v5948_v29 = vpop.eup %5947 }
 0x49f   : > { %v5950_v30 = vpop.eup %5949  ;;  %5400 = vmatmul.mubr.msk.bf16.vlgmr.msra.gmra.mxu1 %vm1457_vm3, %v1549_v28  ;;  %v1543_v31 = vmul.f32 %v5948_v29, %v6770_v57 }
 0x4a0   : > { %5410 = vmatpush3.bf16.msra.mxu1 %v1789_v33  ;;  %v1542_v34 = vmul.f32 %v5950_v30, %v6766_v47  ;;  %5411 = vmatprep.mubr.msk.bf16.mxu1 %vm6285_vm0, %v6284_v2  ;;  %v1081_v42 = vpop.permute.xlu1 %1080 }
 0x4a1   : > { %5421 = vmatprep.subr.bf16.mxu1 %v6284_v2  ;;  %v1551_v43 = vpack.c.bf16 %v1543_v31, %v1543_v31  ;;  %v1881_v45 = vsel %vm1557_vm2, %v1081_v42, 0 }
 0x4a2   : > { %v1550_v37 = vpack.c.bf16 %v1542_v34, %v1542_v34  ;;  %v5952_v40 = vpop.eup %5951 }
 0x4a3   : > { %v1544_v44 = vmul.f32 %v5952_v40, %v6776_v60 }
 0x4a4   : > { %5406 = vmatmul.mubr.msk.bf16.vlgmr.msra.gmra.mxu0 %vm1457_vm3, %v1550_v37 }
 0x4a5   : > { %5416 = vmatpush3.bf16.msra.mxu0 %v1835_v41  ;;  %5417 = vmatprep.mubr.msk.bf16.mxu0 %vm6285_vm0, %v6284_v2  ;;  %v1552_v50 = vpack.c.bf16 %v1544_v44, %v1544_v44 }
 0x4a6   : > { %5427 = vmatprep.subr.bf16.mxu0 %v6284_v2 }
 0x4a7   : > { %5412 = vmatmul.mubr.msk.bf16.vlgmr.msra.gmra.mxu1 %vm1457_vm3, %v1551_v43 }
 0x4a8   : > { %5422 = vmatpush3.bf16.msra.mxu1 %v1881_v45  ;;  %5423 = vmatprep.mubr.msk.bf16.mxu1 %vm6285_vm0, %v6284_v2 }
 0x4a9   : > { %5433 = vmatprep.subr.bf16.mxu1 %v6284_v2 }
 0x4aa   : > { %v5954_v49 = vpop.eup %5953 }
 0x4ab   : > { %v1545_v51 = vmul.f32 %v5954_v49, %v6780_v4  ;;  %v5805_v49 = vld [vmem:[#allocation12 + $0x74] ss:$8 sps:$4 sm:$0xff]  }
 0x4ac   : > { %5418 = vmatmul.mubr.msk.bf16.vlgmr.msra.gmra.mxu0 %vm1457_vm3, %v1552_v50 }
 0x4ad   : > { %v1553_v53 = vpack.c.bf16 %v1545_v51, %v1545_v51  ;;  %5428 = vmatpush3.bf16.msra.mxu0 %v5795_v46  ;;  %5429 = vmatprep.mubr.msk.bf16.mxu0 %vm6285_vm0, %v6284_v2  ;;  %v5803_v46 = vld [vmem:[#allocation12 + $0x70] ss:$8 sps:$4 sm:$0xff]  }
 0x4ae   : > { %5439 = vmatprep.subr.bf16.mxu0 %v6284_v2 }
 0x4af   : > { %5424 = vmatmul.mubr.msk.bf16.vlgmr.msra.gmra.mxu1 %vm1457_vm3, %v1553_v53 }
 0x4b0   : > { %5434 = vmatpush3.bf16.msra.mxu1 %v5796_v52  ;;  %5435 = vmatprep.mubr.msk.bf16.mxu1 %vm6285_vm0, %v6284_v2 }
 0x4b1   : > { %5445 = vmatprep.subr.bf16.mxu1 %v6284_v2 }
 0x4d2   : > { %v1595_v54 = vpop.f32.mrf.mxu0 }
 0x4d3   : > { %v1923_v47 = vpack.c.bf16 %v1595_v54, %v1595_v54 }
 0x4d4   : > { %v5383_v48 = vpop.f32.mrf.mxu0 }
 0x4d5   : > { %5430 = vmatmul.mubr.msk.bf16.vlgmr.msra.gmra.mxu0 %vm1088_vm1, %v1923_v47 }
 0x4d6   : > { %v1598_v56 = vpop.f32.mrf.mxu0  ;;  %5440 = vmatpush3.bf16.msra.mxu0 %v5797_v55  ;;  %5441 = vmatprep.mubr.msk.bf16.mxu0 %vm6285_vm0, %v6284_v2 }
 0x4d7   : > { %5451 = vmatprep.subr.bf16.mxu0 %v6284_v2 }
 0x4d8   : > { %v5384_v57 = vpop.f32.mrf.mxu0 }
 0x52a   : > { %v1641_v58 = vpop.f32.mrf.mxu1 }
 0x52b   : > { %v1924_v60 = vpack.c.bf16 %v1641_v58, %v1641_v58 }
 0x52c   : > { %v5389_v61 = vpop.f32.mrf.mxu1 }
 0x52d   : > { %5436 = vmatmul.mubr.msk.bf16.vlgmr.msra.gmra.mxu1 %vm1088_vm1, %v1924_v60 }
 0x52e   : > { %v1644_v62 = vpop.f32.mrf.mxu1  ;;  %v1687_v0 = vpop.f32.mrf.mxu0  ;;  %5446 = vmatpush3.bf16.msra.mxu1 %v5798_v59  ;;  %5447 = vmatprep.mubr.msk.bf16.mxu1 %vm6285_vm0, %v6284_v2 }
 0x52f   : > { %v1925_v4 = vpack.c.bf16 %v1687_v0, %v1687_v0  ;;  %5457 = vmatprep.subr.bf16.mxu1 %v6284_v2 }
 0x530   : > { %v5390_v5 = vpop.f32.mrf.mxu1  ;;  %v5395_v6 = vpop.f32.mrf.mxu0 }
 0x531   : > { %5442 = vmatmul.mubr.msk.bf16.vlgmr.msra.gmra.mxu0 %vm1088_vm1, %v1925_v4 }
 0x532   : > { %v1690_v7 = vpop.f32.mrf.mxu0  ;;  %5452 = vmatpush3.bf16.msra.mxu0 %v5799_v3  ;;  %5453 = vmatprep.mubr.msk.bf16.mxu0 %vm6285_vm0, %v6284_v2 }
 0x533   : > { %5463 = vmatprep.subr.bf16.mxu0 %v6284_v2 }
 0x534   : > { %v5396_v8 = vpop.f32.mrf.mxu0 }
 0x55f   : > { %v1733_v9 = vpop.f32.mrf.mxu1 }
 0x560   : > { %v1926_v11 = vpack.c.bf16 %v1733_v9, %v1733_v9 }
 0x561   : > { %v5401_v12 = vpop.f32.mrf.mxu1 }
 0x562   : > { %5448 = vmatmul.mubr.msk.bf16.vlgmr.msra.gmra.mxu1 %vm1088_vm1, %v1926_v11 }
 0x563   : > { %v1736_v14 = vpop.f32.mrf.mxu1  ;;  %5458 = vmatpush3.bf16.msra.mxu1 %v5800_v10  ;;  %5459 = vmatprep.mubr.msk.bf16.mxu1 %vm6285_vm0, %v6284_v2 }
 0x564   : > { %v1779_v15 = vpop.f32.mrf.mxu0  ;;  %5469 = vmatprep.subr.bf16.mxu1 %v6284_v2 }
 0x565   : > { %v1927_v17 = vpack.c.bf16 %v1779_v15, %v1779_v15  ;;  %v5402_v13 = vpop.f32.mrf.mxu1 }
 0x566   : > { %v5407_v18 = vpop.f32.mrf.mxu0 }
 0x567   : > { %5454 = vmatmul.mubr.msk.bf16.vlgmr.msra.gmra.mxu0 %vm1088_vm1, %v1927_v17  ;;  %v1825_v19 = vpop.f32.mrf.mxu1  ;;  %v5013_v17 = vld [vmem:[%s7185_s9] ss:$0 sm:$0xff] }
 0x568   : > { %v1782_v21 = vpop.f32.mrf.mxu0  ;;  %v1928_v23 = vpack.c.bf16 %v1825_v19, %v1825_v19  ;;  %5464 = vmatpush3.bf16.msra.mxu0 %v5801_v16  ;;  %5465 = vmatprep.mubr.msk.bf16.mxu0 %vm6285_vm0, %v6284_v2 }
 0x569   : > { %v5413_v25 = vpop.f32.mrf.mxu1  ;;  %2488 = vmatprep.subr.bf16.mxu0 %v5805_v49 }
 0x56a   : > { %v5408_v24 = vpop.f32.mrf.mxu0  ;;  %5460 = vmatmul.mubr.msk.bf16.vlgmr.msra.gmra.mxu1 %vm1088_vm1, %v1928_v23 }
 0x56b   : > { %v1828_v26 = vpop.f32.mrf.mxu1  ;;  %5470 = vmatpush3.bf16.msra.mxu1 %v5802_v20  ;;  %5471 = vmatprep.mubr.msk.bf16.mxu1 %vm6285_vm0, %v6284_v2 }
 0x56c   : > { %v1871_v27 = vpop.f32.mrf.mxu0 }
 0x56d   : > { %v1929_v28 = vpack.c.bf16 %v1871_v27, %v1871_v27  ;;  %v5414_v29 = vpop.f32.mrf.mxu1  ;;  %v5808_v27 = vld [vmem:[#allocation12 + $0x64] ss:$8 sps:$4 sm:$0xff]  }
 0x56e   : > { %v5419_v30 = vpop.f32.mrf.mxu0  ;;  %v5811_v29 = vld [vmem:[#allocation12 + $0x54] ss:$8 sps:$4 sm:$0xff]  }
 0x56f   : > { %5466 = vmatmul.mubr.msk.bf16.vlgmr.msra.gmra.mxu0 %vm1088_vm1, %v1929_v28  ;;  %v1917_v33 = vpop.f32.mrf.mxu1  ;;  %v5806_v28 = vld [vmem:[#allocation12 + $0x60] ss:$8 sps:$4 sm:$0xff]   ;;  %v5809_v30 = vld [vmem:[#allocation12 + $0x50] ss:$8 sps:$4 sm:$0xff]  }
 0x570   : > { %v1874_v34 = vpop.f32.mrf.mxu0  ;;  %v1930_v39 = vpack.c.bf16 %v1917_v33, %v1917_v33  ;;  %2520 = vmatprep.mubr.bf16.mxu0 %v6283_v1  ;;  %2489 = vmatpush1.bf16.msra.mxu0 %v5803_v46  ;;  %v5814_v33 = vld [vmem:[#allocation12 + $0x44] ss:$8 sps:$4 sm:$0xff]  }
 0x571   : > { %v5425_v31 = vpop.f32.mrf.mxu1  ;;  %2490 = vmatprep.subr.bf16.mxu0 %v5808_v27  ;;  %v5812_v34 = vld [vmem:[#allocation12 + $0x40] ss:$8 sps:$4 sm:$0xff]  }
 0x572   : > { %v5420_v37 = vpop.f32.mrf.mxu0  ;;  %5472 = vmatmul.mubr.msk.bf16.vlgmr.msra.gmra.mxu1 %vm1088_vm1, %v1930_v39  ;;  %v5815_v39 = vld [vmem:[#allocation12 + $0x30] ss:$8 sps:$4 sm:$0xff]   ;;  %v5820_v31 = vld [vmem:[#allocation12 + $0x24] ss:$8 sps:$4 sm:$0xff]  }
 0x573   : > { %v1920_v40 = vpop.f32.mrf.mxu1  ;;  %v5818_v37 = vld [vmem:[#allocation12 + $0x20] ss:$8 sps:$4 sm:$0xff]  }
 0x574   : > { %2491 = vmatpush1.bf16.msra.mxu0 %v5806_v28  ;;  %v5823_v40 = vld [vmem:[#allocation12 + $0x14] ss:$8 sps:$4 sm:$0xff]  }
 0x575   : > { %v5426_v41 = vpop.f32.mrf.mxu1  ;;  %2492 = vmatprep.subr.bf16.mxu0 %v5811_v29 }
 0x576   : > { %v5821_v41 = vld [vmem:[#allocation12 + $0x10] ss:$8 sps:$4 sm:$0xff]  }
 0x578   : > { %2493 = vmatpush1.bf16.msra.mxu0 %v5809_v30 }
 0x579   : > { %2494 = vmatprep.subr.bf16.mxu0 %v5814_v33 }
 0x57c   : > { %2495 = vmatpush1.bf16.msra.mxu0 %v5812_v34 }
 0x595   : > { %v1990_v42 = vpop.f32.mrf.mxu0 }
 0x597   : > { %v5431_v43 = vpop.f32.mrf.mxu0 }
 0x598   : > { %v5824_v43 = vld [vmem:[#allocation12] ss:$8 sps:$4 sm:$0xff]  }
 0x599   : > { %v1993_v44 = vpop.f32.mrf.mxu0 }
 0x59b   : > { %v5432_v45 = vpop.f32.mrf.mxu0 }
 0x5ed   : > { %v2039_v50 = vpop.f32.mrf.mxu1 }
 0x5ee   : > { %v2339_v59 = vadd.f32 %v2039_v50, %v1990_v42  ;;  %v5826_v42 = vld [vmem:[#allocation12 + $0x4] ss:$8 sps:$4 sm:$0xff]  }
 0x5ef   : > { %v5437_v51 = vpop.f32.mrf.mxu1 }
 0x5f1   : > { %v2042_v52 = vpop.f32.mrf.mxu1  ;;  %v2088_v53 = vpop.f32.mrf.mxu0 }
 0x5f2   : > { %v2340_v62 = vadd.f32 %v2339_v59, %v2088_v53  ;;  %v5827_v59 = vld [vmem:[#allocation14 + $0x78] sm:$0xff]  }
 0x5f3   : > { %v5438_v54 = vpop.f32.mrf.mxu1  ;;  %v5443_v55 = vpop.f32.mrf.mxu0  ;;  %5210 = vmatprep.subr.bf16.mxu1 %v5827_v59  ;;  %v5846_v59 = vld [vmem:[#allocation9 + $0x170] ss:$12 sps:$4 sm:$0xff]  }
 0x5f4   : > { %v5014_v55 = vld [vmem:[%s7186_s10] ss:$0 sm:$0xff] }
 0x5f5   : > { %v2091_v47 = vpop.f32.mrf.mxu0 }
 0x5f7   : > { %v5444_v48 = vpop.f32.mrf.mxu0 }
 0x5f8   : > { %v5015_v48 = vld [vmem:[%s7187_s11] ss:$0 sm:$0xff] }
 0x622   : > { %v2137_v56 = vpop.f32.mrf.mxu1 }
 0x623   : > { %v2341_v4 = vadd.f32 %v2340_v62, %v2137_v56  ;;  %v5830_v62 = vld [vmem:[#allocation14 + $0x30] sm:$0xff]  }
 0x624   : > { %v5449_v57 = vpop.f32.mrf.mxu1 }
 0x626   : > { %v2140_v58 = vpop.f32.mrf.mxu1 }
 0x627   : > { %v2186_v60 = vpop.f32.mrf.mxu0 }
 0x628   : > { %v5450_v61 = vpop.f32.mrf.mxu1  ;;  %v2342_v7 = vadd.f32 %v2341_v4, %v2186_v60  ;;  %v5828_v60 = vld [vmem:[#allocation14 + $0x38] sm:$0xff]   ;;  %v5833_v4 = vld [vmem:[#allocation14 + $0x60] sm:$0xff]  }
 0x629   : > { %v5455_v0 = vpop.f32.mrf.mxu0  ;;  %5211 = vmatpush3.bf16.msra.mxu1 %v5828_v60  ;;  %v5829_v61 = vld [vmem:[#allocation14 + $0x70] sm:$0xff]  }
 0x62a   : > { %v2235_v3 = vpop.f32.mrf.mxu1  ;;  %5212 = vmatprep.subr.bf16.mxu1 %v5829_v61  ;;  %v5831_v0 = vld [vmem:[#allocation14 + $0x68] sm:$0xff]   ;;  %v5849_v60 = vld [vmem:[#allocation9 + $0x154] ss:$12 sps:$4 sm:$0xff]   ;;  %v5847_v61 = vld [vmem:[#allocation9 + $0x150] ss:$12 sps:$4 sm:$0xff]  }
 0x62b   : > { %v2189_v5 = vpop.f32.mrf.mxu0  ;;  %v2343_v10 = vadd.f32 %v2342_v7, %v2235_v3  ;;  %v5832_v3 = vld [vmem:[#allocation14 + $0x28] sm:$0xff]   ;;  %v5836_v7 = vld [vmem:[#allocation14 + $0x18] sm:$0xff]  }
 0x62c   : > { %v5461_v6 = vpop.f32.mrf.mxu1  ;;  %v5834_v5 = vld [vmem:[#allocation14 + $0x20] sm:$0xff]  }
 0x62d   : > { %v5456_v8 = vpop.f32.mrf.mxu0  ;;  %5213 = vmatpush3.bf16.msra.mxu1 %v5830_v62  ;;  %v5835_v6 = vld [vmem:[#allocation14 + $0x58] sm:$0xff]  }
 0x62e   : > { %v2238_v9 = vpop.f32.mrf.mxu1  ;;  %5214 = vmatprep.subr.bf16.mxu1 %v5831_v0  ;;  %v5837_v8 = vld [vmem:[#allocation14 + $0x50] sm:$0xff]   ;;  %v5850_v62 = vld [vmem:[#allocation9 + $0x158] ss:$12 sps:$4 sm:$0xff]  }
 0x62f   : > { %v2284_v11 = vpop.f32.mrf.mxu0  ;;  %v5838_v9 = vld [vmem:[#allocation14 + $0x10] sm:$0xff]   ;;  %v5851_v0 = vld [vmem:[#allocation9 + $0x138] ss:$12 sps:$4 sm:$0xff]  }
 0x630   : > { %v5462_v12 = vpop.f32.mrf.mxu1  ;;  %v2344_v14 = vadd.f32 %v2343_v10, %v2284_v11  ;;  %v5839_v10 = vld [vmem:[#allocation14 + $0x48] sm:$0xff]  }
 0x631   : > { %v5467_v15 = vpop.f32.mrf.mxu0  ;;  %5215 = vmatpush3.bf16.msra.mxu1 %v5832_v3  ;;  %v5840_v11 = vld [vmem:[#allocation14 + $0x8] sm:$0xff]   ;;  %v5841_v12 = vld [vmem:[#allocation14 + $0x40] sm:$0xff]  }
 0x632   : > { %v2333_v16 = vpop.f32.mrf.mxu1  ;;  %5216 = vmatprep.subr.bf16.mxu1 %v5833_v4  ;;  %v2396_v15 = vld [vmem:[%s7189_s13] ss:$2 sm:$0x3]  ;;  %v5854_v3 = vld [vmem:[#allocation9 + $0x140] ss:$12 sps:$4 sm:$0xff]  }
 0x633   : > { %v2287_v13 = vpop.f32.mrf.mxu0  ;;  %v2345_v18 = vadd.f32 %v2344_v14, %v2333_v16  ;;  %v5842_v14 = vld [vmem:[#allocation14] sm:$0xff]   ;;  %v2401_v16 = vrot.slane %v2396_v15, %v6634_v36 }
 0x634   : > { %v5473_v19 = vpop.f32.mrf.mxu1  ;;  %v5857_v4 = vld [vmem:[#allocation9 + $0x124] ss:$12 sps:$4 sm:$0xff]  }
 0x635   : > { %v2351_v20 = vadd.f32 %v5013_v17, %v2345_v18  ;;  %v5468_v21 = vpop.f32.mrf.mxu0  ;;  %5217 = vmatpush3.bf16.msra.mxu1 %v5834_v5  ;;  %v2405_v17 = vrot.slane %v2396_v15, %v6642_v38  ;;  %v5855_v5 = vld [vmem:[#allocation9 + $0x120] ss:$12 sps:$4 sm:$0xff]   ;;  %v5867_v15 = vld [vmem:[#allocation9 + $0xd8] ss:$12 sps:$4 sm:$0xff]  }
 0x636   : > { %v2336_v23 = vpop.f32.mrf.mxu1  ;;  %5218 = vmatprep.subr.bf16.mxu1 %v5835_v6  ;;  %v5858_v6 = vld [vmem:[#allocation9 + $0x128] ss:$12 sps:$4 sm:$0xff]  }
 0x637   : > { %v6862_v25 = vadd.f32 %v2351_v20, %v6623_v32  ;;  %v5817_v32 = vld [vmem:[#allocation12 + $0x34] ss:$8 sps:$4 sm:$0xff]  }
 0x638   : > { %v5474_v24 = vpop.f32.mrf.mxu1  ;;  %2496 = vmatprep.subr.bf16.mxu0 %v5817_v32 }
 0x639   : > { %2355 = vadd.xlane.f32.xlu0 %v6862_v25  ;;  %v2359_v26 = vmul.f32 %v6862_v25, %v6862_v25  ;;  %2497 = vmatpush1.bf16.msra.mxu0 %v5815_v39 }
 0x63a   : > { %2498 = vmatprep.subr.bf16.mxu0 %v5820_v31  ;;  %5219 = vmatpush3.bf16.msra.mxu1 %v5836_v7  ;;  %v5861_v7 = vld [vmem:[#allocation9 + $0x10c] ss:$12 sps:$4 sm:$0xff]  }
 0x63b   : > { %2360 = vadd.xlane.f32.xlu1 %v2359_v26  ;;  %5220 = vmatprep.subr.bf16.mxu1 %v5837_v8  ;;  %v5859_v8 = vld [vmem:[#allocation9 + $0x108] ss:$12 sps:$4 sm:$0xff]  }
 0x63d   : > { %2499 = vmatpush1.bf16.msra.mxu0 %v5818_v37 }
 0x63e   : > { %2500 = vmatprep.subr.bf16.mxu0 %v5823_v40  ;;  %5221 = vmatpush3.bf16.msra.mxu1 %v5838_v9  ;;  %v5862_v9 = vld [vmem:[#allocation9 + $0x110] ss:$12 sps:$4 sm:$0xff]  }
 0x63f   : > { %5222 = vmatprep.subr.bf16.mxu1 %v5839_v10  ;;  %v5865_v10 = vld [vmem:[#allocation9 + $0xf4] ss:$12 sps:$4 sm:$0xff]  }
 0x641   : > { %2501 = vmatpush1.bf16.msra.mxu0 %v5821_v41 }
 0x642   : > { %2502 = vmatprep.subr.bf16.mxu0 %v5826_v42  ;;  %5223 = vmatpush3.bf16.msra.mxu1 %v5840_v11  ;;  %v5863_v11 = vld [vmem:[#allocation9 + $0xf0] ss:$12 sps:$4 sm:$0xff]  }
 0x643   : > { %5224 = vmatprep.subr.bf16.mxu1 %v5841_v12  ;;  %v5866_v12 = vld [vmem:[#allocation9 + $0xf8] ss:$12 sps:$4 sm:$0xff]  }
 0x645   : > { %2503 = vmatpush1.bf16.msra.mxu0 %v5824_v43 }
 0x646   : > { %5225 = vmatpush3.bf16.msra.mxu1 %v5842_v14  ;;  %v5869_v14 = vld [vmem:[#allocation9 + $0xdc] ss:$12 sps:$4 sm:$0xff]  }
 0x647   : > { %5475 = vmatprep.subr.bf16.mxu1 %v6284_v2 }
 0x6c2   : > { %v2356_v44 = vpop.xlane.xlu0 %2355 }
 0x6c3   : > { %v2358_v45 = vmul.f32 0.0078125, %v2356_v44 }
 0x6c4   : > { %v2361_v46 = vpop.xlane.xlu1 %2360 }
 0x6c5   : > { %v2363_v49 = vmul.f32 %v2358_v45, %v2358_v45  ;;  %v2362_v50 = vmul.f32 0.0078125, %v2361_v46  ;;  %v2365_v53 = vsub.f32 %v6862_v25, %v2358_v45 }
 0x6c7   : > { %v2364_v51 = vsub.f32 %v2362_v50, %v2363_v49 }
 0x6c9   : > { %v2366_v52 = vadd.f32 1e-06, %v2364_v51  ;;  %v5032_v51 = vld [vmem:[%s7191_s15] ss:$0 sm:$0xff] }
 0x6cb   : > { %5955 = vrsqrt.f32 %v2366_v52 }
 0x6d8   : > { %v5956_v54 = vpop.eup %5955 }
 0x6d9   : > { %v2368_v47 = vmul.f32 %v5956_v54, %v2365_v53 }
 0x6db   : > { %v2373_v56 = vmul.f32 %v5014_v55, %v2368_v47 }
 0x6dd   : > { %v2378_v57 = vadd.f32 %v5015_v48, %v2373_v56 }
 0x6df   : > { %v2395_v58 = vpack.c.bf16 %v2378_v57, %v2378_v57  ;;  %v5845_v57 = vld [vmem:[#allocation9 + $0x16c] ss:$12 sps:$4 sm:$0xff]  }
 0x6e0   : > { %2928 = vmatprep.subr.bf16.mxu0 %v5845_v57 }
 0x6e1   : > { %2521 = vmatmul.mubr.bf16.vlgmr.msra.gmra.mxu0 %v2395_v58  ;;  %v5843_v58 = vld [vmem:[#allocation9 + $0x168] ss:$12 sps:$4 sm:$0xff]  }
 0x6e2   : > { %2960 = vmatprep.mubr.bf16.mxu0 %v6283_v1  ;;  %2929 = vmatpush1.bf16.msra.mxu0 %v5843_v58 }
 0x6e3   : > { %2930 = vmatprep.subr.bf16.mxu0 %v5849_v60 }
 0x6e6   : > { %2931 = vmatpush1.bf16.msra.mxu0 %v5847_v61 }
 0x7a1   : > { %v2522_v13 = vpop.f32.mrf.mxu0 }
 0x7a2   : > { %v2523_v18 = vadd.f32 %v2522_v13, %v2401_v16  ;;  %v5870_v16 = vld [vmem:[#allocation9 + $0xe0] ss:$12 sps:$4 sm:$0xff]  }
 0x7a3   : > { %v2524_v19 = vpop.f32.mrf.mxu0  ;;  %v5871_v13 = vld [vmem:[#allocation9 + $0xc0] ss:$12 sps:$4 sm:$0xff]  }
 0x7a4   : > { %v2531_v20 = vmul.f32 %v2523_v18, %v2523_v18  ;;  %v2525_v21 = vadd.f32 %v2524_v19, %v2405_v17  ;;  %v2529_v41 = vmul.f32 0.5, %v2523_v18  ;;  %v5873_v17 = vld [vmem:[#allocation9 + $0xc4] ss:$12 sps:$4 sm:$0xff]  }
 0x7a5   : > { %v2526_v23 = vpop.f32.mrf.mxu0 }
 0x7a6   : > { %v2533_v24 = vmul.f32 %v2531_v20, %v2523_v18  ;;  %v2532_v26 = vmul.f32 %v2525_v21, %v2525_v21  ;;  %v2530_v42 = vmul.f32 0.5, %v2525_v21 }
 0x7a7   : > { %v2527_v27 = vpop.f32.mrf.mxu0 }
 0x7a8   : > { %v2535_v28 = vmul.f32 0.044715, %v2533_v24  ;;  %v2534_v29 = vmul.f32 %v2532_v26, %v2525_v21 }
 0x7aa   : > { %v2537_v30 = vadd.f32 %v2535_v28, %v2523_v18  ;;  %v2536_v33 = vmul.f32 0.044715, %v2534_v29  ;;  %v5874_v18 = vld [vmem:[#allocation9 + $0xc8] ss:$12 sps:$4 sm:$0xff]  }
 0x7ac   : > { %v2539_v34 = vmul.f32 0.7978846, %v2537_v30  ;;  %v2538_v32 = vadd.f32 %v2536_v33, %v2525_v21  ;;  %v5049_v30 = vld [vmem:[#allocation6 + $0x1] ss:$0 sm:$0xff] }
 0x7ae   : > { %5957 = vtanh.f32 %v2539_v34  ;;  %v2540_v39 = vmul.f32 0.7978846, %v2538_v32  ;;  %v5050_v34 = vld [vmem:[#allocation8 + $0x1] ss:$0 sm:$0xff] }
 0x7b0   : > { %5959 = vtanh.f32 %v2540_v39 }
 0x7bb   : > { %v5958_v31 = vpop.eup %5957 }
 0x7bc   : > { %v2543_v37 = vadd.f32 1.0, %v5958_v31 }
 0x7bd   : > { %v5960_v40 = vpop.eup %5959 }
 0x7be   : > { %v2544_v43 = vadd.f32 1.0, %v5960_v40  ;;  %v2545_v44 = vmul.f32 %v2543_v37, %v2529_v41  ;;  %v5051_v37 = vld [vmem:[%s7183_s7 + $0x1] ss:$2 sm:$0x7] }
 0x7bf   : > { %v2788_v40 = vrot.slane %v5051_v37, %v6634_v36  ;;  %v2792_v41 = vrot.slane %v5051_v37, %v6642_v38  ;;  %v2796_v57 = vrot.slane %v5051_v37, %v819_v63 }
 0x7c0   : > { %v2546_v45 = vmul.f32 %v2544_v43, %v2530_v42  ;;  %v2579_v49 = vpack.c.bf16 %v2545_v44, %v2545_v44 }
 0x7c2   : > { %v2580_v46 = vpack.c.bf16 %v2546_v45, %v2546_v45 }
 0x7c4   : > { %2714 = vmatprep.mubr.bf16.mxu1 %v2580_v46 }
 0x7c5   : > { %2715 = vmatmul.mubr.bf16.vlgmr.msra.gmra.mxu1 %v2579_v49 }
 0x7c6   : > { %5491 = vmatprep.mubr.msk.bf16.mxu1 %vm6285_vm0, %v6284_v2  ;;  %5476 = vmatpush3.bf16.msra.mxu1 %v5846_v59 }
 0x7c7   : > { %5477 = vmatprep.subr.bf16.mxu1 %v6284_v2 }
 0x7ca   : > { %5478 = vmatpush3.bf16.msra.mxu1 %v5850_v62 }
 0x7cb   : > { %5479 = vmatprep.subr.bf16.mxu1 %v6284_v2 }
 0x7ce   : > { %5480 = vmatpush3.bf16.msra.mxu1 %v5854_v3 }
 0x7cf   : > { %5481 = vmatprep.subr.bf16.mxu1 %v6284_v2 }
 0x7d2   : > { %5482 = vmatpush3.bf16.msra.mxu1 %v5858_v6 }
 0x7d3   : > { %5483 = vmatprep.subr.bf16.mxu1 %v6284_v2 }
 0x7d6   : > { %5484 = vmatpush3.bf16.msra.mxu1 %v5862_v9 }
 0x7d7   : > { %5485 = vmatprep.subr.bf16.mxu1 %v6284_v2 }
 0x7da   : > { %5486 = vmatpush3.bf16.msra.mxu1 %v5866_v12 }
 0x7db   : > { %5487 = vmatprep.subr.bf16.mxu1 %v6284_v2 }
 0x7de   : > { %5488 = vmatpush3.bf16.msra.mxu1 %v5870_v16 }
 0x7df   : > { %5489 = vmatprep.subr.bf16.mxu1 %v6284_v2 }
 0x7e2   : > { %5490 = vmatpush3.bf16.msra.mxu1 %v5874_v18 }
 0x7e3   : > { %5501 = vmatprep.subr.bf16.mxu1 %v6284_v2 }
 0x885   : > { %v5226_v50 = vpop.f32.mrf.mxu1 }
 0x887   : > { %v5227_v52 = vpop.f32.mrf.mxu1 }
 0x888   : > { %v5228_v53 = vadd.f32 %v5227_v52, %v5226_v50 }
 0x889   : > { %v5229_v54 = vpop.f32.mrf.mxu1 }
 0x88a   : > { %v2717_v55 = vadd.f32 %v5228_v53, %v5032_v51 }
 0x88b   : > { %v5230_v47 = vpop.f32.mrf.mxu1 }
 0x88c   : > { %v6887_v48 = vadd.f32 %v2717_v55, %v6862_v25  ;;  %v5853_v25 = vld [vmem:[#allocation9 + $0x13c] ss:$12 sps:$4 sm:$0xff]  }
 0x88d   : > { %2932 = vmatprep.subr.bf16.mxu0 %v5853_v25 }
 0x88e   : > { %2725 = vadd.xlane.f32.xlu0 %v6887_v48  ;;  %v2728_v56 = vmul.f32 %v6887_v48, %v6887_v48  ;;  %2933 = vmatpush1.bf16.msra.mxu0 %v5851_v0 }
 0x88f   : > { %2934 = vmatprep.subr.bf16.mxu0 %v5857_v4 }
 0x892   : > { %2729 = vadd.xlane.f32.xlu0 %v2728_v56  ;;  %2935 = vmatpush1.bf16.msra.mxu0 %v5855_v5 }
 0x893   : > { %2936 = vmatprep.subr.bf16.mxu0 %v5861_v7 }
 0x896   : > { %2937 = vmatpush1.bf16.msra.mxu0 %v5859_v8 }
 0x897   : > { %2938 = vmatprep.subr.bf16.mxu0 %v5865_v10 }
 0x89a   : > { %2939 = vmatpush1.bf16.msra.mxu0 %v5863_v11 }
 0x89b   : > { %2940 = vmatprep.subr.bf16.mxu0 %v5869_v14 }
 0x89e   : > { %2941 = vmatpush1.bf16.msra.mxu0 %v5867_v15 }
 0x89f   : > { %2942 = vmatprep.subr.bf16.mxu0 %v5873_v17 }
 0x8a2   : > { %2943 = vmatpush1.bf16.msra.mxu0 %v5871_v13 }
 0x8a3   : > { %5495 = vmatprep.subr.bf16.mxu0 %v6284_v2 }
 0x917   : > { %v2726_v19 = vpop.xlane.xlu0 %2725 }
 0x918   : > { %v2727_v20 = vmul.f32 0.0078125, %v2726_v19 }
 0x91a   : > { %v2732_v23 = vmul.f32 %v2727_v20, %v2727_v20  ;;  %v2734_v28 = vsub.f32 %v6887_v48, %v2727_v20 }
 0x91b   : > { %v2730_v21 = vpop.xlane.xlu0 %2729 }
 0x91c   : > { %v2731_v24 = vmul.f32 0.0078125, %v2730_v21 }
 0x91e   : > { %v2733_v26 = vsub.f32 %v2731_v24, %v2732_v23 }
 0x920   : > { %v2735_v27 = vadd.f32 1e-06, %v2733_v26 }
 0x922   : > { %5961 = vrsqrt.f32 %v2735_v27 }
 0x92f   : > { %v5962_v29 = vpop.eup %5961 }
 0x930   : > { %v2737_v33 = vmul.f32 %v5962_v29, %v2734_v28 }
 0x932   : > { %v2742_v32 = vmul.f32 %v5049_v30, %v2737_v33 }
 0x934   : > { %v2747_v39 = vadd.f32 %v5050_v34, %v2742_v32 }
 0x936   : > { %v2781_v31 = vpack.c.bf16 %v2747_v39, %v2747_v39 }
 0x938   : > { %2961 = vmatmul.mubr.bf16.vlgmr.msra.gmra.mxu0 %v2781_v31  ;;  %5492 = vmatmul.mubr.bf16.vlgmr.msra.gmra.mxu1 %v2781_v31 }
 0x939   : > { %5497 = vmatprep.mubr.msk.bf16.mxu0 %vm6285_vm0, %v6284_v2  ;;  %5503 = vmatprep.mubr.msk.bf16.mxu1 %vm6285_vm0, %v6284_v2 }
 0x9f8   : > { %v2962_v42 = vpop.f32.mrf.mxu0  ;;  %v3003_v43 = vpop.f32.mrf.mxu1 }
 0x9f9   : > { %v2963_v44 = vadd.f32 %v2962_v42, %v2788_v40  ;;  %v3004_v58 = vadd.f32 %v3003_v43, %v2796_v57 }
 0x9fa   : > { %v2964_v45 = vpop.f32.mrf.mxu0  ;;  %v5493_v46 = vpop.f32.mrf.mxu1 }
 0x9fb   : > { %v2965_v49 = vadd.f32 %v2964_v45, %v2792_v41  ;;  %v3009_v52 = vmul.f32 0.25, %v2963_v44  ;;  %v6932_v59 = vpack.c.bf16 %v3004_v58, %v3004_v58 }
 0x9fc   : > { %v2966_v50 = vpop.f32.mrf.mxu0  ;;  %v3006_v51 = vpop.f32.mrf.mxu1 }
 0x9fd   : > { %v3011_v53 = vpack.c.bf16 %v2965_v49, %v2965_v49  ;;  %v3010_v56 = vpack.c.bf16 %v3009_v52, %v3009_v52  ;;  %v3526_v13 = vsel %vm1557_vm2, %v6932_v59, 0 }
 0x9fe   : > { %v2967_v54 = vpop.f32.mrf.mxu0  ;;  %v5494_v55 = vpop.f32.mrf.mxu1 }
 0x9ff   : > { %3031 = vrot.lane.b32.xlu0 %v3011_v53, %s6286_s12  ;;  %3029 = vrot.lane.b32.xlu1 %v3011_v53, %s6287_s2  ;;  %v3062_v47 = vsel %vm1088_vm1, %v3011_v53, 0 }
 0xa00   : > { %5496 = vmatpush3.bf16.xpose.msra.mxu0 %v3062_v47 }
 0xa01   : > { %5507 = vmatprep.subr.bf16.mxu0 %v6284_v2 }
 0xa03   : > { %3016 = vrot.lane.b32.xlu0 %v3010_v56, %s6286_s12  ;;  %3014 = vrot.lane.b32.xlu1 %v3010_v56, %s6287_s2 }
 0xa07   : > { %3018 = vrot.lane.b32.xlu0 %v3010_v56, %s6288_s27  ;;  %3033 = vrot.lane.b32.xlu1 %v3011_v53, %s6288_s27 }
 0xa08   : > { %5498 = vmatmul.mubr.msk.bf16.vlgmr.msra.gmra.mxu0 %vm1088_vm1, %v3010_v56 }
 0xa09   : > { %5509 = vmatprep.mubr.msk.bf16.mxu0 %vm6285_vm0, %v6284_v2 }
 0xa0b   : > { %3020 = vrot.lane.b32.xlu0 %v3010_v56, %s6289_s29  ;;  %3035 = vrot.lane.b32.xlu1 %v3011_v53, %s6289_s29 }
 0xa0f   : > { %3022 = vrot.lane.b32.xlu0 %v3010_v56, %s6290_s18  ;;  %3037 = vrot.lane.b32.xlu1 %v3011_v53, %s6290_s18 }
 0xa13   : > { %3024 = vrot.lane.b32.xlu0 %v3010_v56, %s6291_s21  ;;  %3039 = vrot.lane.b32.xlu1 %v3011_v53, %s6291_s21 }
 0xa17   : > { %3041 = vrot.lane.b32.xlu1 %v3011_v53, %s6292_s22 }
 0xa1b   : > { %3026 = vrot.lane.b32.xlu1 %v3010_v56, %s6292_s22 }
 0xa1f   : > { %3044 = vrot.lane.b32.xlu1 %v6932_v59, %s6287_s2 }
 0xa71   : > { %v3032_v60 = vpop.permute.xlu0 %3031  ;;  %v3030_v61 = vpop.permute.xlu1 %3029 }
 0xa72   : > { %v3154_v62 = vsel %vm1088_vm1, %v3032_v60, 0  ;;  %v3108_v25 = vsel %vm1088_vm1, %v3030_v61, 0 }
 0xa73   : > { %5502 = vmatpush3.bf16.xpose.msra.mxu1 %v3108_v25  ;;  %5508 = vmatpush3.bf16.xpose.msra.mxu0 %v3154_v62 }
 0xa74   : > { %5513 = vmatprep.subr.bf16.mxu1 %v6284_v2  ;;  %5519 = vmatprep.subr.bf16.mxu0 %v6284_v2 }
 0xa75   : > { %v3017_v35 = vpop.permute.xlu0 %3016  ;;  %v3015_v63 = vpop.permute.xlu1 %3014 }
 0xa79   : > { %v3034_v0 = vpop.permute.xlu1 %3033  ;;  %v3019_v4 = vpop.permute.xlu0 %3018 }
 0xa7a   : > { %v3200_v3 = vsel %vm1088_vm1, %v3034_v0, 0  ;;  %5504 = vmatmul.mubr.msk.bf16.vlgmr.msra.gmra.mxu1 %vm1088_vm1, %v3015_v63  ;;  %5510 = vmatmul.mubr.msk.bf16.vlgmr.msra.gmra.mxu0 %vm1088_vm1, %v3017_v35 }
 0xa7b   : > { %5514 = vmatpush3.bf16.xpose.msra.mxu1 %v3200_v3  ;;  %5515 = vmatprep.mubr.msk.bf16.mxu1 %vm6285_vm0, %v6284_v2 }
 0xa7c   : > { %5525 = vmatprep.subr.bf16.mxu1 %v6284_v2  ;;  %5521 = vmatprep.mubr.msk.bf16.mxu0 %vm6285_vm0, %v6284_v2 }
 0xa7d   : > { %v3036_v5 = vpop.permute.xlu1 %3035  ;;  %v3021_v7 = vpop.permute.xlu0 %3020 }
 0xa7e   : > { %v3246_v6 = vsel %vm1088_vm1, %v3036_v5, 0 }
 0xa7f   : > { %5520 = vmatpush3.bf16.xpose.msra.mxu0 %v3246_v6 }
 0xa80   : > { %5531 = vmatprep.subr.bf16.mxu0 %v6284_v2 }
 0xa81   : > { %v3038_v8 = vpop.permute.xlu1 %3037  ;;  %v3023_v12 = vpop.permute.xlu0 %3022 }
 0xa82   : > { %v3292_v9 = vsel %vm1088_vm1, %v3038_v8, 0  ;;  %5516 = vmatmul.mubr.msk.bf16.vlgmr.msra.gmra.mxu1 %vm1088_vm1, %v3019_v4 }
 0xa83   : > { %5526 = vmatpush3.bf16.xpose.msra.mxu1 %v3292_v9  ;;  %5527 = vmatprep.mubr.msk.bf16.mxu1 %vm6285_vm0, %v6284_v2 }
 0xa84   : > { %5537 = vmatprep.subr.bf16.mxu1 %v6284_v2 }
 0xa85   : > { %v3040_v10 = vpop.permute.xlu1 %3039  ;;  %v3025_v16 = vpop.permute.xlu0 %3024 }
 0xa86   : > { %v3338_v11 = vsel %vm1088_vm1, %v3040_v10, 0  ;;  %5522 = vmatmul.mubr.msk.bf16.vlgmr.msra.gmra.mxu0 %vm1088_vm1, %v3021_v7 }
 0xa87   : > { %5532 = vmatpush3.bf16.xpose.msra.mxu0 %v3338_v11  ;;  %5533 = vmatprep.mubr.msk.bf16.mxu0 %vm6285_vm0, %v6284_v2 }
 0xa88   : > { %5543 = vmatprep.subr.bf16.mxu0 %v6284_v2 }
 0xa89   : > { %v3042_v14 = vpop.permute.xlu1 %3041 }
 0xa8a   : > { %v3384_v15 = vsel %vm1088_vm1, %v3042_v14, 0  ;;  %5528 = vmatmul.mubr.msk.bf16.vlgmr.msra.gmra.mxu1 %vm1088_vm1, %v3023_v12 }
 0xa8b   : > { %5538 = vmatpush3.bf16.xpose.msra.mxu1 %v3384_v15  ;;  %5539 = vmatprep.mubr.msk.bf16.mxu1 %vm6285_vm0, %v6284_v2 }
 0xa8c   : > { %5549 = vmatprep.subr.bf16.mxu1 %v6284_v2 }
 0xa8d   : > { %v3027_v17 = vpop.permute.xlu1 %3026 }
 0xa8e   : > { %5534 = vmatmul.mubr.msk.bf16.vlgmr.msra.gmra.mxu0 %vm1088_vm1, %v3025_v16 }
 0xa8f   : > { %5544 = vmatpush3.bf16.msra.mxu0 %v3526_v13  ;;  %5545 = vmatprep.mubr.msk.bf16.mxu0 %vm6285_vm0, %v6284_v2 }
 0xa90   : > { %5555 = vmatprep.subr.bf16.mxu0 %v6284_v2 }
 0xa91   : > { %v3045_v18 = vpop.permute.xlu1 %3044 }
 0xa92   : > { %v3572_v19 = vsel %vm1557_vm2, %v3045_v18, 0  ;;  %5540 = vmatmul.mubr.msk.bf16.vlgmr.msra.gmra.mxu1 %vm1088_vm1, %v3027_v17 }
 0xa93   : > { %5550 = vmatpush3.bf16.msra.mxu1 %v3572_v19  ;;  %5551 = vmatprep.mubr.msk.bf16.mxu1 %vm6285_vm0, %v6284_v2 }
 0xa94   : > { %5561 = vmatprep.subr.bf16.mxu1 %v6284_v2 }
 0xac8   : > { %v3098_v20 = vpop.f32.mrf.mxu0 }
 0xac9   : > { %v3099_v21 = vadd.f32 %v3098_v20, %v6717_v22 }
 0xaca   : > { %v5499_v23 = vpop.f32.mrf.mxu0 }
 0xacb   : > { %v3426_v24 = vsel %vm1457_vm3, %v3099_v21, -inf }
 0xacc   : > { %3427 = vmax.xlane.f32.xlu0 %v3426_v24  ;;  %v3101_v26 = vpop.f32.mrf.mxu0 }
 0xace   : > { %v5500_v27 = vpop.f32.mrf.mxu0 }
 0xb3a   : > { %v3144_v28 = vpop.f32.mrf.mxu1  ;;  %v3190_v29 = vpop.f32.mrf.mxu0 }
 0xb3b   : > { %v3145_v30 = vadd.f32 %v3144_v28, %v6717_v22  ;;  %v3191_v33 = vadd.f32 %v3190_v29, %v6717_v22 }
 0xb3c   : > { %v5505_v34 = vpop.f32.mrf.mxu1  ;;  %v5511_v32 = vpop.f32.mrf.mxu0 }
 0xb3d   : > { %v3429_v39 = vsel %vm1457_vm3, %v3145_v30, -inf  ;;  %v3432_v31 = vsel %vm1457_vm3, %v3191_v33, -inf }
 0xb3e   : > { %3430 = vmax.xlane.f32.xlu1 %v3429_v39  ;;  %v3147_v37 = vpop.f32.mrf.mxu1  ;;  %3433 = vmax.xlane.f32.xlu0 %v3432_v31  ;;  %v3193_v40 = vpop.f32.mrf.mxu0 }
 0xb40   : > { %v5506_v41 = vpop.f32.mrf.mxu1  ;;  %v5512_v42 = vpop.f32.mrf.mxu0 }
 0xb42   : > { %v3236_v43 = vpop.f32.mrf.mxu1 }
 0xb43   : > { %v3237_v44 = vadd.f32 %v3236_v43, %v6717_v22 }
 0xb44   : > { %v5517_v45 = vpop.f32.mrf.mxu1 }
 0xb45   : > { %v3435_v46 = vsel %vm1457_vm3, %v3237_v44, -inf }
 0xb46   : > { %v3239_v49 = vpop.f32.mrf.mxu1  ;;  %3436 = vmax.xlane.f32.xlu0 %v3435_v46  ;;  %v3282_v50 = vpop.f32.mrf.mxu0 }
 0xb47   : > { %v3283_v51 = vadd.f32 %v3282_v50, %v6717_v22 }
 0xb48   : > { %v5518_v52 = vpop.f32.mrf.mxu1  ;;  %v5523_v53 = vpop.f32.mrf.mxu0 }
 0xb49   : > { %v3438_v54 = vsel %vm1457_vm3, %v3283_v51, -inf }
 0xb4a   : > { %v3328_v55 = vpop.f32.mrf.mxu1  ;;  %3439 = vmax.xlane.f32.xlu1 %v3438_v54  ;;  %v3285_v47 = vpop.f32.mrf.mxu0 }
 0xb4b   : > { %v6987_v56 = vadd.f32 %v3328_v55, %v6717_v22 }
 0xb4c   : > { %v5524_v57 = vpop.f32.mrf.mxu0  ;;  %v5529_v58 = vpop.f32.mrf.mxu1 }
 0xb4d   : > { %v3441_v60 = vsel %vm1457_vm3, %v6987_v56, -inf }
 0xb4e   : > { %v3331_v61 = vpop.f32.mrf.mxu1  ;;  %3442 = vmax.xlane.f32.xlu0 %v3441_v60  ;;  %v3374_v62 = vpop.f32.mrf.mxu0 }
 0xb4f   : > { %v3375_v25 = vadd.f32 %v3374_v62, %v6717_v22 }
 0xb50   : > { %v5530_v35 = vpop.f32.mrf.mxu1  ;;  %v5535_v63 = vpop.f32.mrf.mxu0 }
 0xb51   : > { %v3444_v0 = vsel %vm1457_vm3, %v3375_v25, -inf }
 0xb52   : > { %v3420_v3 = vpop.f32.mrf.mxu1  ;;  %3445 = vmax.xlane.f32.xlu1 %v3444_v0  ;;  %v3377_v4 = vpop.f32.mrf.mxu0 }
 0xb53   : > { %v3421_v5 = vadd.f32 %v3420_v3, %v6717_v22 }
 0xb54   : > { %v5541_v6 = vpop.f32.mrf.mxu1  ;;  %v5536_v7 = vpop.f32.mrf.mxu0 }
 0xb55   : > { %v3447_v8 = vsel %vm1457_vm3, %v3421_v5, -inf  ;;  %v3428_v11 = vpop.xlane.xlu0 %3427 }
 0xb56   : > { %v3423_v9 = vpop.f32.mrf.mxu1  ;;  %3448 = vmax.xlane.f32.xlu0 %v3447_v8  ;;  %v3450_v12 = vsub.f32 %v3099_v21, %v3428_v11 }
 0xb58   : > { %v5542_v10 = vpop.f32.mrf.mxu1  ;;  %v3458_v14 = vmul.f32 1.442695, %v3450_v12 }
 0xb5a   : > { %5963 = vpow2.f32 %v3458_v14 }
 0xb63   : > { %3048 = vrot.lane.b32.xlu1 %v6932_v59, %s6288_s27  ;;  %s7248_s27 = sld [smem:[#allocation34_spill]] }
 0xb67   : > { %v5964_v15 = vpop.eup %5963 }
 0xb68   : > { %v3474_v22 = vsel %vm1457_vm3, %v5964_v15, 0.0 }
 0xb6c   : > { %3046 = vrot.lane.b32.xlu0 %v6932_v59, %s6286_s12 }
 0xb87   : > { %3475 = vadd.xlane.f32.xlu1 %v3474_v22 }
 0xb98   : > { %3050 = vrot.lane.b32.xlu1 %v6932_v59, %s6289_s29  ;;  %s5150_s29 = sshll.u32 %s6423_s26, 4 }
 0xb99   : > { %s7139_s28 = scalar_lea.hbm %s7249_s8, %s5150_s29 }
 0xbc7   : > { %v3431_v16 = vpop.xlane.xlu1 %3430  ;;  %v3434_v17 = vpop.xlane.xlu0 %3433 }
 0xbc8   : > { %v3451_v13 = vsub.f32 %v3145_v30, %v3431_v16  ;;  %v3452_v18 = vsub.f32 %v3191_v33, %v3434_v17 }
 0xbca   : > { %v3460_v19 = vmul.f32 1.442695, %v3451_v13  ;;  %v3462_v20 = vmul.f32 1.442695, %v3452_v18 }
 0xbcc   : > { %5965 = vpow2.f32 %v3460_v19 }
 0xbcd   : > { %5967 = vpow2.f32 %v3462_v20 }
 0xbcf   : > { %v3437_v23 = vpop.xlane.xlu0 %3436 }
 0xbd0   : > { %v3453_v24 = vsub.f32 %v3237_v44, %v3437_v23 }
 0xbd2   : > { %v3464_v21 = vmul.f32 1.442695, %v3453_v24 }
 0xbd3   : > { %v3440_v26 = vpop.xlane.xlu1 %3439 }
 0xbd4   : > { %5969 = vpow2.f32 %v3464_v21  ;;  %v3454_v27 = vsub.f32 %v3283_v51, %v3440_v26  ;;  %v5875_v26 = vld [vmem:[#allocation11 + $0x40] sm:$0xff]  }
 0xbd6   : > { %v3466_v28 = vmul.f32 1.442695, %v3454_v27 }
 0xbd7   : > { %v3443_v45 = vpop.xlane.xlu0 %3442 }
 0xbd8   : > { %5971 = vpow2.f32 %v3466_v28  ;;  %v3455_v46 = vsub.f32 %v6987_v56, %v3443_v45 }
 0xbd9   : > { %v5966_v29 = vpop.eup %5965 }
 0xbda   : > { %v5968_v34 = vpop.eup %5967  ;;  %v3477_v32 = vsel %vm1457_vm3, %v5966_v29, 0.0  ;;  %v3468_v50 = vmul.f32 1.442695, %v3455_v46 }
 0xbdb   : > { %3478 = vadd.xlane.f32.xlu0 %v3477_v32  ;;  %v3480_v30 = vsel %vm1457_vm3, %v5968_v34, 0.0  ;;  %v3446_v33 = vpop.xlane.xlu1 %3445 }
 0xbdc   : > { %3481 = vadd.xlane.f32.xlu1 %v3480_v30  ;;  %v3456_v39 = vsub.f32 %v3375_v25, %v3446_v33 }
 0xbde   : > { %v3470_v31 = vmul.f32 1.442695, %v3456_v39 }
 0xbdf   : > { %v3449_v49 = vpop.xlane.xlu0 %3448  ;;  %v3049_v53 = vpop.permute.xlu1 %3048 }
 0xbe0   : > { %5973 = vpow2.f32 %v3470_v31  ;;  %v3457_v51 = vsub.f32 %v3421_v5, %v3449_v49  ;;  %v3664_v11 = vsel %vm1557_vm2, %v3049_v53, 0 }
 0xbe1   : > { %v7004_v37 = vpop.eup %5969  ;;  %5975 = vpow2.f32 %v3468_v50 }
 0xbe2   : > { %v3483_v40 = vsel %vm1457_vm3, %v7004_v37, 0.0  ;;  %v3472_v52 = vmul.f32 1.442695, %v3457_v51  ;;  %v5878_v51 = vld [vmem:[#allocation11 + $0x58] sm:$0xff]  }
 0xbe3   : > { %3484 = vadd.xlane.f32.xlu0 %v3483_v40  ;;  %v3047_v61 = vpop.permute.xlu0 %3046  ;;  %v5876_v40 = vld [vmem:[#allocation11 + $0x48] sm:$0xff]  }
 0xbe4   : > { %5977 = vpow2.f32 %v3472_v52  ;;  %v3618_v25 = vsel %vm1557_vm2, %v3047_v61, 0 }
 0xbe5   : > { %v7008_v41 = vpop.eup %5971 }
 0xbe6   : > { %v3486_v42 = vsel %vm1457_vm3, %v7008_v41, 0.0 }
 0xbe7   : > { %3487 = vadd.xlane.f32.xlu1 %v3486_v42 }
 0xbed   : > { %v7012_v43 = vpop.eup %5973 }
 0xbee   : > { %v3492_v44 = vsel %vm1457_vm3, %v7012_v43, 0.0  ;;  %v7021_v55 = vpop.eup %5975 }
 0xbef   : > { %3493 = vadd.xlane.f32.xlu1 %v3492_v44  ;;  %v3489_v47 = vsel %vm1457_vm3, %v7021_v55, 0.0 }
 0xbf1   : > { %v7025_v57 = vpop.eup %5977 }
 0xbf2   : > { %v3495_v56 = vsel %vm1457_vm3, %v7025_v57, 0.0 }
 0xbf9   : > { %3052 = vrot.lane.b32.xlu0 %v6932_v59, %s6290_s18  ;;  %s751_s18 = scalar_lea.vmem [#allocation15], %s6568_s14 }
 0xc00   : > { %3054 = vrot.lane.b32.xlu1 %v6932_v59, %s6291_s21  ;;  %s4794_s21 = sshll.u32 %s751_s18, 4  ;;  %s4795_s21 = int_to_ptr.vmem [resolvable:$true] %s4794_s21 }
 0xc01   : > { %s6192_s20 = scalar_lea.vmem %s4795_s21, 16 }
 0xc02   : > { %p6193_p13 = scmp.ne.s32.totalorder %s4795_s21, %s6192_s20 }
 0xc04   : > { %p6194_p2 = pnand %p6193_p13, %p7250_p0 }
 0xc06   : > { %p6195_p4 = pneg %p6194_p2 }
 0xc10   : > { %v3476_v54 = vpop.xlane.xlu1 %3475 }
 0xc11   : > { %5979 = vrcp.f32 %v3476_v54  ;;  %v5879_v54 = vld [vmem:[#allocation11 + $0x60] sm:$0xff]  }
 0xc14   : > { %v3051_v35 = vpop.permute.xlu1 %3050 }
 0xc18   : > { %3490 = vadd.xlane.f32.xlu0 %v3489_v47 }
 0xc1c   : > { %3496 = vadd.xlane.f32.xlu0 %v3495_v56 }
 0xc1e   : > { %v5980_v58 = vpop.eup %5979 }
 0xc1f   : > { %v3506_v60 = vmul.f32 %v5980_v58, %v5964_v15 }
 0xc21   : > { %v3514_v62 = vpack.c.bf16 %v3506_v60, %v3506_v60 }
 0xc23   : > { %5546 = vmatmul.mubr.msk.bf16.vlgmr.msra.gmra.mxu0 %vm1457_vm3, %v3514_v62 }
 0xc24   : > { %5556 = vmatpush3.bf16.msra.mxu0 %v3618_v25  ;;  %5557 = vmatprep.mubr.msk.bf16.mxu0 %vm6285_vm0, %v6284_v2  ;;  %v5881_v25 = vld [vmem:[#allocation11 + $0x68] sm:$0xff]  }
 0xc25   : > { %5567 = vmatprep.subr.bf16.mxu0 %v6284_v2 }
 0xc32   : > { %3056 = vrot.lane.b32.xlu0 %v6932_v59, %s6292_s22  ;;  %v3710_v59 = vsel %vm1557_vm2, %v3051_v35, 0 }
 0xc64   : > { %v3479_v63 = vpop.xlane.xlu0 %3478 }
 0xc65   : > { %5981 = vrcp.f32 %v3479_v63  ;;  %v3482_v0 = vpop.xlane.xlu1 %3481 }
 0xc66   : > { %5983 = vrcp.f32 %v3482_v0 }
 0xc6c   : > { %v3485_v3 = vpop.xlane.xlu0 %3484 }
 0xc6d   : > { %5985 = vrcp.f32 %v3485_v3 }
 0xc70   : > { %v3488_v4 = vpop.xlane.xlu1 %3487  ;;  %v3053_v22 = vpop.permute.xlu0 %3052 }
 0xc71   : > { %5987 = vrcp.f32 %v3488_v4  ;;  %v3756_v13 = vsel %vm1557_vm2, %v3053_v22, 0  ;;  %v5880_v4 = vld [vmem:[#allocation11 + $0x70] sm:$0xff]   ;;  %v5882_v22 = vld [vmem:[#allocation11 + $0x78] sm:$0xff]  }
 0xc72   : > { %v5982_v5 = vpop.eup %5981 }
 0xc73   : > { %v5984_v6 = vpop.eup %5983  ;;  %v3507_v7 = vmul.f32 %v5982_v5, %v5966_v29 }
 0xc74   : > { %v3508_v8 = vmul.f32 %v5984_v6, %v5968_v34 }
 0xc75   : > { %v3515_v9 = vpack.c.bf16 %v3507_v7, %v3507_v7 }
 0xc76   : > { %v3516_v10 = vpack.c.bf16 %v3508_v8, %v3508_v8 }
 0xc77   : > { %5552 = vmatmul.mubr.msk.bf16.vlgmr.msra.gmra.mxu1 %vm1457_vm3, %v3515_v9 }
 0xc78   : > { %5558 = vmatmul.mubr.msk.bf16.vlgmr.msra.gmra.mxu0 %vm1457_vm3, %v3516_v10  ;;  %5562 = vmatpush3.bf16.msra.mxu1 %v3664_v11  ;;  %v3494_v12 = vpop.xlane.xlu1 %3493 }
 0xc79   : > { %5568 = vmatpush3.bf16.msra.mxu0 %v3710_v59  ;;  %5989 = vrcp.f32 %v3494_v12  ;;  %5563 = vmatprep.mubr.msk.bf16.mxu1 %vm6285_vm0, %v6284_v2 }
 0xc7a   : > { %v5986_v14 = vpop.eup %5985  ;;  %5573 = vmatprep.subr.bf16.mxu1 %v6284_v2  ;;  %5569 = vmatprep.mubr.msk.bf16.mxu0 %vm6285_vm0, %v6284_v2 }
 0xc7b   : > { %v3509_v15 = vmul.f32 %v5986_v14, %v7004_v37  ;;  %5579 = vmatprep.subr.bf16.mxu0 %v6284_v2 }
 0xc7c   : > { %v3055_v19 = vpop.permute.xlu1 %3054 }
 0xc7d   : > { %v3517_v16 = vpack.c.bf16 %v3509_v15, %v3509_v15  ;;  %v3802_v23 = vsel %vm1557_vm2, %v3055_v19, 0 }
 0xc7e   : > { %v5988_v17 = vpop.eup %5987 }
 0xc7f   : > { %5564 = vmatmul.mubr.msk.bf16.vlgmr.msra.gmra.mxu1 %vm1457_vm3, %v3517_v16  ;;  %v3510_v18 = vmul.f32 %v5988_v17, %v7008_v41 }
 0xc80   : > { %5574 = vmatpush3.bf16.msra.mxu1 %v3756_v13  ;;  %5575 = vmatprep.mubr.msk.bf16.mxu1 %vm6285_vm0, %v6284_v2 }
 0xc81   : > { %v3518_v20 = vpack.c.bf16 %v3510_v18, %v3510_v18  ;;  %5585 = vmatprep.subr.bf16.mxu1 %v6284_v2 }
 0xc83   : > { %5570 = vmatmul.mubr.msk.bf16.vlgmr.msra.gmra.mxu0 %vm1457_vm3, %v3518_v20 }
 0xc84   : > { %5580 = vmatpush3.bf16.msra.mxu0 %v3802_v23  ;;  %5581 = vmatprep.mubr.msk.bf16.mxu0 %vm6285_vm0, %v6284_v2 }
 0xc85   : > { %5591 = vmatprep.subr.bf16.mxu0 %v6284_v2 }
 0xc86   : > { %v5990_v24 = vpop.eup %5989 }
 0xc87   : > { %v3512_v21 = vmul.f32 %v5990_v24, %v7012_v43  ;;  %v5877_v43 = vld [vmem:[#allocation11 + $0x50] sm:$0xff]  }
 0xc89   : > { %v3520_v27 = vpack.c.bf16 %v3512_v21, %v3512_v21 }
 0xc8b   : > { %5582 = vmatmul.mubr.msk.bf16.vlgmr.msra.gmra.mxu0 %vm1457_vm3, %v3520_v27 }
 0xc8c   : > { %5592 = vmatpush3.bf16.msra.mxu0 %v5875_v26  ;;  %5593 = vmatprep.mubr.msk.bf16.mxu0 %vm6285_vm0, %v6284_v2 }
 0xc8d   : > { %5603 = vmatprep.subr.bf16.mxu0 %v6284_v2 }
 0xca1   : > { %v3491_v28 = vpop.xlane.xlu0 %3490 }
 0xca2   : > { %5991 = vrcp.f32 %v3491_v28 }
 0xca5   : > { %v3497_v29 = vpop.xlane.xlu0 %3496 }
 0xca6   : > { %5993 = vrcp.f32 %v3497_v29  ;;  %v5883_v29 = vld [vmem:[#allocation12 + $0xf0] ss:$8 sps:$4 sm:$0xff]  }
 0xca9   : > { %v3057_v30 = vpop.permute.xlu0 %3056 }
 0xcaa   : > { %v3848_v31 = vsel %vm1557_vm2, %v3057_v30, 0 }
 0xcaf   : > { %v5992_v34 = vpop.eup %5991 }
 0xcb0   : > { %v3511_v32 = vmul.f32 %v5992_v34, %v7021_v55  ;;  %v5885_v34 = vld [vmem:[#allocation12 + $0xf4] ss:$8 sps:$4 sm:$0xff]  }
 0xcb2   : > { %v3519_v33 = vpack.c.bf16 %v3511_v32, %v3511_v32 }
 0xcb3   : > { %v5994_v39 = vpop.eup %5993 }
 0xcb4   : > { %5576 = vmatmul.mubr.msk.bf16.vlgmr.msra.gmra.mxu1 %vm1457_vm3, %v3519_v33  ;;  %v3513_v37 = vmul.f32 %v5994_v39, %v7025_v57 }
 0xcb5   : > { %5586 = vmatpush3.bf16.msra.mxu1 %v3848_v31  ;;  %5587 = vmatprep.mubr.msk.bf16.mxu1 %vm6285_vm0, %v6284_v2 }
 0xcb6   : > { %5597 = vmatprep.subr.bf16.mxu1 %v6284_v2  ;;  %v3521_v41 = vpack.c.bf16 %v3513_v37, %v3513_v37 }
 0xcbc   : > { %5588 = vmatmul.mubr.msk.bf16.vlgmr.msra.gmra.mxu1 %vm1457_vm3, %v3521_v41 }
 0xcbd   : > { %5598 = vmatpush3.bf16.msra.mxu1 %v5876_v40  ;;  %5599 = vmatprep.mubr.msk.bf16.mxu1 %vm6285_vm0, %v6284_v2 }
 0xcbe   : > { %5609 = vmatprep.subr.bf16.mxu1 %v6284_v2 }
 0xce3   : > { %v3562_v42 = vpop.f32.mrf.mxu0 }
 0xce4   : > { %v3890_v44 = vpack.c.bf16 %v3562_v42, %v3562_v42 }
 0xce5   : > { %v5547_v45 = vpop.f32.mrf.mxu0 }
 0xce6   : > { %5594 = vmatmul.mubr.msk.bf16.vlgmr.msra.gmra.mxu0 %vm1088_vm1, %v3890_v44 }
 0xce7   : > { %v3565_v46 = vpop.f32.mrf.mxu0  ;;  %5604 = vmatpush3.bf16.msra.mxu0 %v5877_v43  ;;  %5605 = vmatprep.mubr.msk.bf16.mxu0 %vm6285_vm0, %v6284_v2 }
 0xce8   : > { %5615 = vmatprep.subr.bf16.mxu0 %v6284_v2 }
 0xce9   : > { %v5548_v49 = vpop.f32.mrf.mxu0 }
 0xd37   : > { %v3608_v50 = vpop.f32.mrf.mxu1 }
 0xd38   : > { %v3891_v52 = vpack.c.bf16 %v3608_v50, %v3608_v50  ;;  %v3654_v53 = vpop.f32.mrf.mxu0 }
 0xd39   : > { %v3892_v55 = vpack.c.bf16 %v3654_v53, %v3654_v53  ;;  %v5553_v47 = vpop.f32.mrf.mxu1 }
 0xd3a   : > { %v5559_v57 = vpop.f32.mrf.mxu0  ;;  %5600 = vmatmul.mubr.msk.bf16.vlgmr.msra.gmra.mxu1 %vm1088_vm1, %v3891_v52 }
 0xd3b   : > { %5606 = vmatmul.mubr.msk.bf16.vlgmr.msra.gmra.mxu0 %vm1088_vm1, %v3892_v55  ;;  %v3611_v56 = vpop.f32.mrf.mxu1  ;;  %5610 = vmatpush3.bf16.msra.mxu1 %v5878_v51 }
 0xd3c   : > { %v3657_v58 = vpop.f32.mrf.mxu0  ;;  %5611 = vmatprep.mubr.msk.bf16.mxu1 %vm6285_vm0, %v6284_v2  ;;  %5616 = vmatpush3.bf16.msra.mxu0 %v5879_v54 }
 0xd3d   : > { %v5554_v60 = vpop.f32.mrf.mxu1  ;;  %5617 = vmatprep.mubr.msk.bf16.mxu0 %vm6285_vm0, %v6284_v2  ;;  %5627 = vmatprep.subr.bf16.mxu0 %v6284_v2 }
 0xd3e   : > { %v5560_v61 = vpop.f32.mrf.mxu0  ;;  %5621 = vmatprep.subr.bf16.mxu1 %v6284_v2 }
 0xd3f   : > { %v3700_v62 = vpop.f32.mrf.mxu1 }
 0xd40   : > { %v3893_v35 = vpack.c.bf16 %v3700_v62, %v3700_v62 }
 0xd41   : > { %v5565_v63 = vpop.f32.mrf.mxu1 }
 0xd42   : > { %5612 = vmatmul.mubr.msk.bf16.vlgmr.msra.gmra.mxu1 %vm1088_vm1, %v3893_v35 }
 0xd43   : > { %v3703_v0 = vpop.f32.mrf.mxu1  ;;  %v3746_v3 = vpop.f32.mrf.mxu0  ;;  %5622 = vmatpush3.bf16.msra.mxu1 %v5881_v25  ;;  %5623 = vmatprep.mubr.msk.bf16.mxu1 %vm6285_vm0, %v6284_v2 }
 0xd44   : > { %v3894_v5 = vpack.c.bf16 %v3746_v3, %v3746_v3  ;;  %5633 = vmatprep.subr.bf16.mxu1 %v6284_v2  ;;  %v5108_v0 = vld [vmem:[%s7185_s9 + $0x1] ss:$0 sm:$0xff] }
 0xd45   : > { %v5566_v6 = vpop.f32.mrf.mxu1  ;;  %v5571_v7 = vpop.f32.mrf.mxu0 }
 0xd46   : > { %5618 = vmatmul.mubr.msk.bf16.vlgmr.msra.gmra.mxu0 %vm1088_vm1, %v3894_v5 }
 0xd47   : > { %v3749_v8 = vpop.f32.mrf.mxu0  ;;  %5628 = vmatpush3.bf16.msra.mxu0 %v5880_v4  ;;  %5629 = vmatprep.mubr.msk.bf16.mxu0 %vm6285_vm0, %v6284_v2 }
 0xd48   : > { %4457 = vmatprep.subr.bf16.mxu0 %v5885_v34 }
 0xd49   : > { %v5572_v9 = vpop.f32.mrf.mxu0 }
 0xd4b   : > { %v3838_v10 = vpop.f32.mrf.mxu0 }
 0xd4c   : > { %v3896_v11 = vpack.c.bf16 %v3838_v10, %v3838_v10  ;;  %v5888_v10 = vld [vmem:[#allocation12 + $0xe4] ss:$8 sps:$4 sm:$0xff]  }
 0xd4d   : > { %v5583_v59 = vpop.f32.mrf.mxu0 }
 0xd4e   : > { %5630 = vmatmul.mubr.msk.bf16.vlgmr.msra.gmra.mxu0 %vm1088_vm1, %v3896_v11  ;;  %v5886_v11 = vld [vmem:[#allocation12 + $0xe0] ss:$8 sps:$4 sm:$0xff]   ;;  %v5891_v59 = vld [vmem:[#allocation12 + $0xd4] ss:$8 sps:$4 sm:$0xff]  }
 0xd4f   : > { %v3841_v12 = vpop.f32.mrf.mxu0  ;;  %4489 = vmatprep.mubr.bf16.mxu0 %v6283_v1  ;;  %4458 = vmatpush1.bf16.msra.mxu0 %v5883_v29 }
 0xd50   : > { %4459 = vmatprep.subr.bf16.mxu0 %v5888_v10  ;;  %v5889_v12 = vld [vmem:[#allocation12 + $0xd0] ss:$8 sps:$4 sm:$0xff]  }
 0xd51   : > { %v5584_v14 = vpop.f32.mrf.mxu0 }
 0xd52   : > { %v5894_v14 = vld [vmem:[#allocation12 + $0xc4] ss:$8 sps:$4 sm:$0xff]  }
 0xd53   : > { %4460 = vmatpush1.bf16.msra.mxu0 %v5886_v11 }
 0xd54   : > { %4461 = vmatprep.subr.bf16.mxu0 %v5891_v59 }
 0xd57   : > { %4462 = vmatpush1.bf16.msra.mxu0 %v5889_v12 }
 0xd58   : > { %4463 = vmatprep.subr.bf16.mxu0 %v5894_v14 }
 0xd74   : > { %v3792_v15 = vpop.f32.mrf.mxu1 }
 0xd75   : > { %v3895_v16 = vpack.c.bf16 %v3792_v15, %v3792_v15  ;;  %v5892_v15 = vld [vmem:[#allocation12 + $0xc0] ss:$8 sps:$4 sm:$0xff]  }
 0xd76   : > { %v5577_v17 = vpop.f32.mrf.mxu1  ;;  %4464 = vmatpush1.bf16.msra.mxu0 %v5892_v15 }
 0xd77   : > { %5624 = vmatmul.mubr.msk.bf16.vlgmr.msra.gmra.mxu1 %vm1088_vm1, %v3895_v16  ;;  %v5900_v16 = vld [vmem:[#allocation12 + $0xa4] ss:$8 sps:$4 sm:$0xff]   ;;  %v5898_v17 = vld [vmem:[#allocation12 + $0xa0] ss:$8 sps:$4 sm:$0xff]  }
 0xd78   : > { %v3795_v13 = vpop.f32.mrf.mxu1  ;;  %5634 = vmatpush3.bf16.msra.mxu1 %v5882_v22  ;;  %5635 = vmatprep.mubr.msk.bf16.mxu1 %vm6285_vm0, %v6284_v2  ;;  %v5895_v22 = vld [vmem:[#allocation12 + $0xb0] ss:$8 sps:$4 sm:$0xff]  }
 0xd79   : > { %v5903_v13 = vld [vmem:[#allocation12 + $0x94] ss:$8 sps:$4 sm:$0xff]  }
 0xd7a   : > { %v5578_v18 = vpop.f32.mrf.mxu1 }
 0xd7b   : > { %v5901_v18 = vld [vmem:[#allocation12 + $0x90] ss:$8 sps:$4 sm:$0xff]  }
 0xd7c   : > { %v3884_v19 = vpop.f32.mrf.mxu1 }
 0xd7d   : > { %v3897_v20 = vpack.c.bf16 %v3884_v19, %v3884_v19  ;;  %v5906_v19 = vld [vmem:[#allocation12 + $0x84] ss:$8 sps:$4 sm:$0xff]  }
 0xd7e   : > { %v5589_v23 = vpop.f32.mrf.mxu1 }
 0xd7f   : > { %5636 = vmatmul.mubr.msk.bf16.vlgmr.msra.gmra.mxu1 %vm1088_vm1, %v3897_v20  ;;  %v5904_v20 = vld [vmem:[#allocation12 + $0x80] ss:$8 sps:$4 sm:$0xff]  }
 0xd80   : > { %v3887_v24 = vpop.f32.mrf.mxu1 }
 0xd82   : > { %v5590_v1 = vpop.f32.mrf.mxu1 }
 0xda6   : > { %v3958_v21 = vpop.f32.mrf.mxu0 }
 0xda8   : > { %v5595_v26 = vpop.f32.mrf.mxu0 }
 0xdaa   : > { %v3961_v27 = vpop.f32.mrf.mxu0 }
 0xdac   : > { %v5596_v28 = vpop.f32.mrf.mxu0 }
 0xdfa   : > { %v4007_v32 = vpop.f32.mrf.mxu1 }
 0xdfb   : > { %v4056_v30 = vpop.f32.mrf.mxu0  ;;  %v4307_v55 = vadd.f32 %v4007_v32, %v3958_v21  ;;  %v5109_v32 = vld [vmem:[%s7186_s10 + $0x1] ss:$0 sm:$0xff] }
 0xdfc   : > { %v5601_v33 = vpop.f32.mrf.mxu1 }
 0xdfd   : > { %v5607_v2 = vpop.f32.mrf.mxu0  ;;  %v4308_v47 = vadd.f32 %v4307_v55, %v4056_v30  ;;  %v5110_v33 = vld [vmem:[%s7187_s11 + $0x1] ss:$0 sm:$0xff]  ;;  %v5921_v55 = vld [vmem:[#allocation14 + $0xc0] sm:$0xff]  }
 0xdfe   : > { %v4010_v39 = vpop.f32.mrf.mxu1 }
 0xdff   : > { %v4059_v31 = vpop.f32.mrf.mxu0 }
 0xe00   : > { %v5602_v37 = vpop.f32.mrf.mxu1 }
 0xe01   : > { %v5608_v40 = vpop.f32.mrf.mxu0  ;;  %v5907_v37 = vld [vmem:[#allocation14 + $0xf8] sm:$0xff]  }
 0xe02   : > { %v4105_v41 = vpop.f32.mrf.mxu1  ;;  %v5908_v40 = vld [vmem:[#allocation14 + $0xb8] sm:$0xff]   ;;  %5289 = vmatprep.subr.bf16.mxu1 %v5907_v37 }
 0xe03   : > { %v4309_v57 = vadd.f32 %v4308_v47, %v4105_v41  ;;  %5290 = vmatpush3.bf16.msra.mxu1 %v5908_v40  ;;  %v5909_v41 = vld [vmem:[#allocation14 + $0xf0] sm:$0xff]   ;;  %v5922_v47 = vld [vmem:[#allocation14 + $0x80] sm:$0xff]   ;;  %v5145_v37 = vld [vmem:[%s7192_s16] ss:$0 sm:$0xff] }
 0xe04   : > { %v5613_v42 = vpop.f32.mrf.mxu1  ;;  %5291 = vmatprep.subr.bf16.mxu1 %v5909_v41 }
 0xe05   : > { %v5910_v42 = vld [vmem:[#allocation14 + $0xb0] sm:$0xff]  }
 0xe06   : > { %v4108_v43 = vpop.f32.mrf.mxu1  ;;  %v4154_v44 = vpop.f32.mrf.mxu0 }
 0xe07   : > { %v4310_v58 = vadd.f32 %v4309_v57, %v4154_v44  ;;  %5292 = vmatpush3.bf16.msra.mxu1 %v5910_v42  ;;  %v5911_v43 = vld [vmem:[#allocation14 + $0xe8] sm:$0xff]   ;;  %v5111_v57 = vld [vmem:[%s7189_s13 + $0x1] ss:$2 sm:$0x3]  ;;  %v5147_v42 = vld [vmem:[%s7248_s27] ss:$0 sm:$0xff] }
 0xe08   : > { %v5614_v45 = vpop.f32.mrf.mxu1  ;;  %v5619_v46 = vpop.f32.mrf.mxu0  ;;  %v5912_v44 = vld [vmem:[#allocation14 + $0xa8] sm:$0xff]   ;;  %5293 = vmatprep.subr.bf16.mxu1 %v5911_v43 }
 0xe09   : > { %v5913_v45 = vld [vmem:[#allocation14 + $0xe0] sm:$0xff]  }
 0xe0a   : > { %v4157_v49 = vpop.f32.mrf.mxu0  ;;  %v5914_v46 = vld [vmem:[#allocation14 + $0xa0] sm:$0xff]  }
 0xe0b   : > { %5294 = vmatpush3.bf16.msra.mxu1 %v5912_v44  ;;  %v5915_v49 = vld [vmem:[#allocation14 + $0xd8] sm:$0xff]  }
 0xe0c   : > { %v5620_v50 = vpop.f32.mrf.mxu0  ;;  %5295 = vmatprep.subr.bf16.mxu1 %v5913_v45  ;;  %v5148_v45 = vld [vmem:[#allocation2] ss:$0 sm:$0xff] }
 0xe0d   : > { %v5916_v50 = vld [vmem:[#allocation14 + $0x98] sm:$0xff]  }
 0xe0e   : > { %v4252_v51 = vpop.f32.mrf.mxu0 }
 0xe0f   : > { %5296 = vmatpush3.bf16.msra.mxu1 %v5914_v46 }
 0xe10   : > { %v5631_v52 = vpop.f32.mrf.mxu0  ;;  %5297 = vmatprep.subr.bf16.mxu1 %v5915_v49 }
 0xe11   : > { %v5918_v52 = vld [vmem:[#allocation14 + $0x90] sm:$0xff]  }
 0xe12   : > { %v4255_v53 = vpop.f32.mrf.mxu0 }
 0xe13   : > { %5298 = vmatpush3.bf16.msra.mxu1 %v5916_v50  ;;  %v5919_v53 = vld [vmem:[#allocation14 + $0xc8] sm:$0xff]  }
 0xe14   : > { %v5632_v54 = vpop.f32.mrf.mxu0 }
 0xe15   : > { %v5920_v54 = vld [vmem:[#allocation14 + $0x88] sm:$0xff]  }
 0xe37   : > { %v4203_v56 = vpop.f32.mrf.mxu1 }
 0xe38   : > { %v4311_v61 = vadd.f32 %v4310_v58, %v4203_v56  ;;  %v4370_v56 = vrot.slane %v5111_v57, %v6634_v36  ;;  %v4374_v58 = vrot.slane %v5111_v57, %v6642_v38 }
 0xe39   : > { %v5625_v60 = vpop.f32.mrf.mxu1 }
 0xe3a   : > { %v4312_v35 = vadd.f32 %v4311_v61, %v4252_v51  ;;  %v5917_v51 = vld [vmem:[#allocation14 + $0xd0] sm:$0xff]  }
 0xe3b   : > { %v4206_v62 = vpop.f32.mrf.mxu1  ;;  %5299 = vmatprep.subr.bf16.mxu1 %v5917_v51 }
 0xe3c   : > { %5300 = vmatpush3.bf16.msra.mxu1 %v5918_v52 }
 0xe3d   : > { %v5626_v25 = vpop.f32.mrf.mxu1  ;;  %5301 = vmatprep.subr.bf16.mxu1 %v5919_v53 }
 0xe3f   : > { %v4301_v63 = vpop.f32.mrf.mxu1 }
 0xe40   : > { %v4313_v3 = vadd.f32 %v4312_v35, %v4301_v63  ;;  %5302 = vmatpush3.bf16.msra.mxu1 %v5920_v54  ;;  %v6007_v54 = vld [vmem:[%s6601_s6] sm:$0xff]  ;;  %s6293_s6 = smov [#allocation15]  }
 0xe41   : > { %v5637_v4 = vpop.f32.mrf.mxu1  ;;  %5303 = vmatprep.subr.bf16.mxu1 %v5921_v55  ;;  %s6196_s3 = sshll.u32 %s6293_s6, 4  ;;  %s6197_s3 = int_to_ptr.vmem [resolvable:$false] %s6196_s3 }
 0xe42   : > { %v4319_v5 = vadd.f32 %v5108_v0, %v4313_v3  ;;  %s6198_s26 = scalar_lea.vmem %s6197_s3, 32  ;;  %p6199_p8 = scmp.lt.s32.totalorder %s4795_s21, %s6197_s3 }
 0xe43   : > { %v4304_v6 = vpop.f32.mrf.mxu1  ;;  %p6200_p9 = scmp.lt.s32.totalorder %s6198_s26, %s6192_s20 }
 0xe44   : > { %v7103_v7 = vadd.f32 %v4319_v5, %v6887_v48  ;;  %v5897_v48 = vld [vmem:[#allocation12 + $0xb4] ss:$8 sps:$4 sm:$0xff]   ;;  %5304 = vmatpush3.bf16.msra.mxu1 %v5922_v47 }
 0xe45   : > { %v5638_v8 = vpop.f32.mrf.mxu1  ;;  %4465 = vmatprep.subr.bf16.mxu0 %v5897_v48  ;;  %p6201_p7 = por %p6200_p9, %p6199_p8 }
 0xe46   : > { %4323 = vadd.xlane.f32.xlu1 %v7103_v7  ;;  %v4326_v9 = vmul.f32 %v7103_v7, %v7103_v7  ;;  %4466 = vmatpush1.bf16.msra.mxu0 %v5895_v22 }
 0xe47   : > { %4467 = vmatprep.subr.bf16.mxu0 %v5900_v16  ;;  %p6202_p6 = pnand %p6201_p7, %p6195_p4 }
 0xe48   : > { %4327 = vadd.xlane.f32.xlu0 %v4326_v9 }
 0xe4a   : > { %4468 = vmatpush1.bf16.msra.mxu0 %v5898_v17 }
 0xe4b   : > { %4469 = vmatprep.subr.bf16.mxu0 %v5903_v13 }
 0xe4e   : > { %4470 = vmatpush1.bf16.msra.mxu0 %v5901_v18 }
 0xe4f   : > { %4471 = vmatprep.subr.bf16.mxu0 %v5906_v19  ;;  %v5128_v19 = vld [vmem:[%s7191_s15 + $0x1] ss:$0 sm:$0xff] }
 0xe52   : > { %4472 = vmatpush1.bf16.msra.mxu0 %v5904_v20 }
 0xecf   : > { %v4324_v23 = vpop.xlane.xlu1 %4323 }
 0xed0   : > { %v4325_v24 = vmul.f32 0.0078125, %v4324_v23 }
 0xed1   : > { %v4328_v1 = vpop.xlane.xlu0 %4327 }
 0xed2   : > { %v4330_v21 = vmul.f32 %v4325_v24, %v4325_v24  ;;  %v4329_v26 = vmul.f32 0.0078125, %v4328_v1  ;;  %v4332_v29 = vsub.f32 %v7103_v7, %v4325_v24 }
 0xed4   : > { %v4331_v27 = vsub.f32 %v4329_v26, %v4330_v21 }
 0xed6   : > { %v4333_v28 = vadd.f32 1e-06, %v4331_v27 }
 0xed8   : > { %5995 = vrsqrt.f32 %v4333_v28 }
 0xee5   : > { %v5996_v34 = vpop.eup %5995 }
 0xee6   : > { %v4335_v30 = vmul.f32 %v5996_v34, %v4332_v29 }
 0xee8   : > { %v4340_v2 = vmul.f32 %v5109_v32, %v4335_v30 }
 0xeea   : > { %v4345_v39 = vadd.f32 %v5110_v33, %v4340_v2 }
 0xeec   : > { %v4363_v31 = vpack.c.bf16 %v4345_v39, %v4345_v39 }
 0xeee   : > { %4490 = vmatmul.mubr.bf16.vlgmr.msra.gmra.mxu0 %v4363_v31 }
 0xfae   : > { %v4491_v60 = vpop.f32.mrf.mxu0 }
 0xfaf   : > { %v4492_v61 = vadd.f32 %v4491_v60, %v4370_v56 }
 0xfb0   : > { %v4493_v62 = vpop.f32.mrf.mxu0 }
 0xfb1   : > { %v4500_v25 = vmul.f32 %v4492_v61, %v4492_v61  ;;  %v4494_v35 = vadd.f32 %v4493_v62, %v4374_v58  ;;  %v4498_v14 = vmul.f32 0.5, %v4492_v61 }
 0xfb2   : > { %v4495_v63 = vpop.f32.mrf.mxu0 }
 0xfb3   : > { %v4502_v0 = vmul.f32 %v4500_v25, %v4492_v61  ;;  %v4501_v3 = vmul.f32 %v4494_v35, %v4494_v35  ;;  %v4499_v15 = vmul.f32 0.5, %v4494_v35 }
 0xfb4   : > { %v4496_v4 = vpop.f32.mrf.mxu0 }
 0xfb5   : > { %v4504_v5 = vmul.f32 0.044715, %v4502_v0  ;;  %v4503_v6 = vmul.f32 %v4501_v3, %v4494_v35 }
 0xfb7   : > { %v4506_v8 = vadd.f32 %v4504_v5, %v4492_v61  ;;  %v4505_v9 = vmul.f32 0.044715, %v4503_v6 }
 0xfb9   : > { %v4508_v10 = vmul.f32 0.7978846, %v4506_v8  ;;  %v4507_v11 = vadd.f32 %v4505_v9, %v4494_v35 }
 0xfbb   : > { %5997 = vtanh.f32 %v4508_v10  ;;  %v4509_v59 = vmul.f32 0.7978846, %v4507_v11 }
 0xfbd   : > { %5999 = vtanh.f32 %v4509_v59 }
 0xfc8   : > { %v5998_v36 = vpop.eup %5997 }
 0xfc9   : > { %v4512_v38 = vadd.f32 1.0, %v5998_v36 }
 0xfca   : > { %v6000_v12 = vpop.eup %5999 }
 0xfcb   : > { %v4513_v48 = vadd.f32 1.0, %v6000_v12  ;;  %v4514_v22 = vmul.f32 %v4512_v38, %v4498_v14 }
 0xfcd   : > { %v4515_v16 = vmul.f32 %v4513_v48, %v4499_v15  ;;  %v4549_v13 = vpack.c.bf16 %v4514_v22, %v4514_v22 }
 0xfcf   : > { %v4550_v17 = vpack.c.bf16 %v4515_v16, %v4515_v16 }
 0xfd1   : > { %4684 = vmatprep.mubr.bf16.mxu1 %v4550_v17 }
 0xfd2   : > { %4685 = vmatmul.mubr.bf16.vlgmr.msra.gmra.mxu1 %v4549_v13 }
0x1092   : > { %v5305_v18 = vpop.f32.mrf.mxu1 }
0x1094   : > { %v5306_v20 = vpop.f32.mrf.mxu1 }
0x1095   : > { %v5307_v23 = vadd.f32 %v5306_v20, %v5305_v18 }
0x1096   : > { %v5308_v24 = vpop.f32.mrf.mxu1 }
0x1097   : > { %v4687_v1 = vadd.f32 %v5307_v23, %v5128_v19 }
0x1098   : > { %v5309_v21 = vpop.f32.mrf.mxu1 }
0x1099   : > { %v4692_v26 = vadd.f32 %v4687_v1, %v7103_v7  ;;  %v5146_v7 = vld [vmem:[%s7193_s17] ss:$0 sm:$0xff] }
0x109b   : > { %4695 = vadd.xlane.f32.xlu0 %v4692_v26  ;;  %v4698_v27 = vmul.f32 %v4692_v26, %v4692_v26 }
0x109d   : > { %4699 = vadd.xlane.f32.xlu1 %v4698_v27 }
0x1124   : > { %v4696_v28 = vpop.xlane.xlu0 %4695 }
0x1125   : > { %v4697_v29 = vmul.f32 0.0078125, %v4696_v28 }
0x1126   : > { %v4700_v34 = vpop.xlane.xlu1 %4699 }
0x1127   : > { %v4702_v32 = vmul.f32 %v4697_v29, %v4697_v29  ;;  %v4701_v30 = vmul.f32 0.0078125, %v4700_v34  ;;  %v4704_v39 = vsub.f32 %v4692_v26, %v4697_v29 }
0x1129   : > { %v4703_v33 = vsub.f32 %v4701_v30, %v4702_v32 }
0x112b   : > { %v4705_v2 = vadd.f32 1e-06, %v4703_v33 }
0x112d   : > { %6001 = vrsqrt.f32 %v4705_v2 }
0x113a   : > { %v6002_v31 = vpop.eup %6001 }
0x113b   : > { %v4707_v40 = vmul.f32 %v6002_v31, %v4704_v39 }
0x113d   : > { %v4714_v41 = vmul.f32 %v5145_v37, %v4707_v40 }
0x113f   : > { %v4721_v43 = vadd.f32 %v5146_v7, %v4714_v41 }
0x1141   : > { %v4729_v44 = vmul.f32 %v5147_v42, %v4721_v43 }
0x1143   : > { %4730 = vadd.xlane.f32.xlu0 %v4729_v44 }
0x11cc   : > { %v4731_v46 = vpop.xlane.xlu0 %4730 }
0x11cd   : > { %v4739_v49 = vadd.f32 %v5148_v45, %v4731_v46 }
0x11cf   : > { %v5149_v50 = vmul.f32 -1.442695, %v4739_v49 }
0x11d1   : > { %6003 = vpow2.f32 %v5149_v50 }
0x11de   : > { %v6004_v51 = vpop.eup %6003 }
0x11df   : > { %v4743_v52 = vadd.f32 1.0, %v6004_v51 }
0x11e1   : > { %6005 = vrcp.f32 %v4743_v52 }
0x11ee   : > { %v6006_v53 = vpop.eup %6005 }
0x11ef   : > { %v4746_v55 = vmul.f32 %v6007_v54, %v6006_v53 }
0x11f1   : > { %4747 = vxpose.xlu1.b32.start.end [1/1] (short) (narrow) %v4746_v55, 8 }
0x126d   : > { %v4763_v47 = vpop.trf.xlu1 }
0x126e   : > { %4780 = vst.msk [vmem:[%s751_s18] sm:$0x1] %vm4779_vm4, %v4763_v47 }
0x126f   : > { %6205 = shalt.err (!%p6202_p6)
}
0x1270   : > { %s6206_s0 = scalar_lea.hbm %s7139_s28, 16  ;;  %s6210_s2 = scalar_lea.hbm %s7249_s8, 32 }
0x1271   : > { %p6207_p5 = scmp.ne.s32.totalorder %s7139_s28, %s6206_s0  ;;  %p6211_p11 = scmp.lt.s32.totalorder %s7139_s28, %s7249_s8 }
0x1272   : > { %p6212_p10 = scmp.lt.s32.totalorder %s6210_s2, %s6206_s0 }
0x1273   : > { %p6208_p1 = pnand %p6207_p5, %p7250_p0 }
0x1274   : > { %p6213_p12 = por %p6212_p10, %p6211_p11 }
0x1275   : > { %p6209_p3 = pneg %p6208_p1 }
0x1277   : > { %p6214_p13 = pnand %p6213_p12, %p6209_p3 }
0x1279   : > { %6217 = shalt.err (!%p6214_p13)
}
0x127a   : > { %5665 = dma.vmem_to_hbm [thread:$0]  (%p7250_p0), %s4795_s21, 16, %s7139_s28, %s4782_s19  }
0x127b PF: > { %s4806_s18 = sand.u32 1, %s6256_s23   ;;  %p7251_p2 = scmp.ne.s32.totalorder %s7234_s1, 0 }
0x127c   : > { %p7252_p4 = scmp.ge.s32.totalorder %s6268_s25, 2  ;;  %s4807_s22 = scalar_lea.sflag [#allocation5], %s4806_s18 }
0x127e   : > { %p5691_p8 = pnand %p7252_p4, %p7251_p2 }
0x1280   : > { %p5692_p9 = pneg %p5691_p8 }
0x1282   : > { %6251 = dma.done.wait (%p5692_p9), %s4807_s22, 16  }
0x1283   : > { %6253 = vsyncadd (%p5692_p9), %s4807_s22, 4294967280  ;;  %s7253_s25 = sld [smem:[#allocation22_spill]]  ;;  %s7256_s23 = smov %s6260_s24 }
0x1284   : > { %s7254_s30 = sld [smem:[#allocation21_spill]] }
0x1285   : > { %s7255_s2 = sld [smem:[#allocation23_spill]] }
0x1289   : > { %p38_p7 = scmp.ge.s32.totalorder %s7253_s25, 4  }
0x128a   : > { %s7257_s24 = smov %s7254_s30 }
0x128b   :  { %40 = sbr.rel (!%p38_p7) target bundleno = 21 (0x15), region = 181 }
0x1290   :  { %4811 = vsyncpa [#allocation4], 1 }
0x1291   :  { %4813 = vsyncpa [#allocation4 + $0x1], 1 }
0x1292   :  { %4814 = vsyncpa [#allocation7], 1 }
0x1293   :  { %4815 = vsyncpa [#allocation10], 1 }
0x1294   :  { %4816 = vsyncpa [#allocation13], 1 }
0x1295   :  { %4817 = vsyncpa [#allocation5], 1 }
0x1296   :  { %4819 = vsyncpa [#allocation5 + $0x1], 1 }

</bundles_post_ra>
